<compile_context>
chip_gen: v7x
topology: tpu7x:2x2x1
jax: 0.10.0
libtpu: 0.0.40
codegen_flags: <defaults>
</compile_context>

<pallas_src>
import functools

import jax
import jax.numpy as jnp
from jax.experimental import pallas as pl
from jax.experimental.pallas import tpu as pltpu


def _vmem_limit_bytes():
    """Generation-aware VMEM budget: 85% of per-core VMEM, 64 MiB fallback."""
    try:
        cap = int(pltpu.get_tpu_info().vmem_capacity_bytes)
        return max(32 * 1024 * 1024, int(cap * 0.85))
    except Exception:
        return 64 * 1024 * 1024


_VMEM_LIMIT = _vmem_limit_bytes()


def _tile(dim, target, align):
    """Largest tile <= target that divides dim (falls back to full dim).

    # TODO(synk): add remainder/padding handling for dims with no aligned divisor.
    """
    if dim <= target:
        return dim
    t = (min(target, dim) // align) * align
    while t > align and dim % t != 0:
        t -= align
    return t if (t > 0 and dim % t == 0) else dim


# ----------------------------------------------------------------------------
# Pallas kernels
# ----------------------------------------------------------------------------
def _ln_linear_kernel(x_ref, g_ref, b_ref, w_ref, bias_ref, o_ref, xn_ref, *, eps, act):
    """Fused LayerNorm + GEMM (+ optional gelu-tanh).  Full-K (tk == H) blocks;
    the normalized x row-block is computed once per i and cached in VMEM scratch."""
    @pl.when(pl.program_id(1) == 0)
    def _():
        x = x_ref[...].astype(jnp.float32)
        mu = jnp.mean(x, axis=-1, keepdims=True)
        xc = x - mu
        var = jnp.mean(xc * xc, axis=-1, keepdims=True)
        xn = xc * jax.lax.rsqrt(var + eps) * g_ref[...].astype(jnp.float32) \
             + b_ref[...].astype(jnp.float32)
        xn_ref[...] = xn.astype(xn_ref.dtype)

    y = jnp.dot(xn_ref[...], w_ref[...], preferred_element_type=jnp.float32) \
        + bias_ref[...].astype(jnp.float32)
    if act == "gelu_tanh":
        c = 0.7978845608028654  # sqrt(2/pi)
        y = 0.5 * y * (1.0 + jnp.tanh(c * (y + 0.044715 * y * y * y)))
    o_ref[...] = y.astype(o_ref.dtype)


def _linear_kernel(*refs, has_residual):
    """K-tiled GEMM with f32 accumulator, fused bias (+ residual add) epilogue."""
    if has_residual:
        x_ref, w_ref, b_ref, r_ref, o_ref, acc_ref = refs
    else:
        x_ref, w_ref, b_ref, o_ref, acc_ref = refs
        r_ref = None

    k = pl.program_id(2)

    @pl.when(k == 0)
    def _():
        acc_ref[...] = jnp.zeros_like(acc_ref)

    acc_ref[...] += jnp.dot(x_ref[...], w_ref[...],
                            preferred_element_type=jnp.float32)

    @pl.when(k == pl.num_programs(2) - 1)
    def _():
        y = acc_ref[...] + b_ref[...].astype(jnp.float32)
        if r_ref is not None:
            y = y + r_ref[...].astype(jnp.float32)
        o_ref[...] = y.astype(o_ref.dtype)


def _mqa_flash_kernel(q_ref, k_ref, v_ref, o_ref, m_ref, l_ref, acc_ref, *, scale, tq):
    """Multi-query causal flash attention.  K/V are whole-(T, D) VMEM-resident
    blocks; kv chunks are walked with pl.ds up to the causal boundary only, and
    mask math runs only on the diagonal block."""
    qi = pl.program_id(1)

    m_ref[...] = jnp.full(m_ref.shape, -jnp.inf, jnp.float32)
    l_ref[...] = jnp.zeros_like(l_ref)
    acc_ref[...] = jnp.zeros_like(acc_ref)

    # Fold the softmax scale into q once per (head, q-block).
    q = (q_ref[...].astype(jnp.float32) * scale).astype(q_ref.dtype)

    def attend(k_start, masked):
        kb = k_ref[pl.ds(k_start, tq), :]
        vb = v_ref[pl.ds(k_start, tq), :]
        s = jax.lax.dot_general(q, kb, (((1,), (1,)), ((), ())),
                                preferred_element_type=jnp.float32)      # (tq, tq)
        if masked:
            row = qi * tq + jax.lax.broadcasted_iota(jnp.int32, s.shape, 0)
            col = k_start + jax.lax.broadcasted_iota(jnp.int32, s.shape, 1)
            s = jnp.where(col <= row, s, -jnp.inf)
        m_prev = m_ref[...]
        m_new = jnp.maximum(m_prev, jnp.max(s, axis=-1, keepdims=True))
        alpha = jnp.exp(m_prev - m_new)
        p = jnp.exp(s - m_new)
        l_ref[...] = alpha * l_ref[...] + jnp.sum(p, axis=-1, keepdims=True)
        acc_ref[...] = alpha * acc_ref[...] + jnp.dot(
            p.astype(vb.dtype), vb, preferred_element_type=jnp.float32)
        m_ref[...] = m_new

    # Interior (fully below-diagonal) kv blocks: no mask math, no per-block DMA.
    @pl.loop(0, qi)
    def _(kvi):
        start = kvi * tq
        if tq % 8 == 0:
            start = pl.multiple_of(start, 8)
        attend(start, masked=False)

    # Diagonal block (always present, partially masked).
    attend(qi * tq, masked=True)

    o_ref[...] = (acc_ref[...] / l_ref[...]).astype(o_ref.dtype)


def _lm_head_kernel(h_ref, g_ref, b_ref, w_ref, o_ref, *, eps):
    """Fused ln_f + last-token logits against the tied embedding in its natural
    (Vp, H) layout (no runtime transpose, tk == H so no reduction grid axis)."""
    x = h_ref[...].astype(jnp.float32)                     # (1, H)
    mu = jnp.mean(x, axis=-1, keepdims=True)
    xc = x - mu
    var = jnp.mean(xc * xc, axis=-1, keepdims=True)
    hn = (xc * jax.lax.rsqrt(var + eps) * g_ref[...].astype(jnp.float32)
          + b_ref[...].astype(jnp.float32)).astype(w_ref.dtype)
    o_ref[...] = jax.lax.dot_general(hn, w_ref[...], (((1,), (1,)), ((), ())),
                                     preferred_element_type=jnp.float32)


# ----------------------------------------------------------------------------
# Pallas wrappers
# ----------------------------------------------------------------------------
def pallas_ln_linear(x, gamma, beta, w, b, eps, act=None, out_dtype=jnp.bfloat16,
                     tm=256, tn=1024):
    """y = act(LayerNorm(x) @ w + b); x:(T,H) bf16, w:(H,N) bf16, b:(N,) f32."""
    T, H = x.shape
    N = w.shape[1]
    tm = _tile(T, tm, 8)
    tn = _tile(N, tn, 128)
    grid = (T // tm, N // tn)
    return pl.pallas_call(
        functools.partial(_ln_linear_kernel, eps=eps, act=act),
        out_shape=jax.ShapeDtypeStruct((T, N), out_dtype),
        grid=grid,
        in_specs=[
            pl.BlockSpec((tm, H), lambda i, j: (i, 0)),
            pl.BlockSpec((1, H), lambda i, j: (0, 0)),
            pl.BlockSpec((1, H), lambda i, j: (0, 0)),
            pl.BlockSpec((H, tn), lambda i, j: (0, j)),
            pl.BlockSpec((1, tn), lambda i, j: (0, j)),
        ],
        out_specs=pl.BlockSpec((tm, tn), lambda i, j: (i, j)),
        scratch_shapes=[pltpu.VMEM((tm, H), jnp.bfloat16)],
        compiler_params=pltpu.CompilerParams(
            dimension_semantics=("parallel", "arbitrary"),
            vmem_limit_bytes=_VMEM_LIMIT),
        cost_estimate=pl.CostEstimate(
            flops=2 * T * H * N,
            transcendentals=(T * N if act == "gelu_tanh" else T),
            bytes_accessed=(T * H + H * N + T * N) * 2),
    )(x, gamma.reshape(1, H), beta.reshape(1, H), w, b.reshape(1, N))


def pallas_linear(x, w, b, residual=None, out_dtype=jnp.bfloat16,
                  tm=256, tn=1024, tk=1024):
    """y = x @ w + b [+ residual]; x:(T,K) bf16, w:(K,N) bf16, b:(N,) f32."""
    T, K = x.shape
    N = w.shape[1]
    tm = _tile(T, tm, 8)
    tn = _tile(N, tn, 128)
    tk = _tile(K, tk, 128)
    grid = (T // tm, N // tn, K // tk)

    in_specs = [
        pl.BlockSpec((tm, tk), lambda i, j, k: (i, k)),
        pl.BlockSpec((tk, tn), lambda i, j, k: (k, j)),
        pl.BlockSpec((1, tn), lambda i, j, k: (0, j)),
    ]
    inputs = [x, w, b.reshape(1, N)]
    if residual is not None:
        in_specs.append(pl.BlockSpec((tm, tn), lambda i, j, k: (i, j)))
        inputs.append(residual)

    return pl.pallas_call(
        functools.partial(_linear_kernel, has_residual=residual is not None),
        out_shape=jax.ShapeDtypeStruct((T, N), out_dtype),
        grid=grid,
        in_specs=in_specs,
        out_specs=pl.BlockSpec((tm, tn), lambda i, j, k: (i, j)),
        scratch_shapes=[pltpu.VMEM((tm, tn), jnp.float32)],
        compiler_params=pltpu.CompilerParams(
            dimension_semantics=("parallel", "parallel", "arbitrary"),
            vmem_limit_bytes=_VMEM_LIMIT),
        cost_estimate=pl.CostEstimate(
            flops=2 * T * K * N, transcendentals=0,
            bytes_accessed=(T * K + K * N + 2 * T * N) * 2),
    )(*inputs)


def pallas_mqa_attention(qkv, num_heads, head_dim, scale, tq=512):
    """Multi-query causal flash attention (prefill).

    qkv: (T, H + 2*D) bf16 fused projection output: q in cols [0,H), k in
    [H,H+D), v in [H+D,H+2D).  K/V are VMEM-resident; output is (T, H) bf16
    written lane-dense per head via the index_map.
    """
    T = qkv.shape[0]
    D = head_dim
    H = num_heads * D
    tq = _tile(T, tq, 8)
    grid = (num_heads, T // tq)
    return pl.pallas_call(
        functools.partial(_mqa_flash_kernel, scale=scale, tq=tq),
        out_shape=jax.ShapeDtypeStruct((T, H), qkv.dtype),
        grid=grid,
        in_specs=[
            pl.BlockSpec((tq, D), lambda h, qi: (qi, h)),             # q slice
            pl.BlockSpec((T, D), lambda h, qi: (0, num_heads)),       # k (resident)
            pl.BlockSpec((T, D), lambda h, qi: (0, num_heads + 1)),   # v (resident)
        ],
        out_specs=pl.BlockSpec((tq, D), lambda h, qi: (qi, h)),
        scratch_shapes=[
            pltpu.VMEM((tq, 1), jnp.float32),
            pltpu.VMEM((tq, 1), jnp.float32),
            pltpu.VMEM((tq, D), jnp.float32),
        ],
        compiler_params=pltpu.CompilerParams(
            dimension_semantics=("parallel", "parallel"),
            vmem_limit_bytes=_VMEM_LIMIT),
        cost_estimate=pl.CostEstimate(
            flops=2 * num_heads * T * T * D,          # upper bound (causal ~ /2)
            transcendentals=num_heads * T * T,
            bytes_accessed=(T * (H + 2 * D) + T * H) * 2),
    )(qkv, qkv, qkv)


def pallas_lm_head(h_last, gamma, beta, wte, eps, tn=None):
    """Last-token logits = ln_f(h_last) @ wte.T, streaming the tied embedding in
    its natural (Vp, H) layout with tk == H (no reduction grid axis)."""
    Vp, H = wte.shape
    if tn is None:
        budget = _VMEM_LIMIT // 4                      # double-buffered weight blocks
        tn = max(128, min(4096, (budget // (2 * H)) // 128 * 128))
    tn = _tile(Vp, tn, 128)
    grid = (Vp // tn,)
    return pl.pallas_call(
        functools.partial(_lm_head_kernel, eps=eps),
        out_shape=jax.ShapeDtypeStruct((1, Vp), jnp.float32),
        grid=grid,
        in_specs=[
            pl.BlockSpec((1, H), lambda j: (0, 0)),
            pl.BlockSpec((1, H), lambda j: (0, 0)),
            pl.BlockSpec((1, H), lambda j: (0, 0)),
            pl.BlockSpec((tn, H), lambda j: (j, 0)),
        ],
        out_specs=pl.BlockSpec((1, tn), lambda j: (0, j)),
        compiler_params=pltpu.CompilerParams(
            dimension_semantics=("parallel",),
            vmem_limit_bytes=_VMEM_LIMIT),
        cost_estimate=pl.CostEstimate(
            flops=2 * H * Vp, transcendentals=2,
            bytes_accessed=Vp * H * 2 + Vp * 4),
    )(h_last, gamma.reshape(1, H), beta.reshape(1, H), wte)


# ----------------------------------------------------------------------------
# Model (GPTBigCode, multi_query=True, world_size=1)
# ----------------------------------------------------------------------------
def init_params(key, cfg):
    H = cfg["hidden_size"]
    D = cfg["head_dim"]
    I = cfg["n_inner"]
    Vp = cfg["padded_vocab"]
    P = cfg["max_position_embeddings"]
    scale = 0.02

    def normal(k, shape):
        return (scale * jax.random.normal(k, shape, dtype=jnp.float32)).astype(jnp.bfloat16)

    keys = jax.random.split(key, 4 + cfg["num_layers"])
    params = {
        "wte": normal(keys[0], (Vp, H)),
        "wpe": normal(keys[1], (P, H)),
        "ln_f_g": jnp.ones((H,), jnp.float32),
        "ln_f_b": jnp.zeros((H,), jnp.float32),
        "layers": [],
    }
    for li in range(cfg["num_layers"]):
        lk = jax.random.split(keys[4 + li], 6)
        wq = normal(lk[0], (H, H))                # c_attn_q
        wkv = normal(lk[1], (H, 2 * D))           # c_attn_kv
        params["layers"].append({
            "ln1_g": jnp.ones((H,), jnp.float32),
            "ln1_b": jnp.zeros((H,), jnp.float32),
            "wqkv": jnp.concatenate([wq, wkv], axis=1),   # fused [wq | wk | wv]
            "bqkv": jnp.zeros((H + 2 * D,), jnp.float32),
            "wo": normal(lk[2], (H, H)),          # attn c_proj
            "bo": jnp.zeros((H,), jnp.float32),
            "ln2_g": jnp.ones((H,), jnp.float32),
            "ln2_b": jnp.zeros((H,), jnp.float32),
            "wfc": normal(lk[3], (H, I)),         # mlp c_fc
            "bfc": jnp.zeros((I,), jnp.float32),
            "wproj": normal(lk[4], (I, H)),       # mlp c_proj
            "bproj": jnp.zeros((H,), jnp.float32),
        })
    return params


def block_forward(h, p, cfg):
    nh, D, eps = cfg["num_heads"], cfg["head_dim"], cfg["eps"]
    # --- attention (LN1 fused into the QKV GEMM) ---
    residual = h
    qkv = pallas_ln_linear(h, p["ln1_g"], p["ln1_b"], p["wqkv"], p["bqkv"], eps)
    # TODO(synk): vLLM PagedAttention also writes k/v into a paged KV cache; here we
    #             implement the prefill attention math only.
    attn = pallas_mqa_attention(qkv, nh, D, D ** -0.5)
    h = pallas_linear(attn, p["wo"], p["bo"], residual=residual)     # fused residual add
    # --- mlp (LN2 fused into c_fc) ---
    residual = h
    x = pallas_ln_linear(h, p["ln2_g"], p["ln2_b"], p["wfc"], p["bfc"], eps,
                         act="gelu_tanh")
    h = pallas_linear(x, p["wproj"], p["bproj"], residual=residual)  # fused residual add
    return h


def gpt_bigcode_forward(params, input_ids, positions, cfg):
    # Embeddings (gather = glue), bf16 activations throughout.
    h = (params["wte"][input_ids] + params["wpe"][positions]).astype(jnp.bfloat16)
    for p in params["layers"]:
        h = block_forward(h, p, cfg)
    # lm_head (tied weights): ln_f fused, last-token logits only.
    h_last = h[-1:, :]
    logits = pallas_lm_head(h_last, params["ln_f_g"], params["ln_f_b"],
                            params["wte"], cfg["eps"])               # (1, Vp) f32
    # Sampler (greedy) over the true vocab.
    # TODO(synk): full vLLM Sampler (temperature/top-p/top-k) not reproduced; greedy only.
    next_token = jnp.argmax(logits[0, : cfg["vocab_size"]])
    return next_token, logits


# ----------------------------------------------------------------------------
if __name__ == "__main__":
    cfg = {
        "hidden_size": 256,
        "num_heads": 2,
        "head_dim": 128,                          # hidden_size // num_heads
        "num_layers": 2,
        "n_inner": 512,
        "vocab_size": 100,
        "padded_vocab": (100 + 63) // 64 * 64,    # 128
        "max_position_embeddings": 64,
        "eps": 1e-5,
        "multi_query": True,
    }
    seq_len = 16

    key = jax.random.PRNGKey(0)
    pkey, ikey = jax.random.split(key)
    params = init_params(pkey, cfg)

    input_ids = jax.random.randint(ikey, (seq_len,), 0, cfg["vocab_size"], dtype=jnp.int32)
    positions = jnp.arange(seq_len, dtype=jnp.int32)

    next_token, logits = jax.jit(
        functools.partial(gpt_bigcode_forward, cfg=cfg)
    )(params, input_ids, positions)
    jax.block_until_ready((next_token, logits))

    assert logits.shape == (1, cfg["padded_vocab"])
    assert jnp.isfinite(logits).all()
    assert 0 <= int(next_token) < cfg["vocab_size"]
    print("KERNEL_OK")
</pallas_src>

<mosaic_0001>
module attributes {stable_mosaic.version = 11 : i64} {
  func.func @_ln_linear_kernel(%arg0: i32, %arg1: i32, %arg2: memref<16x256xbf16, #tpu.memory_space<vmem>>, %arg3: memref<1x256xf32, #tpu.memory_space<vmem>>, %arg4: memref<1x256xf32, #tpu.memory_space<vmem>>, %arg5: memref<256x512xbf16, #tpu.memory_space<vmem>>, %arg6: memref<1x512xf32, #tpu.memory_space<vmem>>, %arg7: memref<16x512xbf16, #tpu.memory_space<vmem>>, %arg8: memref<16x256xbf16, #tpu.memory_space<vmem>>) attributes {dimension_semantics = [#tpu.dimension_semantics<parallel>, #tpu.dimension_semantics<arbitrary>], iteration_bounds = array<i64: 1, 1>, scalar_prefetch = 0 : i64, scratch_operands = 1 : i64, tpu.core_type = #tpu.core_type<tc>, window_params = [{transform_indices = @transform_0, window_bounds = array<i64: 16, 256>}, {pipeline_mode = #tpu.pipeline_mode<synchronous>, transform_indices = @transform_1, window_bounds = array<i64: 1, 256>}, {pipeline_mode = #tpu.pipeline_mode<synchronous>, transform_indices = @transform_2, window_bounds = array<i64: 1, 256>}, {transform_indices = @transform_3, window_bounds = array<i64: 256, 512>}, {transform_indices = @transform_4, window_bounds = array<i64: 1, 512>}, {transform_indices = @transform_5, window_bounds = array<i64: 16, 512>}]} {
    %c0_i32 = arith.constant 0 : i32
    %0 = arith.cmpi eq, %arg1, %c0_i32 : i32
    %1 = arith.extui %0 : i1 to i32
    %c0_i32_0 = arith.constant 0 : i32
    %2 = arith.cmpi ne, %1, %c0_i32_0 : i32
    scf.if %2 {
      %c0_8 = arith.constant 0 : index
      %c0_9 = arith.constant 0 : index
      %11 = vector.load %arg2[%c0_8, %c0_9] : memref<16x256xbf16, #tpu.memory_space<vmem>>, vector<16x256xbf16>
      %12 = arith.extf %11 : vector<16x256xbf16> to vector<16x256xf32>
      %cst_10 = arith.constant dense<0.000000e+00> : vector<16xf32>
      %13 = vector.multi_reduction <add>, %12, %cst_10 [1] : vector<16x256xf32> to vector<16xf32>
      %14 = vector.shape_cast %13 : vector<16xf32> to vector<16x1xf32>
      %cst_11 = arith.constant 2.560000e+02 : f32
      %15 = vector.broadcast %cst_11 : f32 to vector<16x1xf32>
      %16 = arith.divf %14, %15 : vector<16x1xf32>
      %17 = vector.broadcast %16 : vector<16x1xf32> to vector<16x256xf32>
      %18 = arith.subf %12, %17 : vector<16x256xf32>
      %19 = arith.mulf %18, %18 : vector<16x256xf32>
      %cst_12 = arith.constant dense<0.000000e+00> : vector<16xf32>
      %20 = vector.multi_reduction <add>, %19, %cst_12 [1] : vector<16x256xf32> to vector<16xf32>
      %21 = vector.shape_cast %20 : vector<16xf32> to vector<16x1xf32>
      %cst_13 = arith.constant 2.560000e+02 : f32
      %22 = vector.broadcast %cst_13 : f32 to vector<16x1xf32>
      %23 = arith.divf %21, %22 : vector<16x1xf32>
      %cst_14 = arith.constant 9.99999974E-6 : f32
      %24 = vector.broadcast %cst_14 : f32 to vector<16x1xf32>
      %25 = arith.addf %23, %24 : vector<16x1xf32>
      %26 = math.rsqrt %25 : vector<16x1xf32>
      %27 = vector.broadcast %26 : vector<16x1xf32> to vector<16x256xf32>
      %28 = arith.mulf %18, %27 : vector<16x256xf32>
      %c0_15 = arith.constant 0 : index
      %c0_16 = arith.constant 0 : index
      %29 = vector.load %arg3[%c0_15, %c0_16] : memref<1x256xf32, #tpu.memory_space<vmem>>, vector<1x256xf32>
      %30 = vector.broadcast %29 : vector<1x256xf32> to vector<16x256xf32>
      %31 = arith.mulf %28, %30 : vector<16x256xf32>
      %c0_17 = arith.constant 0 : index
      %c0_18 = arith.constant 0 : index
      %32 = vector.load %arg4[%c0_17, %c0_18] : memref<1x256xf32, #tpu.memory_space<vmem>>, vector<1x256xf32>
      %33 = vector.broadcast %32 : vector<1x256xf32> to vector<16x256xf32>
      %34 = arith.addf %31, %33 : vector<16x256xf32>
      %35 = arith.truncf %34 : vector<16x256xf32> to vector<16x256xbf16>
      %c0_19 = arith.constant 0 : index
      %c0_20 = arith.constant 0 : index
      %36 = vector.load %arg8[%c0_19, %c0_20] : memref<16x256xbf16, #tpu.memory_space<vmem>>, vector<16x256xbf16>
      tpu.vector_store %arg8[%c0_19, %c0_20], %35 {strides = array<i32>} : memref<16x256xbf16, #tpu.memory_space<vmem>>, vector<16x256xbf16>,
    } else {
    }
    %c0 = arith.constant 0 : index
    %c0_1 = arith.constant 0 : index
    %3 = vector.load %arg8[%c0, %c0_1] : memref<16x256xbf16, #tpu.memory_space<vmem>>, vector<16x256xbf16>
    %c0_2 = arith.constant 0 : index
    %c0_3 = arith.constant 0 : index
    %4 = vector.load %arg5[%c0_2, %c0_3] : memref<256x512xbf16, #tpu.memory_space<vmem>>, vector<256x512xbf16>
    %cst = arith.constant dense<0.000000e+00> : vector<16x512xf32>
    %5 = tpu.matmul %3, %4, %cst {dimension_numbers = #tpu.dot_dimension_numbers<[1], [0], [0], [1], [0, 0, 1, 1], [], []>} : vector<16x256xbf16>, vector<256x512xbf16>, vector<16x512xf32> -> vector<16x512xf32>
    %c0_4 = arith.constant 0 : index
    %c0_5 = arith.constant 0 : index
    %6 = vector.load %arg6[%c0_4, %c0_5] : memref<1x512xf32, #tpu.memory_space<vmem>>, vector<1x512xf32>
    %7 = vector.broadcast %6 : vector<1x512xf32> to vector<16x512xf32>
    %8 = arith.addf %5, %7 : vector<16x512xf32>
    %9 = arith.truncf %8 : vector<16x512xf32> to vector<16x512xbf16>
    %c0_6 = arith.constant 0 : index
    %c0_7 = arith.constant 0 : index
    %10 = vector.load %arg7[%c0_6, %c0_7] : memref<16x512xbf16, #tpu.memory_space<vmem>>, vector<16x512xbf16>
    tpu.vector_store %arg7[%c0_6, %c0_7], %9 {strides = array<i32>} : memref<16x512xbf16, #tpu.memory_space<vmem>>, vector<16x512xbf16>,
    return
  }
  func.func @transform_0(%arg0: i32, %arg1: i32) -> (i32, i32) {
    %c0_i32 = arith.constant 0 : i32
    %c0_i32_0 = arith.constant 0 : i32
    return %arg0, %c0_i32 : i32, i32
  }
  func.func @transform_1(%arg0: i32, %arg1: i32) -> (i32, i32) {
    %c0_i32 = arith.constant 0 : i32
    %c0_i32_0 = arith.constant 0 : i32
    %c0_i32_1 = arith.constant 0 : i32
    return %c0_i32, %c0_i32_0 : i32, i32
  }
  func.func @transform_2(%arg0: i32, %arg1: i32) -> (i32, i32) {
    %c0_i32 = arith.constant 0 : i32
    %c0_i32_0 = arith.constant 0 : i32
    %c0_i32_1 = arith.constant 0 : i32
    return %c0_i32, %c0_i32_0 : i32, i32
  }
  func.func @transform_3(%arg0: i32, %arg1: i32) -> (i32, i32) {
    %c0_i32 = arith.constant 0 : i32
    %c0_i32_0 = arith.constant 0 : i32
    return %c0_i32, %arg1 : i32, i32
  }
  func.func @transform_4(%arg0: i32, %arg1: i32) -> (i32, i32) {
    %c0_i32 = arith.constant 0 : i32
    %c0_i32_0 = arith.constant 0 : i32
    return %c0_i32, %arg1 : i32, i32
  }
  func.func @transform_5(%arg0: i32, %arg1: i32) -> (i32, i32) {
    %c0_i32 = arith.constant 0 : i32
    return %arg0, %arg1 : i32, i32
  }
}

module attributes {stable_mosaic.version = 11 : i64} {
  func.func @_mqa_flash_kernel(%arg0: i32, %arg1: i32, %arg2: memref<16x128xbf16, #tpu.memory_space<vmem>>, %arg3: memref<16x128xbf16, #tpu.memory_space<vmem>>, %arg4: memref<16x128xbf16, #tpu.memory_space<vmem>>, %arg5: memref<16x128xbf16, #tpu.memory_space<vmem>>, %arg6: memref<16x1xf32, #tpu.memory_space<vmem>>, %arg7: memref<16x1xf32, #tpu.memory_space<vmem>>, %arg8: memref<16x128xf32, #tpu.memory_space<vmem>>) attributes {dimension_semantics = [#tpu.dimension_semantics<parallel>, #tpu.dimension_semantics<parallel>], iteration_bounds = array<i64: 2, 1>, scalar_prefetch = 0 : i64, scratch_operands = 3 : i64, tpu.core_type = #tpu.core_type<tc>, window_params = [{transform_indices = @transform_0, window_bounds = array<i64: 16, 128>}, {transform_indices = @transform_1, window_bounds = array<i64: 16, 128>}, {transform_indices = @transform_2, window_bounds = array<i64: 16, 128>}, {transform_indices = @transform_3, window_bounds = array<i64: 16, 128>}]} {
    %cst = arith.constant 0xFF800000 : f32
    %0 = vector.broadcast %cst : f32 to vector<16x1xf32>
    %c0 = arith.constant 0 : index
    %c0_0 = arith.constant 0 : index
    %1 = vector.load %arg6[%c0, %c0_0] : memref<16x1xf32, #tpu.memory_space<vmem>>, vector<16x1xf32>
    tpu.vector_store %arg6[%c0, %c0_0], %0 {strides = array<i32>} : memref<16x1xf32, #tpu.memory_space<vmem>>, vector<16x1xf32>,
    %cst_1 = arith.constant 0.000000e+00 : f32
    %2 = vector.broadcast %cst_1 : f32 to vector<16x1xf32>
    %c0_2 = arith.constant 0 : index
    %c0_3 = arith.constant 0 : index
    %3 = vector.load %arg7[%c0_2, %c0_3] : memref<16x1xf32, #tpu.memory_space<vmem>>, vector<16x1xf32>
    tpu.vector_store %arg7[%c0_2, %c0_3], %2 {strides = array<i32>} : memref<16x1xf32, #tpu.memory_space<vmem>>, vector<16x1xf32>,
    %cst_4 = arith.constant 0.000000e+00 : f32
    %4 = vector.broadcast %cst_4 : f32 to vector<16x128xf32>
    %c0_5 = arith.constant 0 : index
    %c0_6 = arith.constant 0 : index
    %5 = vector.load %arg8[%c0_5, %c0_6] : memref<16x128xf32, #tpu.memory_space<vmem>>, vector<16x128xf32>
    tpu.vector_store %arg8[%c0_5, %c0_6], %4 {strides = array<i32>} : memref<16x128xf32, #tpu.memory_space<vmem>>, vector<16x128xf32>,
    %c0_7 = arith.constant 0 : index
    %c0_8 = arith.constant 0 : index
    %6 = vector.load %arg2[%c0_7, %c0_8] : memref<16x128xbf16, #tpu.memory_space<vmem>>, vector<16x128xbf16>
    %7 = arith.extf %6 : vector<16x128xbf16> to vector<16x128xf32>
    %cst_9 = arith.constant 0.0883883461 : f32
    %8 = vector.broadcast %cst_9 : f32 to vector<16x128xf32>
    %9 = arith.mulf %7, %8 : vector<16x128xf32>
    %10 = arith.truncf %9 : vector<16x128xf32> to vector<16x128xbf16>
    %c0_i32 = arith.constant 0 : i32
    %11 = arith.subi %arg1, %c0_i32 : i32
    %c1_i32 = arith.constant 1 : i32
    %c1_i32_10 = arith.constant 1 : i32
    %12 = arith.subi %c1_i32, %c1_i32_10 : i32
    %13 = arith.addi %11, %12 : i32
    %c1_i32_11 = arith.constant 1 : i32
    %14 = arith.divsi %13, %c1_i32_11 : i32
    %c1_i32_12 = arith.constant 1 : i32
    %c0_i32_13 = arith.constant 0 : i32
    %c0_i32_14 = arith.constant 0 : i32
    %15 = arith.subi %14, %c0_i32_14 : i32
    %16 = arith.addi %c0_i32_14, %15 : i32
    %c1_i32_15 = arith.constant 1 : i32
    scf.for %arg9 = %c0_i32_14 to %16 step %c1_i32_15  : i32 {
      %62 = arith.muli %arg9, %c1_i32_12 : i32
      %63 = arith.addi %c0_i32_13, %62 : i32
      %c16_i32_42 = arith.constant 16 : i32
      %64 = arith.muli %63, %c16_i32_42 : i32
      %65 = tpu.assume_multiple %64, 8 : i32
      %66 = arith.index_cast %65 : i32 to index
      %c0_43 = arith.constant 0 : index
      %67 = vector.load %arg3[%66, %c0_43] : memref<16x128xbf16, #tpu.memory_space<vmem>>, vector<16x128xbf16>
      %68 = arith.index_cast %65 : i32 to index
      %c0_44 = arith.constant 0 : index
      %69 = vector.load %arg4[%68, %c0_44] : memref<16x128xbf16, #tpu.memory_space<vmem>>, vector<16x128xbf16>
      %cst_45 = arith.constant dense<0.000000e+00> : vector<16x16xf32>
      %70 = tpu.matmul %10, %67, %cst_45 {dimension_numbers = #tpu.dot_dimension_numbers<[1], [1], [0], [0], [0, 0, 1, 0], [], []>} : vector<16x128xbf16>, vector<16x128xbf16>, vector<16x16xf32> -> vector<16x16xf32>
      %c0_46 = arith.constant 0 : index
      %c0_47 = arith.constant 0 : index
      %71 = vector.load %arg6[%c0_46, %c0_47] : memref<16x1xf32, #tpu.memory_space<vmem>>, vector<16x1xf32>
      %cst_48 = arith.constant dense<0xFF800000> : vector<16xf32>
      %72 = vector.multi_reduction <maximumf>, %70, %cst_48 [1] : vector<16x16xf32> to vector<16xf32>
      %73 = vector.shape_cast %72 : vector<16xf32> to vector<16x1xf32>
      %74 = arith.maximumf %71, %73 : vector<16x1xf32>
      %75 = arith.subf %71, %74 : vector<16x1xf32>
      %76 = math.exp %75 : vector<16x1xf32>
      %77 = vector.broadcast %74 : vector<16x1xf32> to vector<16x16xf32>
      %78 = arith.subf %70, %77 : vector<16x16xf32>
      %79 = math.exp %78 : vector<16x16xf32>
      %c0_49 = arith.constant 0 : index
      %c0_50 = arith.constant 0 : index
      %80 = vector.load %arg7[%c0_49, %c0_50] : memref<16x1xf32, #tpu.memory_space<vmem>>, vector<16x1xf32>
      %81 = arith.mulf %76, %80 : vector<16x1xf32>
      %cst_51 = arith.constant dense<0.000000e+00> : vector<16xf32>
      %82 = vector.multi_reduction <add>, %79, %cst_51 [1] : vector<16x16xf32> to vector<16xf32>
      %83 = vector.shape_cast %82 : vector<16xf32> to vector<16x1xf32>
      %84 = arith.addf %81, %83 : vector<16x1xf32>
      %c0_52 = arith.constant 0 : index
      %c0_53 = arith.constant 0 : index
      %85 = vector.load %arg7[%c0_52, %c0_53] : memref<16x1xf32, #tpu.memory_space<vmem>>, vector<16x1xf32>
      tpu.vector_store %arg7[%c0_52, %c0_53], %84 {strides = array<i32>} : memref<16x1xf32, #tpu.memory_space<vmem>>, vector<16x1xf32>,
      %c0_54 = arith.constant 0 : index
      %c0_55 = arith.constant 0 : index
      %86 = vector.load %arg8[%c0_54, %c0_55] : memref<16x128xf32, #tpu.memory_space<vmem>>, vector<16x128xf32>
      %87 = vector.broadcast %76 : vector<16x1xf32> to vector<16x128xf32>
      %88 = arith.mulf %87, %86 : vector<16x128xf32>
      %89 = arith.truncf %79 : vector<16x16xf32> to vector<16x16xbf16>
      %cst_56 = arith.constant dense<0.000000e+00> : vector<16x128xf32>
      %90 = tpu.matmul %89, %69, %cst_56 {dimension_numbers = #tpu.dot_dimension_numbers<[1], [0], [0], [1], [0, 0, 1, 1], [], []>} : vector<16x16xbf16>, vector<16x128xbf16>, vector<16x128xf32> -> vector<16x128xf32>
      %91 = arith.addf %88, %90 : vector<16x128xf32>
      %c0_57 = arith.constant 0 : index
      %c0_58 = arith.constant 0 : index
      %92 = vector.load %arg8[%c0_57, %c0_58] : memref<16x128xf32, #tpu.memory_space<vmem>>, vector<16x128xf32>
      tpu.vector_store %arg8[%c0_57, %c0_58], %91 {strides = array<i32>} : memref<16x128xf32, #tpu.memory_space<vmem>>, vector<16x128xf32>,
      %c0_59 = arith.constant 0 : index
      %c0_60 = arith.constant 0 : index
      %93 = vector.load %arg6[%c0_59, %c0_60] : memref<16x1xf32, #tpu.memory_space<vmem>>, vector<16x1xf32>
      tpu.vector_store %arg6[%c0_59, %c0_60], %74 {strides = array<i32>} : memref<16x1xf32, #tpu.memory_space<vmem>>, vector<16x1xf32>,
    }
    %c16_i32 = arith.constant 16 : i32
    %17 = arith.muli %arg1, %c16_i32 : i32
    %18 = arith.index_cast %17 : i32 to index
    %c0_16 = arith.constant 0 : index
    %19 = vector.load %arg3[%18, %c0_16] : memref<16x128xbf16, #tpu.memory_space<vmem>>, vector<16x128xbf16>
    %20 = arith.index_cast %17 : i32 to index
    %c0_17 = arith.constant 0 : index
    %21 = vector.load %arg4[%20, %c0_17] : memref<16x128xbf16, #tpu.memory_space<vmem>>, vector<16x128xbf16>
    %cst_18 = arith.constant dense<0.000000e+00> : vector<16x16xf32>
    %22 = tpu.matmul %10, %19, %cst_18 {dimension_numbers = #tpu.dot_dimension_numbers<[1], [1], [0], [0], [0, 0, 1, 0], [], []>} : vector<16x128xbf16>, vector<16x128xbf16>, vector<16x16xf32> -> vector<16x16xf32>
    %c16_i32_19 = arith.constant 16 : i32
    %23 = arith.muli %arg1, %c16_i32_19 : i32
    %24 = tpu.iota {dimensions = array<i32: 0>} : vector<16x16xi32>
    %25 = vector.broadcast %23 : i32 to vector<16x16xi32>
    %26 = arith.addi %25, %24 : vector<16x16xi32>
    %27 = tpu.iota {dimensions = array<i32: 1>} : vector<16x16xi32>
    %28 = vector.broadcast %17 : i32 to vector<16x16xi32>
    %29 = arith.addi %28, %27 : vector<16x16xi32>
    %30 = arith.cmpi sle, %29, %26 : vector<16x16xi32>
    %cst_20 = arith.constant 0xFF800000 : f32
    %31 = vector.broadcast %cst_20 : f32 to vector<16x16xf32>
    %32 = arith.select %30, %22, %31 : vector<16x16xi1>, vector<16x16xf32>
    %c0_21 = arith.constant 0 : index
    %c0_22 = arith.constant 0 : index
    %33 = vector.load %arg6[%c0_21, %c0_22] : memref<16x1xf32, #tpu.memory_space<vmem>>, vector<16x1xf32>
    %cst_23 = arith.constant dense<0xFF800000> : vector<16xf32>
    %34 = vector.multi_reduction <maximumf>, %32, %cst_23 [1] : vector<16x16xf32> to vector<16xf32>
    %35 = vector.shape_cast %34 : vector<16xf32> to vector<16x1xf32>
    %36 = arith.maximumf %33, %35 : vector<16x1xf32>
    %37 = arith.subf %33, %36 : vector<16x1xf32>
    %38 = math.exp %37 : vector<16x1xf32>
    %39 = vector.broadcast %36 : vector<16x1xf32> to vector<16x16xf32>
    %40 = arith.subf %32, %39 : vector<16x16xf32>
    %41 = math.exp %40 : vector<16x16xf32>
    %c0_24 = arith.constant 0 : index
    %c0_25 = arith.constant 0 : index
    %42 = vector.load %arg7[%c0_24, %c0_25] : memref<16x1xf32, #tpu.memory_space<vmem>>, vector<16x1xf32>
    %43 = arith.mulf %38, %42 : vector<16x1xf32>
    %cst_26 = arith.constant dense<0.000000e+00> : vector<16xf32>
    %44 = vector.multi_reduction <add>, %41, %cst_26 [1] : vector<16x16xf32> to vector<16xf32>
    %45 = vector.shape_cast %44 : vector<16xf32> to vector<16x1xf32>
    %46 = arith.addf %43, %45 : vector<16x1xf32>
    %c0_27 = arith.constant 0 : index
    %c0_28 = arith.constant 0 : index
    %47 = vector.load %arg7[%c0_27, %c0_28] : memref<16x1xf32, #tpu.memory_space<vmem>>, vector<16x1xf32>
    tpu.vector_store %arg7[%c0_27, %c0_28], %46 {strides = array<i32>} : memref<16x1xf32, #tpu.memory_space<vmem>>, vector<16x1xf32>,
    %c0_29 = arith.constant 0 : index
    %c0_30 = arith.constant 0 : index
    %48 = vector.load %arg8[%c0_29, %c0_30] : memref<16x128xf32, #tpu.memory_space<vmem>>, vector<16x128xf32>
    %49 = vector.broadcast %38 : vector<16x1xf32> to vector<16x128xf32>
    %50 = arith.mulf %49, %48 : vector<16x128xf32>
    %51 = arith.truncf %41 : vector<16x16xf32> to vector<16x16xbf16>
    %cst_31 = arith.constant dense<0.000000e+00> : vector<16x128xf32>
    %52 = tpu.matmul %51, %21, %cst_31 {dimension_numbers = #tpu.dot_dimension_numbers<[1], [0], [0], [1], [0, 0, 1, 1], [], []>} : vector<16x16xbf16>, vector<16x128xbf16>, vector<16x128xf32> -> vector<16x128xf32>
    %53 = arith.addf %50, %52 : vector<16x128xf32>
    %c0_32 = arith.constant 0 : index
    %c0_33 = arith.constant 0 : index
    %54 = vector.load %arg8[%c0_32, %c0_33] : memref<16x128xf32, #tpu.memory_space<vmem>>, vector<16x128xf32>
    tpu.vector_store %arg8[%c0_32, %c0_33], %53 {strides = array<i32>} : memref<16x128xf32, #tpu.memory_space<vmem>>, vector<16x128xf32>,
    %c0_34 = arith.constant 0 : index
    %c0_35 = arith.constant 0 : index
    %55 = vector.load %arg6[%c0_34, %c0_35] : memref<16x1xf32, #tpu.memory_space<vmem>>, vector<16x1xf32>
    tpu.vector_store %arg6[%c0_34, %c0_35], %36 {strides = array<i32>} : memref<16x1xf32, #tpu.memory_space<vmem>>, vector<16x1xf32>,
    %c0_36 = arith.constant 0 : index
    %c0_37 = arith.constant 0 : index
    %56 = vector.load %arg8[%c0_36, %c0_37] : memref<16x128xf32, #tpu.memory_space<vmem>>, vector<16x128xf32>
    %c0_38 = arith.constant 0 : index
    %c0_39 = arith.constant 0 : index
    %57 = vector.load %arg7[%c0_38, %c0_39] : memref<16x1xf32, #tpu.memory_space<vmem>>, vector<16x1xf32>
    %58 = vector.broadcast %57 : vector<16x1xf32> to vector<16x128xf32>
    %59 = arith.divf %56, %58 : vector<16x128xf32>
    %60 = arith.truncf %59 : vector<16x128xf32> to vector<16x128xbf16>
    %c0_40 = arith.constant 0 : index
    %c0_41 = arith.constant 0 : index
    %61 = vector.load %arg5[%c0_40, %c0_41] : memref<16x128xbf16, #tpu.memory_space<vmem>>, vector<16x128xbf16>
    tpu.vector_store %arg5[%c0_40, %c0_41], %60 {strides = array<i32>} : memref<16x128xbf16, #tpu.memory_space<vmem>>, vector<16x128xbf16>,
    return
  }
  func.func @transform_0(%arg0: i32, %arg1: i32) -> (i32, i32) {
    %c0_i32 = arith.constant 0 : i32
    return %arg1, %arg0 : i32, i32
  }
  func.func @transform_1(%arg0: i32, %arg1: i32) -> (i32, i32) {
    %c0_i32 = arith.constant 0 : i32
    %c2_i32 = arith.constant 2 : i32
    %c0_i32_0 = arith.constant 0 : i32
    return %c0_i32, %c2_i32 : i32, i32
  }
  func.func @transform_2(%arg0: i32, %arg1: i32) -> (i32, i32) {
    %c0_i32 = arith.constant 0 : i32
    %c3_i32 = arith.constant 3 : i32
    %c0_i32_0 = arith.constant 0 : i32
    return %c0_i32, %c3_i32 : i32, i32
  }
  func.func @transform_3(%arg0: i32, %arg1: i32) -> (i32, i32) {
    %c0_i32 = arith.constant 0 : i32
    return %arg1, %arg0 : i32, i32
  }
}

module attributes {stable_mosaic.version = 11 : i64} {
  func.func @_linear_kernel(%arg0: i32, %arg1: i32, %arg2: i32, %arg3: memref<16x256xbf16, #tpu.memory_space<vmem>>, %arg4: memref<256x256xbf16, #tpu.memory_space<vmem>>, %arg5: memref<1x256xf32, #tpu.memory_space<vmem>>, %arg6: memref<16x256xbf16, #tpu.memory_space<vmem>>, %arg7: memref<16x256xbf16, #tpu.memory_space<vmem>>, %arg8: memref<16x256xf32, #tpu.memory_space<vmem>>) attributes {dimension_semantics = [#tpu.dimension_semantics<parallel>, #tpu.dimension_semantics<parallel>, #tpu.dimension_semantics<arbitrary>], iteration_bounds = array<i64: 1, 1, 1>, scalar_prefetch = 0 : i64, scratch_operands = 1 : i64, tpu.core_type = #tpu.core_type<tc>, window_params = [{transform_indices = @transform_0, window_bounds = array<i64: 16, 256>}, {transform_indices = @transform_1, window_bounds = array<i64: 256, 256>}, {transform_indices = @transform_2, window_bounds = array<i64: 1, 256>}, {transform_indices = @transform_3, window_bounds = array<i64: 16, 256>}, {transform_indices = @transform_4, window_bounds = array<i64: 16, 256>}]} {
    %c0_i32 = arith.constant 0 : i32
    %0 = arith.cmpi eq, %arg2, %c0_i32 : i32
    %1 = arith.extui %0 : i1 to i32
    %c0_i32_0 = arith.constant 0 : i32
    %2 = arith.cmpi ne, %1, %c0_i32_0 : i32
    scf.if %2 {
      %cst_10 = arith.constant 0.000000e+00 : f32
      %12 = vector.broadcast %cst_10 : f32 to vector<16x256xf32>
      %c0_11 = arith.constant 0 : index
      %c0_12 = arith.constant 0 : index
      %13 = vector.load %arg8[%c0_11, %c0_12] : memref<16x256xf32, #tpu.memory_space<vmem>>, vector<16x256xf32>
      tpu.vector_store %arg8[%c0_11, %c0_12], %12 {strides = array<i32>} : memref<16x256xf32, #tpu.memory_space<vmem>>, vector<16x256xf32>,
    } else {
    }
    %c0 = arith.constant 0 : index
    %c0_1 = arith.constant 0 : index
    %3 = vector.load %arg8[%c0, %c0_1] : memref<16x256xf32, #tpu.memory_space<vmem>>, vector<16x256xf32>
    %c0_2 = arith.constant 0 : index
    %c0_3 = arith.constant 0 : index
    %4 = vector.load %arg3[%c0_2, %c0_3] : memref<16x256xbf16, #tpu.memory_space<vmem>>, vector<16x256xbf16>
    %c0_4 = arith.constant 0 : index
    %c0_5 = arith.constant 0 : index
    %5 = vector.load %arg4[%c0_4, %c0_5] : memref<256x256xbf16, #tpu.memory_space<vmem>>, vector<256x256xbf16>
    %cst = arith.constant dense<0.000000e+00> : vector<16x256xf32>
    %6 = tpu.matmul %4, %5, %cst {dimension_numbers = #tpu.dot_dimension_numbers<[1], [0], [0], [1], [0, 0, 1, 1], [], []>} : vector<16x256xbf16>, vector<256x256xbf16>, vector<16x256xf32> -> vector<16x256xf32>
    %7 = arith.addf %3, %6 : vector<16x256xf32>
    %c0_6 = arith.constant 0 : index
    %c0_7 = arith.constant 0 : index
    %8 = vector.load %arg8[%c0_6, %c0_7] : memref<16x256xf32, #tpu.memory_space<vmem>>, vector<16x256xf32>
    tpu.vector_store %arg8[%c0_6, %c0_7], %7 {strides = array<i32>} : memref<16x256xf32, #tpu.memory_space<vmem>>, vector<16x256xf32>,
    %c0_i32_8 = arith.constant 0 : i32
    %9 = arith.cmpi eq, %arg2, %c0_i32_8 : i32
    %10 = arith.extui %9 : i1 to i32
    %c0_i32_9 = arith.constant 0 : i32
    %11 = arith.cmpi ne, %10, %c0_i32_9 : i32
    scf.if %11 {
      %c0_10 = arith.constant 0 : index
      %c0_11 = arith.constant 0 : index
      %12 = vector.load %arg8[%c0_10, %c0_11] : memref<16x256xf32, #tpu.memory_space<vmem>>, vector<16x256xf32>
      %c0_12 = arith.constant 0 : index
      %c0_13 = arith.constant 0 : index
      %13 = vector.load %arg5[%c0_12, %c0_13] : memref<1x256xf32, #tpu.memory_space<vmem>>, vector<1x256xf32>
      %14 = vector.broadcast %13 : vector<1x256xf32> to vector<16x256xf32>
      %15 = arith.addf %12, %14 : vector<16x256xf32>
      %c0_14 = arith.constant 0 : index
      %c0_15 = arith.constant 0 : index
      %16 = vector.load %arg6[%c0_14, %c0_15] : memref<16x256xbf16, #tpu.memory_space<vmem>>, vector<16x256xbf16>
      %17 = arith.extf %16 : vector<16x256xbf16> to vector<16x256xf32>
      %18 = arith.addf %15, %17 : vector<16x256xf32>
      %19 = arith.truncf %18 : vector<16x256xf32> to vector<16x256xbf16>
      %c0_16 = arith.constant 0 : index
      %c0_17 = arith.constant 0 : index
      %20 = vector.load %arg7[%c0_16, %c0_17] : memref<16x256xbf16, #tpu.memory_space<vmem>>, vector<16x256xbf16>
      tpu.vector_store %arg7[%c0_16, %c0_17], %19 {strides = array<i32>} : memref<16x256xbf16, #tpu.memory_space<vmem>>, vector<16x256xbf16>,
    } else {
    }
    return
  }
  func.func @transform_0(%arg0: i32, %arg1: i32, %arg2: i32) -> (i32, i32) {
    %c0_i32 = arith.constant 0 : i32
    return %arg0, %arg2 : i32, i32
  }
  func.func @transform_1(%arg0: i32, %arg1: i32, %arg2: i32) -> (i32, i32) {
    %c0_i32 = arith.constant 0 : i32
    return %arg2, %arg1 : i32, i32
  }
  func.func @transform_2(%arg0: i32, %arg1: i32, %arg2: i32) -> (i32, i32) {
    %c0_i32 = arith.constant 0 : i32
    %c0_i32_0 = arith.constant 0 : i32
    return %c0_i32, %arg1 : i32, i32
  }
  func.func @transform_3(%arg0: i32, %arg1: i32, %arg2: i32) -> (i32, i32) {
    %c0_i32 = arith.constant 0 : i32
    return %arg0, %arg1 : i32, i32
  }
  func.func @transform_4(%arg0: i32, %arg1: i32, %arg2: i32) -> (i32, i32) {
    %c0_i32 = arith.constant 0 : i32
    return %arg0, %arg1 : i32, i32
  }
}

module attributes {stable_mosaic.version = 11 : i64} {
  func.func @_ln_linear_kernel(%arg0: i32, %arg1: i32, %arg2: memref<16x256xbf16, #tpu.memory_space<vmem>>, %arg3: memref<1x256xf32, #tpu.memory_space<vmem>>, %arg4: memref<1x256xf32, #tpu.memory_space<vmem>>, %arg5: memref<256x512xbf16, #tpu.memory_space<vmem>>, %arg6: memref<1x512xf32, #tpu.memory_space<vmem>>, %arg7: memref<16x512xbf16, #tpu.memory_space<vmem>>, %arg8: memref<16x256xbf16, #tpu.memory_space<vmem>>) attributes {dimension_semantics = [#tpu.dimension_semantics<parallel>, #tpu.dimension_semantics<arbitrary>], iteration_bounds = array<i64: 1, 1>, scalar_prefetch = 0 : i64, scratch_operands = 1 : i64, tpu.core_type = #tpu.core_type<tc>, window_params = [{transform_indices = @transform_0, window_bounds = array<i64: 16, 256>}, {pipeline_mode = #tpu.pipeline_mode<synchronous>, transform_indices = @transform_1, window_bounds = array<i64: 1, 256>}, {pipeline_mode = #tpu.pipeline_mode<synchronous>, transform_indices = @transform_2, window_bounds = array<i64: 1, 256>}, {transform_indices = @transform_3, window_bounds = array<i64: 256, 512>}, {transform_indices = @transform_4, window_bounds = array<i64: 1, 512>}, {transform_indices = @transform_5, window_bounds = array<i64: 16, 512>}]} {
    %c0_i32 = arith.constant 0 : i32
    %0 = arith.cmpi eq, %arg1, %c0_i32 : i32
    %1 = arith.extui %0 : i1 to i32
    %c0_i32_0 = arith.constant 0 : i32
    %2 = arith.cmpi ne, %1, %c0_i32_0 : i32
    scf.if %2 {
      %c0_12 = arith.constant 0 : index
      %c0_13 = arith.constant 0 : index
      %24 = vector.load %arg2[%c0_12, %c0_13] : memref<16x256xbf16, #tpu.memory_space<vmem>>, vector<16x256xbf16>
      %25 = arith.extf %24 : vector<16x256xbf16> to vector<16x256xf32>
      %cst_14 = arith.constant dense<0.000000e+00> : vector<16xf32>
      %26 = vector.multi_reduction <add>, %25, %cst_14 [1] : vector<16x256xf32> to vector<16xf32>
      %27 = vector.shape_cast %26 : vector<16xf32> to vector<16x1xf32>
      %cst_15 = arith.constant 2.560000e+02 : f32
      %28 = vector.broadcast %cst_15 : f32 to vector<16x1xf32>
      %29 = arith.divf %27, %28 : vector<16x1xf32>
      %30 = vector.broadcast %29 : vector<16x1xf32> to vector<16x256xf32>
      %31 = arith.subf %25, %30 : vector<16x256xf32>
      %32 = arith.mulf %31, %31 : vector<16x256xf32>
      %cst_16 = arith.constant dense<0.000000e+00> : vector<16xf32>
      %33 = vector.multi_reduction <add>, %32, %cst_16 [1] : vector<16x256xf32> to vector<16xf32>
      %34 = vector.shape_cast %33 : vector<16xf32> to vector<16x1xf32>
      %cst_17 = arith.constant 2.560000e+02 : f32
      %35 = vector.broadcast %cst_17 : f32 to vector<16x1xf32>
      %36 = arith.divf %34, %35 : vector<16x1xf32>
      %cst_18 = arith.constant 9.99999974E-6 : f32
      %37 = vector.broadcast %cst_18 : f32 to vector<16x1xf32>
      %38 = arith.addf %36, %37 : vector<16x1xf32>
      %39 = math.rsqrt %38 : vector<16x1xf32>
      %40 = vector.broadcast %39 : vector<16x1xf32> to vector<16x256xf32>
      %41 = arith.mulf %31, %40 : vector<16x256xf32>
      %c0_19 = arith.constant 0 : index
      %c0_20 = arith.constant 0 : index
      %42 = vector.load %arg3[%c0_19, %c0_20] : memref<1x256xf32, #tpu.memory_space<vmem>>, vector<1x256xf32>
      %43 = vector.broadcast %42 : vector<1x256xf32> to vector<16x256xf32>
      %44 = arith.mulf %41, %43 : vector<16x256xf32>
      %c0_21 = arith.constant 0 : index
      %c0_22 = arith.constant 0 : index
      %45 = vector.load %arg4[%c0_21, %c0_22] : memref<1x256xf32, #tpu.memory_space<vmem>>, vector<1x256xf32>
      %46 = vector.broadcast %45 : vector<1x256xf32> to vector<16x256xf32>
      %47 = arith.addf %44, %46 : vector<16x256xf32>
      %48 = arith.truncf %47 : vector<16x256xf32> to vector<16x256xbf16>
      %c0_23 = arith.constant 0 : index
      %c0_24 = arith.constant 0 : index
      %49 = vector.load %arg8[%c0_23, %c0_24] : memref<16x256xbf16, #tpu.memory_space<vmem>>, vector<16x256xbf16>
      tpu.vector_store %arg8[%c0_23, %c0_24], %48 {strides = array<i32>} : memref<16x256xbf16, #tpu.memory_space<vmem>>, vector<16x256xbf16>,
    } else {
    }
    %c0 = arith.constant 0 : index
    %c0_1 = arith.constant 0 : index
    %3 = vector.load %arg8[%c0, %c0_1] : memref<16x256xbf16, #tpu.memory_space<vmem>>, vector<16x256xbf16>
    %c0_2 = arith.constant 0 : index
    %c0_3 = arith.constant 0 : index
    %4 = vector.load %arg5[%c0_2, %c0_3] : memref<256x512xbf16, #tpu.memory_space<vmem>>, vector<256x512xbf16>
    %cst = arith.constant dense<0.000000e+00> : vector<16x512xf32>
    %5 = tpu.matmul %3, %4, %cst {dimension_numbers = #tpu.dot_dimension_numbers<[1], [0], [0], [1], [0, 0, 1, 1], [], []>} : vector<16x256xbf16>, vector<256x512xbf16>, vector<16x512xf32> -> vector<16x512xf32>
    %c0_4 = arith.constant 0 : index
    %c0_5 = arith.constant 0 : index
    %6 = vector.load %arg6[%c0_4, %c0_5] : memref<1x512xf32, #tpu.memory_space<vmem>>, vector<1x512xf32>
    %7 = vector.broadcast %6 : vector<1x512xf32> to vector<16x512xf32>
    %8 = arith.addf %5, %7 : vector<16x512xf32>
    %cst_6 = arith.constant 5.000000e-01 : f32
    %9 = vector.broadcast %cst_6 : f32 to vector<16x512xf32>
    %10 = arith.mulf %9, %8 : vector<16x512xf32>
    %cst_7 = arith.constant 4.471500e-02 : f32
    %11 = vector.broadcast %cst_7 : f32 to vector<16x512xf32>
    %12 = arith.mulf %11, %8 : vector<16x512xf32>
    %13 = arith.mulf %12, %8 : vector<16x512xf32>
    %14 = arith.mulf %13, %8 : vector<16x512xf32>
    %15 = arith.addf %8, %14 : vector<16x512xf32>
    %cst_8 = arith.constant 0.797884583 : f32
    %16 = vector.broadcast %cst_8 : f32 to vector<16x512xf32>
    %17 = arith.mulf %16, %15 : vector<16x512xf32>
    %18 = math.tanh %17 : vector<16x512xf32>
    %cst_9 = arith.constant 1.000000e+00 : f32
    %19 = vector.broadcast %cst_9 : f32 to vector<16x512xf32>
    %20 = arith.addf %19, %18 : vector<16x512xf32>
    %21 = arith.mulf %10, %20 : vector<16x512xf32>
    %22 = arith.truncf %21 : vector<16x512xf32> to vector<16x512xbf16>
    %c0_10 = arith.constant 0 : index
    %c0_11 = arith.constant 0 : index
    %23 = vector.load %arg7[%c0_10, %c0_11] : memref<16x512xbf16, #tpu.memory_space<vmem>>, vector<16x512xbf16>
    tpu.vector_store %arg7[%c0_10, %c0_11], %22 {strides = array<i32>} : memref<16x512xbf16, #tpu.memory_space<vmem>>, vector<16x512xbf16>,
    return
  }
  func.func @transform_0(%arg0: i32, %arg1: i32) -> (i32, i32) {
    %c0_i32 = arith.constant 0 : i32
    %c0_i32_0 = arith.constant 0 : i32
    return %arg0, %c0_i32 : i32, i32
  }
  func.func @transform_1(%arg0: i32, %arg1: i32) -> (i32, i32) {
    %c0_i32 = arith.constant 0 : i32
    %c0_i32_0 = arith.constant 0 : i32
    %c0_i32_1 = arith.constant 0 : i32
    return %c0_i32, %c0_i32_0 : i32, i32
  }
  func.func @transform_2(%arg0: i32, %arg1: i32) -> (i32, i32) {
    %c0_i32 = arith.constant 0 : i32
    %c0_i32_0 = arith.constant 0 : i32
    %c0_i32_1 = arith.constant 0 : i32
    return %c0_i32, %c0_i32_0 : i32, i32
  }
  func.func @transform_3(%arg0: i32, %arg1: i32) -> (i32, i32) {
    %c0_i32 = arith.constant 0 : i32
    %c0_i32_0 = arith.constant 0 : i32
    return %c0_i32, %arg1 : i32, i32
  }
  func.func @transform_4(%arg0: i32, %arg1: i32) -> (i32, i32) {
    %c0_i32 = arith.constant 0 : i32
    %c0_i32_0 = arith.constant 0 : i32
    return %c0_i32, %arg1 : i32, i32
  }
  func.func @transform_5(%arg0: i32, %arg1: i32) -> (i32, i32) {
    %c0_i32 = arith.constant 0 : i32
    return %arg0, %arg1 : i32, i32
  }
}

module attributes {stable_mosaic.version = 11 : i64} {
  func.func @_linear_kernel(%arg0: i32, %arg1: i32, %arg2: i32, %arg3: memref<16x512xbf16, #tpu.memory_space<vmem>>, %arg4: memref<512x256xbf16, #tpu.memory_space<vmem>>, %arg5: memref<1x256xf32, #tpu.memory_space<vmem>>, %arg6: memref<16x256xbf16, #tpu.memory_space<vmem>>, %arg7: memref<16x256xbf16, #tpu.memory_space<vmem>>, %arg8: memref<16x256xf32, #tpu.memory_space<vmem>>) attributes {dimension_semantics = [#tpu.dimension_semantics<parallel>, #tpu.dimension_semantics<parallel>, #tpu.dimension_semantics<arbitrary>], iteration_bounds = array<i64: 1, 1, 1>, scalar_prefetch = 0 : i64, scratch_operands = 1 : i64, tpu.core_type = #tpu.core_type<tc>, window_params = [{transform_indices = @transform_0, window_bounds = array<i64: 16, 512>}, {transform_indices = @transform_1, window_bounds = array<i64: 512, 256>}, {transform_indices = @transform_2, window_bounds = array<i64: 1, 256>}, {transform_indices = @transform_3, window_bounds = array<i64: 16, 256>}, {transform_indices = @transform_4, window_bounds = array<i64: 16, 256>}]} {
    %c0_i32 = arith.constant 0 : i32
    %0 = arith.cmpi eq, %arg2, %c0_i32 : i32
    %1 = arith.extui %0 : i1 to i32
    %c0_i32_0 = arith.constant 0 : i32
    %2 = arith.cmpi ne, %1, %c0_i32_0 : i32
    scf.if %2 {
      %cst_10 = arith.constant 0.000000e+00 : f32
      %12 = vector.broadcast %cst_10 : f32 to vector<16x256xf32>
      %c0_11 = arith.constant 0 : index
      %c0_12 = arith.constant 0 : index
      %13 = vector.load %arg8[%c0_11, %c0_12] : memref<16x256xf32, #tpu.memory_space<vmem>>, vector<16x256xf32>
      tpu.vector_store %arg8[%c0_11, %c0_12], %12 {strides = array<i32>} : memref<16x256xf32, #tpu.memory_space<vmem>>, vector<16x256xf32>,
    } else {
    }
    %c0 = arith.constant 0 : index
    %c0_1 = arith.constant 0 : index
    %3 = vector.load %arg8[%c0, %c0_1] : memref<16x256xf32, #tpu.memory_space<vmem>>, vector<16x256xf32>
    %c0_2 = arith.constant 0 : index
    %c0_3 = arith.constant 0 : index
    %4 = vector.load %arg3[%c0_2, %c0_3] : memref<16x512xbf16, #tpu.memory_space<vmem>>, vector<16x512xbf16>
    %c0_4 = arith.constant 0 : index
    %c0_5 = arith.constant 0 : index
    %5 = vector.load %arg4[%c0_4, %c0_5] : memref<512x256xbf16, #tpu.memory_space<vmem>>, vector<512x256xbf16>
    %cst = arith.constant dense<0.000000e+00> : vector<16x256xf32>
    %6 = tpu.matmul %4, %5, %cst {dimension_numbers = #tpu.dot_dimension_numbers<[1], [0], [0], [1], [0, 0, 1, 1], [], []>} : vector<16x512xbf16>, vector<512x256xbf16>, vector<16x256xf32> -> vector<16x256xf32>
    %7 = arith.addf %3, %6 : vector<16x256xf32>
    %c0_6 = arith.constant 0 : index
    %c0_7 = arith.constant 0 : index
    %8 = vector.load %arg8[%c0_6, %c0_7] : memref<16x256xf32, #tpu.memory_space<vmem>>, vector<16x256xf32>
    tpu.vector_store %arg8[%c0_6, %c0_7], %7 {strides = array<i32>} : memref<16x256xf32, #tpu.memory_space<vmem>>, vector<16x256xf32>,
    %c0_i32_8 = arith.constant 0 : i32
    %9 = arith.cmpi eq, %arg2, %c0_i32_8 : i32
    %10 = arith.extui %9 : i1 to i32
    %c0_i32_9 = arith.constant 0 : i32
    %11 = arith.cmpi ne, %10, %c0_i32_9 : i32
    scf.if %11 {
      %c0_10 = arith.constant 0 : index
      %c0_11 = arith.constant 0 : index
      %12 = vector.load %arg8[%c0_10, %c0_11] : memref<16x256xf32, #tpu.memory_space<vmem>>, vector<16x256xf32>
      %c0_12 = arith.constant 0 : index
      %c0_13 = arith.constant 0 : index
      %13 = vector.load %arg5[%c0_12, %c0_13] : memref<1x256xf32, #tpu.memory_space<vmem>>, vector<1x256xf32>
      %14 = vector.broadcast %13 : vector<1x256xf32> to vector<16x256xf32>
      %15 = arith.addf %12, %14 : vector<16x256xf32>
      %c0_14 = arith.constant 0 : index
      %c0_15 = arith.constant 0 : index
      %16 = vector.load %arg6[%c0_14, %c0_15] : memref<16x256xbf16, #tpu.memory_space<vmem>>, vector<16x256xbf16>
      %17 = arith.extf %16 : vector<16x256xbf16> to vector<16x256xf32>
      %18 = arith.addf %15, %17 : vector<16x256xf32>
      %19 = arith.truncf %18 : vector<16x256xf32> to vector<16x256xbf16>
      %c0_16 = arith.constant 0 : index
      %c0_17 = arith.constant 0 : index
      %20 = vector.load %arg7[%c0_16, %c0_17] : memref<16x256xbf16, #tpu.memory_space<vmem>>, vector<16x256xbf16>
      tpu.vector_store %arg7[%c0_16, %c0_17], %19 {strides = array<i32>} : memref<16x256xbf16, #tpu.memory_space<vmem>>, vector<16x256xbf16>,
    } else {
    }
    return
  }
  func.func @transform_0(%arg0: i32, %arg1: i32, %arg2: i32) -> (i32, i32) {
    %c0_i32 = arith.constant 0 : i32
    return %arg0, %arg2 : i32, i32
  }
  func.func @transform_1(%arg0: i32, %arg1: i32, %arg2: i32) -> (i32, i32) {
    %c0_i32 = arith.constant 0 : i32
    return %arg2, %arg1 : i32, i32
  }
  func.func @transform_2(%arg0: i32, %arg1: i32, %arg2: i32) -> (i32, i32) {
    %c0_i32 = arith.constant 0 : i32
    %c0_i32_0 = arith.constant 0 : i32
    return %c0_i32, %arg1 : i32, i32
  }
  func.func @transform_3(%arg0: i32, %arg1: i32, %arg2: i32) -> (i32, i32) {
    %c0_i32 = arith.constant 0 : i32
    return %arg0, %arg1 : i32, i32
  }
  func.func @transform_4(%arg0: i32, %arg1: i32, %arg2: i32) -> (i32, i32) {
    %c0_i32 = arith.constant 0 : i32
    return %arg0, %arg1 : i32, i32
  }
}

module attributes {stable_mosaic.version = 11 : i64} {
  func.func @_lm_head_kernel(%arg0: i32, %arg1: memref<1x256xbf16, #tpu.memory_space<vmem>>, %arg2: memref<1x256xf32, #tpu.memory_space<vmem>>, %arg3: memref<1x256xf32, #tpu.memory_space<vmem>>, %arg4: memref<128x256xbf16, #tpu.memory_space<vmem>>, %arg5: memref<1x128xf32, #tpu.memory_space<vmem>>) attributes {dimension_semantics = [#tpu.dimension_semantics<parallel>], iteration_bounds = array<i64: 1>, scalar_prefetch = 0 : i64, scratch_operands = 0 : i64, tpu.core_type = #tpu.core_type<tc>, window_params = [{pipeline_mode = #tpu.pipeline_mode<synchronous>, transform_indices = @transform_0, window_bounds = array<i64: 1, 256>}, {pipeline_mode = #tpu.pipeline_mode<synchronous>, transform_indices = @transform_1, window_bounds = array<i64: 1, 256>}, {pipeline_mode = #tpu.pipeline_mode<synchronous>, transform_indices = @transform_2, window_bounds = array<i64: 1, 256>}, {transform_indices = @transform_3, window_bounds = array<i64: 128, 256>}, {transform_indices = @transform_4, window_bounds = array<i64: 1, 128>}]} {
    %c0 = arith.constant 0 : index
    %c0_0 = arith.constant 0 : index
    %0 = vector.load %arg1[%c0, %c0_0] : memref<1x256xbf16, #tpu.memory_space<vmem>>, vector<1x256xbf16>
    %1 = arith.extf %0 : vector<1x256xbf16> to vector<1x256xf32>
    %cst = arith.constant dense<0.000000e+00> : vector<1xf32>
    %2 = vector.multi_reduction <add>, %1, %cst [1] : vector<1x256xf32> to vector<1xf32>
    %3 = vector.shape_cast %2 : vector<1xf32> to vector<1x1xf32>
    %cst_1 = arith.constant 2.560000e+02 : f32
    %4 = vector.broadcast %cst_1 : f32 to vector<1x1xf32>
    %5 = arith.divf %3, %4 : vector<1x1xf32>
    %6 = vector.broadcast %5 : vector<1x1xf32> to vector<1x256xf32>
    %7 = arith.subf %1, %6 : vector<1x256xf32>
    %8 = arith.mulf %7, %7 : vector<1x256xf32>
    %cst_2 = arith.constant dense<0.000000e+00> : vector<1xf32>
    %9 = vector.multi_reduction <add>, %8, %cst_2 [1] : vector<1x256xf32> to vector<1xf32>
    %10 = vector.shape_cast %9 : vector<1xf32> to vector<1x1xf32>
    %cst_3 = arith.constant 2.560000e+02 : f32
    %11 = vector.broadcast %cst_3 : f32 to vector<1x1xf32>
    %12 = arith.divf %10, %11 : vector<1x1xf32>
    %cst_4 = arith.constant 9.99999974E-6 : f32
    %13 = vector.broadcast %cst_4 : f32 to vector<1x1xf32>
    %14 = arith.addf %12, %13 : vector<1x1xf32>
    %15 = math.rsqrt %14 : vector<1x1xf32>
    %16 = vector.broadcast %15 : vector<1x1xf32> to vector<1x256xf32>
    %17 = arith.mulf %7, %16 : vector<1x256xf32>
    %c0_5 = arith.constant 0 : index
    %c0_6 = arith.constant 0 : index
    %18 = vector.load %arg2[%c0_5, %c0_6] : memref<1x256xf32, #tpu.memory_space<vmem>>, vector<1x256xf32>
    %19 = arith.mulf %17, %18 : vector<1x256xf32>
    %c0_7 = arith.constant 0 : index
    %c0_8 = arith.constant 0 : index
    %20 = vector.load %arg3[%c0_7, %c0_8] : memref<1x256xf32, #tpu.memory_space<vmem>>, vector<1x256xf32>
    %21 = arith.addf %19, %20 : vector<1x256xf32>
    %22 = arith.truncf %21 : vector<1x256xf32> to vector<1x256xbf16>
    %c0_9 = arith.constant 0 : index
    %c0_10 = arith.constant 0 : index
    %23 = vector.load %arg4[%c0_9, %c0_10] : memref<128x256xbf16, #tpu.memory_space<vmem>>, vector<128x256xbf16>
    %cst_11 = arith.constant dense<0.000000e+00> : vector<1x128xf32>
    %24 = tpu.matmul %22, %23, %cst_11 {dimension_numbers = #tpu.dot_dimension_numbers<[1], [1], [0], [0], [0, 0, 1, 0], [], []>} : vector<1x256xbf16>, vector<128x256xbf16>, vector<1x128xf32> -> vector<1x128xf32>
    %c0_12 = arith.constant 0 : index
    %c0_13 = arith.constant 0 : index
    %25 = vector.load %arg5[%c0_12, %c0_13] : memref<1x128xf32, #tpu.memory_space<vmem>>, vector<1x128xf32>
    tpu.vector_store %arg5[%c0_12, %c0_13], %24 {strides = array<i32>} : memref<1x128xf32, #tpu.memory_space<vmem>>, vector<1x128xf32>,
    return
  }
  func.func @transform_0(%arg0: i32) -> (i32, i32) {
    %c0_i32 = arith.constant 0 : i32
    %c0_i32_0 = arith.constant 0 : i32
    %c0_i32_1 = arith.constant 0 : i32
    return %c0_i32, %c0_i32_0 : i32, i32
  }
  func.func @transform_1(%arg0: i32) -> (i32, i32) {
    %c0_i32 = arith.constant 0 : i32
    %c0_i32_0 = arith.constant 0 : i32
    %c0_i32_1 = arith.constant 0 : i32
    return %c0_i32, %c0_i32_0 : i32, i32
  }
  func.func @transform_2(%arg0: i32) -> (i32, i32) {
    %c0_i32 = arith.constant 0 : i32
    %c0_i32_0 = arith.constant 0 : i32
    %c0_i32_1 = arith.constant 0 : i32
    return %c0_i32, %c0_i32_0 : i32, i32
  }
  func.func @transform_3(%arg0: i32) -> (i32, i32) {
    %c0_i32 = arith.constant 0 : i32
    %c0_i32_0 = arith.constant 0 : i32
    return %arg0, %c0_i32 : i32, i32
  }
  func.func @transform_4(%arg0: i32) -> (i32, i32) {
    %c0_i32 = arith.constant 0 : i32
    %c0_i32_0 = arith.constant 0 : i32
    return %c0_i32, %arg0 : i32, i32
  }
}

</mosaic_0001>

<bundles_post_ra>
// kernel: gpt_bigcode_forward.11
= control target key start
LH: loop header
LB: loop body
LE: loop exit
PB: predicated region body
PF: predicated region fallthrough
CT: control target
= control target key end

     0   :  { %10 = vsyncpa [#allocation4], 0  ;;  %s1194_s0 = inlined_call_operand.hbm [shape: bf16[16,256], index: 0, kind: input, shape index: {}]   ;;  %s1195_s1 = inlined_call_operand.hbm [shape: f32[1,256], index: 1, kind: input, shape index: {}]   ;;  %s1196_s2 = inlined_call_operand.hbm [shape: f32[1,256], index: 2, kind: input, shape index: {}]   ;;  %s1197_s3 = inlined_call_operand.hbm [shape: bf16[256,512], index: 3, kind: input, shape index: {}]   ;;  %s1198_s4 = inlined_call_operand.hbm [shape: f32[1,512], index: 4, kind: input, shape index: {}]   ;;  %s1199_s5 = inlined_call_operand.hbm [shape: bf16[16,512], index: 5, kind: output, shape index: {}]  }
   0x1   :  { %11 = vsyncpa [#allocation7], 0 }
   0x2   :  { %12 = vsyncpa [#allocation10], 0 }
   0x3   :  { %13 = vsyncpa [#allocation5], 0  ;;  %s1025_s18 = smov [#allocation6]   ;;  %s1026_s20 = smov [#allocation9]  }
   0x4   :  { %s32_s19 = sshll.u32 %s1025_s18, 4  ;;  %s51_s21 = sshll.u32 %s1026_s20, 4  ;;  %s33_s19 = int_to_ptr.vmem [resolvable:$true] %s32_s19  ;;  %s1065_s21 = int_to_ptr.vmem [resolvable:$true] %s51_s21 }
   0x5   :  { %s885_s24 = scalar_lea.hbm %s1195_s1, 32 }
   0x6   :  { %p886_p0 = scmp.ne.s32.totalorder %s1195_s1, %s885_s24  ;;  %p889_p1 = scmp.lt.u32.totalorder %s885_s24, %s1195_s1 }
   0x8   :  { %p891_p2 = pnand %p889_p1, %p886_p0 }
   0xa   :  { %894 = shalt.err (!%p891_p2)
}
   0xb   :  { %s895_s29 = scalar_lea.vmem %s33_s19, 32  ;;  %p900_p4 = scmp.lt.s32.totalorder %s33_s19, %s33_s19 }
   0xc   :  { %p896_p3 = scmp.ne.s32.totalorder %s33_s19, %s895_s29  ;;  %p901_p5 = scmp.lt.s32.totalorder %s895_s29, %s895_s29 }
   0xe   :  { %p902_p6 = por %p901_p5, %p900_p4 }
  0x10   :  { %p903_p7 = pnand %p902_p6, %p896_p3 }
  0x12   :  { %906 = shalt.err (!%p903_p7)
}
  0x13   :  { %35 = dma.hbm_to_vmem [thread:$0]  %s1195_s1, 32, %s33_s19, [#allocation7]  }
  0x14   :  { %s907_s9 = scalar_lea.hbm %s1197_s3, 8192 }
  0x15   :  { %p908_p8 = scmp.ne.s32.totalorder %s1197_s3, %s907_s9  ;;  %p911_p9 = scmp.lt.u32.totalorder %s907_s9, %s1197_s3 }
  0x17   :  { %p913_p10 = pnand %p911_p9, %p908_p8 }
  0x19   :  { %916 = shalt.err (!%p913_p10)
}
  0x1a   :  { %s917_s14 = scalar_lea.vmem %s1065_s21, 8192  ;;  %p922_p12 = scmp.lt.s32.totalorder %s1065_s21, %s1065_s21 }
  0x1b   :  { %p918_p11 = scmp.ne.s32.totalorder %s1065_s21, %s917_s14  ;;  %p923_p13 = scmp.lt.s32.totalorder %s917_s14, %s917_s14 }
  0x1d   :  { %p924_p0 = por %p923_p13, %p922_p12 }
  0x1f   :  { %p925_p1 = pnand %p924_p0, %p918_p11 }
  0x21   :  { %928 = shalt.err (!%p925_p1)
}
  0x22   :  { %s1027_s1 = smov 256   ;;  %s1028_s15 = smov 16  }
  0x23   :  { %57 = dma.hbm_to_vmem [thread:$0]  %s1197_s3, 8192, %s1065_s21, [#allocation10], %s1027_s1, %s1027_s1, %s1028_s15  }
  0x24   :  { %s1029_s18 = smov [#allocation3]   ;;  %s929_s23 = scalar_lea.hbm %s1194_s0, 256 }
  0x25   :  { %s19_s19 = sshll.u32 %s1029_s18, 4  ;;  %p930_p2 = scmp.ne.s32.totalorder %s1194_s0, %s929_s23  ;;  %s20_s19 = int_to_ptr.vmem [resolvable:$true] %s19_s19 }
  0x26   :  { %p933_p3 = scmp.lt.u32.totalorder %s929_s23, %s1194_s0 }
  0x28   :  { %p935_p4 = pnand %p933_p3, %p930_p2 }
  0x2a   :  { %938 = shalt.err (!%p935_p4)
}
  0x2b   :  { %s939_s28 = scalar_lea.vmem %s20_s19, 256  ;;  %p944_p6 = scmp.lt.s32.totalorder %s20_s19, %s20_s19 }
  0x2c   :  { %p940_p5 = scmp.ne.s32.totalorder %s20_s19, %s939_s28  ;;  %p945_p7 = scmp.lt.s32.totalorder %s939_s28, %s939_s28 }
  0x2e   :  { %p946_p8 = por %p945_p7, %p944_p6 }
  0x30   :  { %p947_p9 = pnand %p946_p8, %p940_p5 }
  0x32   :  { %950 = shalt.err (!%p947_p9)
}
  0x33   :  { %s1030_s3 = smov 128   ;;  %s1031_s21 = smov 8  }
  0x34   :  { %25 = dma.hbm_to_vmem [thread:$0]  %s1194_s0, 256, %s20_s19, [#allocation4], %s1030_s3, %s1030_s3, %s1031_s21  }
  0x35   :  { %s1032_s6 = smov [#allocation8]   ;;  %s1033_s8 = smov [#allocation11]  }
  0x36   :  { %s42_s7 = sshll.u32 %s1032_s6, 4  ;;  %s64_s9 = sshll.u32 %s1033_s8, 4  ;;  %s43_s7 = int_to_ptr.vmem [resolvable:$true] %s42_s7  ;;  %s65_s9 = int_to_ptr.vmem [resolvable:$true] %s64_s9 }
  0x37   :  { %s951_s12 = scalar_lea.hbm %s1196_s2, 32 }
  0x38   :  { %p952_p10 = scmp.ne.s32.totalorder %s1196_s2, %s951_s12  ;;  %p955_p11 = scmp.lt.u32.totalorder %s951_s12, %s1196_s2 }
  0x3a   :  { %p957_p12 = pnand %p955_p11, %p952_p10 }
  0x3c   :  { %960 = shalt.err (!%p957_p12)
}
  0x3d   :  { %s961_s0 = scalar_lea.vmem %s43_s7, 32  ;;  %p966_p0 = scmp.lt.s32.totalorder %s43_s7, %s43_s7 }
  0x3e   :  { %p962_p13 = scmp.ne.s32.totalorder %s43_s7, %s961_s0  ;;  %p967_p1 = scmp.lt.s32.totalorder %s961_s0, %s961_s0 }
  0x40   :  { %p968_p2 = por %p967_p1, %p966_p0 }
  0x42   :  { %p969_p3 = pnand %p968_p2, %p962_p13 }
  0x44   :  { %972 = shalt.err (!%p969_p3)
}
  0x45   :  { %45 = dma.hbm_to_vmem [thread:$0]  %s1196_s2, 32, %s43_s7, [#allocation7]  }
  0x46   :  { %s973_s23 = scalar_lea.hbm %s1198_s4, 64 }
  0x47   :  { %p974_p4 = scmp.ne.s32.totalorder %s1198_s4, %s973_s23  ;;  %p977_p5 = scmp.lt.u32.totalorder %s973_s23, %s1198_s4 }
  0x49   :  { %p979_p6 = pnand %p977_p5, %p974_p4 }
  0x4b   :  { %982 = shalt.err (!%p979_p6)
}
  0x4c   :  { %s983_s28 = scalar_lea.vmem %s65_s9, 64  ;;  %p988_p8 = scmp.lt.s32.totalorder %s65_s9, %s65_s9 }
  0x4d   :  { %p984_p7 = scmp.ne.s32.totalorder %s65_s9, %s983_s28  ;;  %p989_p9 = scmp.lt.s32.totalorder %s983_s28, %s983_s28 }
  0x4f   :  { %p990_p10 = por %p989_p9, %p988_p8 }
  0x51   :  { %p991_p11 = pnand %p990_p10, %p984_p7 }
  0x53   :  { %994 = shalt.err (!%p991_p11)
}
  0x54   :  { %67 = dma.hbm_to_vmem [thread:$0]  %s1198_s4, 64, %s65_s9, [#allocation10]  }
  0x55   :  { %1017 = dma.done.wait [#allocation4], 256  }
  0x56   :  { %1018 = vsyncadd [#allocation4], 4294967040 }
  0x57   :  { %1019 = dma.done.wait [#allocation7], 64  }
  0x58   :  { %1020 = vsyncadd [#allocation7], 4294967232 }
  0x59   :  { %1021 = dma.done.wait [#allocation10], 8256  }
  0x5a   :  { %1022 = vsyncadd [#allocation10], 4294959040  ;;  %v1135_v0 = vld [vmem:[#allocation3] sm:$0xff]  ;;  %v1137_v1 = vld [vmem:[#allocation3 + $0x8] sm:$0xff]  ;;  %s1034_s4 = smov [#allocation12]  }
  0x5b   :  { %v89_v2 = vunpack.c.l.bf16 %v1135_v0  ;;  %v90_v3 = vunpack.c.h.bf16 %v1135_v0  ;;  %v91_v4 = vunpack.c.l.bf16 %v1137_v1  ;;  %v92_v5 = vunpack.c.h.bf16 %v1137_v1  ;;  %v785_v8 = vld [vmem:[#allocation9 + $0x4] ss:$16 sps:$4 sm:$0xff]   ;;  %v787_v9 = vld [vmem:[#allocation9 + $0xc] ss:$16 sps:$4 sm:$0xff]   ;;  %v789_v10 = vld [vmem:[#allocation9] ss:$16 sps:$4 sm:$0xff]  }
  0x5c   :  { %v790_v11 = vld [vmem:[#allocation9 + $0x8] ss:$16 sps:$4 sm:$0xff]   ;;  %v791_v12 = vld [vmem:[#allocation9 + $0x24] ss:$16 sps:$4 sm:$0xff]   ;;  %v793_v13 = vld [vmem:[#allocation9 + $0x2c] ss:$16 sps:$4 sm:$0xff]   ;;  %570 = vmatprep.subr.bf16.mxu0 %v785_v8  ;;  %613 = vmatprep.subr.bf16.mxu1 %v787_v9 }
  0x5d   :  { %v93_v6 = vadd.f32 %v90_v3, %v89_v2  ;;  %v96_v7 = vadd.f32 %v92_v5, %v91_v4  ;;  %571 = vmatpush1.bf16.msra.mxu0 %v789_v10  ;;  %614 = vmatpush1.bf16.msra.mxu1 %v790_v11  ;;  %v795_v14 = vld [vmem:[#allocation9 + $0x20] ss:$16 sps:$4 sm:$0xff]   ;;  %v796_v15 = vld [vmem:[#allocation9 + $0x28] ss:$16 sps:$4 sm:$0xff]   ;;  %v797_v16 = vld [vmem:[#allocation9 + $0x44] ss:$16 sps:$4 sm:$0xff]  }
  0x5e   :  { %572 = vmatprep.subr.bf16.mxu0 %v791_v12  ;;  %615 = vmatprep.subr.bf16.mxu1 %v793_v13  ;;  %v799_v17 = vld [vmem:[#allocation9 + $0x4c] ss:$16 sps:$4 sm:$0xff]   ;;  %v801_v18 = vld [vmem:[#allocation9 + $0x40] ss:$16 sps:$4 sm:$0xff]   ;;  %v802_v19 = vld [vmem:[#allocation9 + $0x48] ss:$16 sps:$4 sm:$0xff]  }
  0x5f   :  { %94 = vadd.xlane.f32.xlu0 %v93_v6  ;;  %v803_v20 = vld [vmem:[#allocation9 + $0x64] ss:$16 sps:$4 sm:$0xff]   ;;  %v805_v21 = vld [vmem:[#allocation9 + $0x6c] ss:$16 sps:$4 sm:$0xff]   ;;  %v807_v22 = vld [vmem:[#allocation9 + $0x60] ss:$16 sps:$4 sm:$0xff]  }
  0x60   :  { %v808_v23 = vld [vmem:[#allocation9 + $0x68] ss:$16 sps:$4 sm:$0xff]   ;;  %v809_v24 = vld [vmem:[#allocation9 + $0x84] ss:$16 sps:$4 sm:$0xff]   ;;  %v811_v25 = vld [vmem:[#allocation9 + $0x8c] ss:$16 sps:$4 sm:$0xff]  }
  0x61   :  { %573 = vmatpush1.bf16.msra.mxu0 %v795_v14  ;;  %616 = vmatpush1.bf16.msra.mxu1 %v796_v15  ;;  %v813_v26 = vld [vmem:[#allocation9 + $0x80] ss:$16 sps:$4 sm:$0xff]   ;;  %v814_v27 = vld [vmem:[#allocation9 + $0x88] ss:$16 sps:$4 sm:$0xff]   ;;  %v815_v28 = vld [vmem:[#allocation9 + $0xa4] ss:$16 sps:$4 sm:$0xff]  }
  0x62   :  { %574 = vmatprep.subr.bf16.mxu0 %v797_v16  ;;  %617 = vmatprep.subr.bf16.mxu1 %v799_v17  ;;  %v817_v29 = vld [vmem:[#allocation9 + $0xac] ss:$16 sps:$4 sm:$0xff]   ;;  %v819_v30 = vld [vmem:[#allocation9 + $0xa0] ss:$16 sps:$4 sm:$0xff]   ;;  %v820_v31 = vld [vmem:[#allocation9 + $0xa8] ss:$16 sps:$4 sm:$0xff]  }
  0x63   :  { %97 = vadd.xlane.f32.xlu0 %v96_v7  ;;  %v821_v32 = vld [vmem:[#allocation9 + $0xc4] ss:$16 sps:$4 sm:$0xff]   ;;  %v823_v33 = vld [vmem:[#allocation9 + $0xcc] ss:$16 sps:$4 sm:$0xff]   ;;  %v825_v34 = vld [vmem:[#allocation9 + $0xc0] ss:$16 sps:$4 sm:$0xff]  }
  0x64   :  { %v826_v35 = vld [vmem:[#allocation9 + $0xc8] ss:$16 sps:$4 sm:$0xff]   ;;  %v827_v36 = vld [vmem:[#allocation9 + $0xe4] ss:$16 sps:$4 sm:$0xff]   ;;  %v829_v37 = vld [vmem:[#allocation9 + $0xec] ss:$16 sps:$4 sm:$0xff]  }
  0x65   :  { %575 = vmatpush1.bf16.msra.mxu0 %v801_v18  ;;  %618 = vmatpush1.bf16.msra.mxu1 %v802_v19  ;;  %v831_v38 = vld [vmem:[#allocation9 + $0xe0] ss:$16 sps:$4 sm:$0xff]   ;;  %v832_v39 = vld [vmem:[#allocation9 + $0xe8] ss:$16 sps:$4 sm:$0xff]   ;;  %v833_v40 = vld [vmem:[#allocation9 + $0x104] ss:$16 sps:$4 sm:$0xff]  }
  0x66   :  { %576 = vmatprep.subr.bf16.mxu0 %v803_v20  ;;  %619 = vmatprep.subr.bf16.mxu1 %v805_v21  ;;  %v835_v41 = vld [vmem:[#allocation9 + $0x10c] ss:$16 sps:$4 sm:$0xff]   ;;  %v837_v42 = vld [vmem:[#allocation9 + $0x100] ss:$16 sps:$4 sm:$0xff]   ;;  %v838_v43 = vld [vmem:[#allocation9 + $0x108] ss:$16 sps:$4 sm:$0xff]  }
  0x67   :  { %v839_v58 = vld [vmem:[#allocation9 + $0x124] ss:$16 sps:$4 sm:$0xff]   ;;  %v841_v59 = vld [vmem:[#allocation9 + $0x12c] ss:$16 sps:$4 sm:$0xff]   ;;  %v843_v60 = vld [vmem:[#allocation9 + $0x120] ss:$16 sps:$4 sm:$0xff]  }
  0x68   :  { %v844_v61 = vld [vmem:[#allocation9 + $0x128] ss:$16 sps:$4 sm:$0xff]   ;;  %v845_v62 = vld [vmem:[#allocation9 + $0x144] ss:$16 sps:$4 sm:$0xff]   ;;  %v847_v63 = vld [vmem:[#allocation9 + $0x14c] ss:$16 sps:$4 sm:$0xff]  }
  0x69   :  { %577 = vmatpush1.bf16.msra.mxu0 %v807_v22  ;;  %620 = vmatpush1.bf16.msra.mxu1 %v808_v23  ;;  %v849_v0 = vld [vmem:[#allocation9 + $0x140] ss:$16 sps:$4 sm:$0xff]   ;;  %v850_v1 = vld [vmem:[#allocation9 + $0x148] ss:$16 sps:$4 sm:$0xff]   ;;  %v857_v6 = vld [vmem:[#allocation9 + $0x184] ss:$16 sps:$4 sm:$0xff]  }
  0x6a   :  { %578 = vmatprep.subr.bf16.mxu0 %v809_v24  ;;  %621 = vmatprep.subr.bf16.mxu1 %v811_v25  ;;  %v859_v7 = vld [vmem:[#allocation9 + $0x18c] ss:$16 sps:$4 sm:$0xff]   ;;  %v861_v8 = vld [vmem:[#allocation9 + $0x180] ss:$16 sps:$4 sm:$0xff]   ;;  %v862_v9 = vld [vmem:[#allocation9 + $0x188] ss:$16 sps:$4 sm:$0xff]  }
  0x6b   :  { %v863_v10 = vld [vmem:[#allocation9 + $0x1a4] ss:$16 sps:$4 sm:$0xff]   ;;  %v865_v11 = vld [vmem:[#allocation9 + $0x1ac] ss:$16 sps:$4 sm:$0xff]   ;;  %v867_v12 = vld [vmem:[#allocation9 + $0x1a0] ss:$16 sps:$4 sm:$0xff]  }
  0x6c   :  { %v868_v13 = vld [vmem:[#allocation9 + $0x1a8] ss:$16 sps:$4 sm:$0xff]   ;;  %v869_v14 = vld [vmem:[#allocation9 + $0x1c4] ss:$16 sps:$4 sm:$0xff]   ;;  %v871_v15 = vld [vmem:[#allocation9 + $0x1cc] ss:$16 sps:$4 sm:$0xff]  }
  0x6d   :  { %579 = vmatpush1.bf16.msra.mxu0 %v813_v26  ;;  %622 = vmatpush1.bf16.msra.mxu1 %v814_v27  ;;  %v873_v16 = vld [vmem:[#allocation9 + $0x1c0] ss:$16 sps:$4 sm:$0xff]   ;;  %v874_v17 = vld [vmem:[#allocation9 + $0x1c8] ss:$16 sps:$4 sm:$0xff]   ;;  %v875_v18 = vld [vmem:[#allocation9 + $0x1e4] ss:$16 sps:$4 sm:$0xff]   ;;  %v128_v26 = vlaneseq }
  0x6e   :  { %580 = vmatprep.subr.bf16.mxu0 %v815_v28  ;;  %623 = vmatprep.subr.bf16.mxu1 %v817_v29  ;;  %v877_v19 = vld [vmem:[#allocation9 + $0x1ec] ss:$16 sps:$4 sm:$0xff]   ;;  %v879_v20 = vld [vmem:[#allocation9 + $0x1e0] ss:$16 sps:$4 sm:$0xff]   ;;  %v880_v21 = vld [vmem:[#allocation9 + $0x1e8] ss:$16 sps:$4 sm:$0xff]  }
  0x6f   :  { %v129_v29 = vshrl.u32 %v128_v26, 7  ;;  %s689_s21 = sshll.u32 %s1034_s4, 4  ;;  %s690_s21 = int_to_ptr.vmem [resolvable:$true] %s689_s21 }
  0x70   :  { %s995_s29 = scalar_lea.vmem %s690_s21, 512  ;;  %p1000_p13 = scmp.lt.s32.totalorder %s690_s21, %s690_s21 }
  0x71   :  { %581 = vmatpush1.bf16.msra.mxu0 %v819_v30  ;;  %624 = vmatpush1.bf16.msra.mxu1 %v820_v31  ;;  %v130_v30 = vsub.s32 0, %v129_v29  ;;  %v134_v31 = vsub.s32 1, %v129_v29  ;;  %p996_p12 = scmp.ne.s32.totalorder %s690_s21, %s995_s29  ;;  %p1001_p0 = scmp.lt.s32.totalorder %s995_s29, %s995_s29 }
  0x72   :  { %582 = vmatprep.subr.bf16.mxu0 %v821_v32  ;;  %625 = vmatprep.subr.bf16.mxu1 %v823_v33  ;;  %v126_v32 = vld [vmem:[#allocation6] sm:$0x3] }
  0x73   :  { %p1002_p1 = por %p1001_p0, %p1000_p13 }
  0x75   :  { %583 = vmatpush1.bf16.msra.mxu0 %v825_v34  ;;  %626 = vmatpush1.bf16.msra.mxu1 %v826_v35  ;;  %v131_v35 = vrot.slane %v126_v32, %v130_v30  ;;  %p1003_p2 = pnand %p1002_p1, %p996_p12 }
  0x76   :  { %584 = vmatprep.subr.bf16.mxu0 %v827_v36  ;;  %627 = vmatprep.subr.bf16.mxu1 %v829_v37  ;;  %v135_v36 = vrot.slane %v126_v32, %v134_v31  ;;  %v142_v37 = vld [vmem:[#allocation8] sm:$0x3] }
  0x79   :  { %585 = vmatpush1.bf16.msra.mxu0 %v831_v38  ;;  %628 = vmatpush1.bf16.msra.mxu1 %v832_v39 }
  0x7a   :  { %586 = vmatprep.subr.bf16.mxu0 %v833_v40  ;;  %629 = vmatprep.subr.bf16.mxu1 %v835_v41  ;;  %v147_v40 = vrot.slane %v142_v37, %v130_v30  ;;  %v151_v41 = vrot.slane %v142_v37, %v134_v31 }
  0x7d   :  { %587 = vmatpush1.bf16.msra.mxu0 %v837_v42  ;;  %630 = vmatpush1.bf16.msra.mxu1 %v838_v43 }
  0x7e   :  { %588 = vmatprep.subr.bf16.mxu0 %v839_v58  ;;  %631 = vmatprep.subr.bf16.mxu1 %v841_v59  ;;  %v244_v58 = vsub.s32 3, %v129_v29 }
  0x81   :  { %589 = vmatpush1.bf16.msra.mxu0 %v843_v60  ;;  %632 = vmatpush1.bf16.msra.mxu1 %v844_v61 }
  0x82   :  { %590 = vmatprep.subr.bf16.mxu0 %v845_v62  ;;  %633 = vmatprep.subr.bf16.mxu1 %v847_v63 }
  0x85   :  { %591 = vmatpush1.bf16.msra.mxu0 %v849_v0  ;;  %634 = vmatpush1.bf16.msra.mxu1 %v850_v1 }
  0xec   :  { %v95_v44 = vpop.xlane.xlu0 %94 }
  0xed   :  { %v100_v45 = vmul.f32 0.00390625, %v95_v44 }
  0xef   :  { %v1153_v46 = vsub.f32 %v89_v2, %v100_v45  ;;  %v1157_v47 = vsub.f32 %v90_v3, %v100_v45  ;;  %v851_v2 = vld [vmem:[#allocation9 + $0x164] ss:$16 sps:$4 sm:$0xff]   ;;  %v853_v3 = vld [vmem:[#allocation9 + $0x16c] ss:$16 sps:$4 sm:$0xff]  }
  0xf0   :  { %v98_v48 = vpop.xlane.xlu0 %97  ;;  %592 = vmatprep.subr.bf16.mxu0 %v851_v2  ;;  %635 = vmatprep.subr.bf16.mxu1 %v853_v3 }
  0xf1   :  { %v101_v49 = vmul.f32 0.00390625, %v98_v48  ;;  %v106_v50 = vmul.f32 %v1153_v46, %v1153_v46  ;;  %v107_v51 = vmul.f32 %v1157_v47, %v1157_v47 }
  0xf3   :  { %v1165_v52 = vsub.f32 %v91_v4, %v101_v49  ;;  %v1169_v53 = vsub.f32 %v92_v5, %v101_v49  ;;  %v110_v54 = vadd.f32 %v107_v51, %v106_v50  ;;  %v855_v4 = vld [vmem:[#allocation9 + $0x160] ss:$16 sps:$4 sm:$0xff]   ;;  %v856_v5 = vld [vmem:[#allocation9 + $0x168] ss:$16 sps:$4 sm:$0xff]  }
  0xf4   :  { %593 = vmatpush1.bf16.msra.mxu0 %v855_v4  ;;  %636 = vmatpush1.bf16.msra.mxu1 %v856_v5 }
  0xf5   :  { %111 = vadd.xlane.f32.xlu1 %v110_v54  ;;  %v108_v55 = vmul.f32 %v1165_v52, %v1165_v52  ;;  %v109_v56 = vmul.f32 %v1169_v53, %v1169_v53  ;;  %594 = vmatprep.subr.bf16.mxu0 %v857_v6 }
  0xf6   :  { %637 = vmatprep.subr.bf16.mxu1 %v859_v7 }
  0xf7   :  { %v113_v57 = vadd.f32 %v109_v56, %v108_v55 }
  0xf8   :  { %595 = vmatpush1.bf16.msra.mxu0 %v861_v8  ;;  %638 = vmatpush1.bf16.msra.mxu1 %v862_v9 }
  0xf9   :  { %114 = vadd.xlane.f32.xlu1 %v113_v57  ;;  %596 = vmatprep.subr.bf16.mxu0 %v863_v10  ;;  %v228_v57 = vld [vmem:[#allocation11] sm:$0xf] }
  0xfa   :  { %639 = vmatprep.subr.bf16.mxu1 %v865_v11  ;;  %v237_v60 = vrot.slane %v228_v57, %v134_v31 }
  0xfc   :  { %597 = vmatpush1.bf16.msra.mxu0 %v867_v12  ;;  %640 = vmatpush1.bf16.msra.mxu1 %v868_v13 }
  0xfd   :  { %598 = vmatprep.subr.bf16.mxu0 %v869_v14  ;;  %641 = vmatprep.subr.bf16.mxu1 %v871_v15 }
 0x100   :  { %599 = vmatpush1.bf16.msra.mxu0 %v873_v16  ;;  %642 = vmatpush1.bf16.msra.mxu1 %v874_v17 }
 0x101   :  { %600 = vmatprep.subr.bf16.mxu0 %v875_v18  ;;  %643 = vmatprep.subr.bf16.mxu1 %v877_v19 }
 0x104   :  { %601 = vmatpush1.bf16.msra.mxu0 %v879_v20  ;;  %644 = vmatpush1.bf16.msra.mxu1 %v880_v21 }
 0x182   :  { %v112_v22 = vpop.xlane.xlu1 %111 }
 0x183   :  { %v116_v23 = vmul.f32 0.00390625, %v112_v22 }
 0x185   :  { %v118_v24 = vadd.f32 1e-05, %v116_v23 }
 0x186   :  { %v115_v25 = vpop.xlane.xlu1 %114 }
 0x187   :  { %881 = vrsqrt.f32 %v118_v24  ;;  %v117_v27 = vmul.f32 0.00390625, %v115_v25 }
 0x189   :  { %v119_v28 = vadd.f32 1e-05, %v117_v27 }
 0x18b   :  { %883 = vrsqrt.f32 %v119_v28 }
 0x191   :  { %v882_v33 = vpop.eup %881 }
 0x192   :  { %v123_v34 = vmul.f32 %v882_v33, %v1157_v47  ;;  %v122_v38 = vmul.f32 %v882_v33, %v1153_v46  ;;  %v240_v46 = vsub.s32 2, %v129_v29 }
 0x194   :  { %v139_v43 = vmul.f32 %v135_v36, %v123_v34  ;;  %v138_v45 = vmul.f32 %v131_v35, %v122_v38  ;;  %v241_v59 = vrot.slane %v228_v57, %v240_v46 }
 0x195   :  { %v884_v39 = vpop.eup %883 }
 0x196   :  { %v125_v42 = vmul.f32 %v884_v39, %v1169_v53  ;;  %v124_v44 = vmul.f32 %v884_v39, %v1165_v52  ;;  %v155_v50 = vadd.f32 %v151_v41, %v139_v43  ;;  %v154_v54 = vadd.f32 %v147_v40, %v138_v45 }
 0x197   :  { %v233_v53 = vrot.slane %v228_v57, %v130_v30  ;;  %v245_v52 = vrot.slane %v228_v57, %v244_v58 }
 0x198   :  { %v141_v48 = vmul.f32 %v135_v36, %v125_v42  ;;  %v140_v49 = vmul.f32 %v131_v35, %v124_v44 }
 0x19a   :  { %v157_v51 = vadd.f32 %v151_v41, %v141_v48  ;;  %v156_v47 = vadd.f32 %v147_v40, %v140_v49 }
 0x19c   :  { %v159_v55 = vpack.c.bf16 %v157_v51, %v155_v50  ;;  %v158_v56 = vpack.c.bf16 %v156_v47, %v154_v54 }
 0x19e   :  { %602 = vmatprep.mubr.bf16.mxu0 %v159_v55  ;;  %645 = vmatprep.mubr.bf16.mxu1 %v159_v55 }
 0x19f   :  { %603 = vmatmul.mubr.bf16.vlgmr.msra.gmra.mrb[0].mxu0 %v158_v56  ;;  %646 = vmatmul.mubr.bf16.vlgmr.msra.gmra.mrb[0].mxu1 %v158_v56 }
 0x272   :  { %v604_v61 = vpop.f32.mrb[0].mxu0  ;;  %v647_v62 = vpop.f32.mrb[0].mxu1 }
 0x273   :  { %v605_v63 = vadd.f32 %v604_v61, %v233_v53  ;;  %v648_v0 = vadd.f32 %v647_v62, %v241_v59  ;;  %v606_v1 = vpop.f32.mrb[1].mxu0  ;;  %v649_v2 = vpop.f32.mrb[1].mxu1 }
 0x274   :  { %v607_v3 = vadd.f32 %v606_v1, %v237_v60  ;;  %v650_v4 = vadd.f32 %v649_v2, %v245_v52  ;;  %v608_v5 = vpop.f32.mrb[2].mxu0  ;;  %v651_v6 = vpop.f32.mrb[2].mxu1 }
 0x275   :  { %v609_v7 = vadd.f32 %v608_v5, %v233_v53  ;;  %v652_v8 = vadd.f32 %v651_v6, %v241_v59  ;;  %v610_v9 = vpop.f32.mrb[3].mxu0  ;;  %v653_v10 = vpop.f32.mrb[3].mxu1 }
 0x276   :  { %v771_v11 = vpack.c.bf16 %v607_v3, %v605_v63  ;;  %v772_v12 = vpack.c.bf16 %v650_v4, %v648_v0  ;;  %v611_v13 = vadd.f32 %v610_v9, %v237_v60  ;;  %v654_v14 = vadd.f32 %v653_v10, %v245_v52 }
 0x278   :  { %680 = vst [vmem:[#allocation12] sm:$0xff] %v771_v11  ;;  %681 = vst [vmem:[#allocation12 + $0x8] sm:$0xff] %v772_v12  ;;  %v773_v15 = vpack.c.bf16 %v611_v13, %v609_v7  ;;  %v774_v16 = vpack.c.bf16 %v654_v14, %v652_v8 }
 0x27a   :  { %682 = vst [vmem:[#allocation12 + $0x10] sm:$0xff] %v773_v15  ;;  %683 = vst [vmem:[#allocation12 + $0x18] sm:$0xff] %v774_v16 }
 0x27b   :  { %1006 = shalt.err (!%p1003_p2)
}
 0x27c   :  { %s1007_s7 = scalar_lea.hbm %s1199_s5, 512 }
 0x27d   :  { %p1008_p3 = scmp.ne.s32.totalorder %s1199_s5, %s1007_s7  ;;  %p1011_p4 = scmp.lt.u32.totalorder %s1007_s7, %s1199_s5 }
 0x27f   :  { %p1013_p5 = pnand %p1011_p4, %p1008_p3 }
 0x281   :  { %1016 = shalt.err (!%p1013_p5)
}
 0x282   :  { %695 = dma.vmem_to_hbm [thread:$0]  %s690_s21, 512, %s1199_s5, [#allocation5], %s1027_s1, %s1027_s1, %s1028_s15  }
 0x283   :  { %1023 = dma.done.wait [#allocation5], 512  }
 0x284   :  { %1024 = vsyncadd [#allocation5], 4294966784 }
 0x285   :  { %699 = vsyncpa [#allocation4], 1 }
 0x286   :  { %700 = vsyncpa [#allocation7], 1 }
 0x287   :  { %701 = vsyncpa [#allocation10], 1 }
 0x288   :  { %702 = vsyncpa [#allocation5], 1 }

// kernel: gpt_bigcode_forward.13
= control target key start
LH: loop header
LB: loop body
LE: loop exit
PB: predicated region body
PF: predicated region fallthrough
CT: control target
= control target key end

     0   :  { %9 = vsyncpa [#allocation4], 0  ;;  %s736_s0 = inlined_call_operand.hbm [shape: bf16[16,256], index: 0, kind: input, shape index: {}]   ;;  %s737_s1 = inlined_call_operand.hbm [shape: bf16[256,256], index: 1, kind: input, shape index: {}]   ;;  %s738_s2 = inlined_call_operand.hbm [shape: f32[1,256], index: 2, kind: input, shape index: {}]   ;;  %s739_s3 = inlined_call_operand.hbm [shape: bf16[16,256], index: 3, kind: input, shape index: {}]   ;;  %s740_s4 = inlined_call_operand.hbm [shape: bf16[16,256], index: 4, kind: output, shape index: {}]  }
   0x1   :  { %10 = vsyncpa [#allocation7], 0 }
   0x2   :  { %11 = vsyncpa [#allocation10], 0 }
   0x3   :  { %12 = vsyncpa [#allocation5], 0  ;;  %s618_s15 = smov [#allocation6]   ;;  %s619_s17 = smov [#allocation3]  }
   0x4   :  { %s30_s16 = sshll.u32 %s618_s15, 4  ;;  %s18_s18 = sshll.u32 %s619_s17, 4  ;;  %s31_s16 = int_to_ptr.vmem [resolvable:$true] %s30_s16  ;;  %s650_s18 = int_to_ptr.vmem [resolvable:$true] %s18_s18 }
   0x5   :  { %s500_s21 = scalar_lea.hbm %s737_s1, 4096 }
   0x6   :  { %p501_p0 = scmp.ne.s32.totalorder %s737_s1, %s500_s21  ;;  %p504_p1 = scmp.lt.u32.totalorder %s500_s21, %s737_s1 }
   0x8   :  { %p506_p2 = pnand %p504_p1, %p501_p0 }
   0xa   :  { %509 = shalt.err (!%p506_p2)
}
   0xb   :  { %s510_s26 = scalar_lea.vmem %s31_s16, 4096  ;;  %p515_p4 = scmp.lt.s32.totalorder %s31_s16, %s31_s16 }
   0xc   :  { %p511_p3 = scmp.ne.s32.totalorder %s31_s16, %s510_s26  ;;  %p516_p5 = scmp.lt.s32.totalorder %s510_s26, %s510_s26 }
   0xe   :  { %p517_p6 = por %p516_p5, %p515_p4 }
  0x10   :  { %p518_p7 = pnand %p517_p6, %p511_p3 }
  0x12   :  { %521 = shalt.err (!%p518_p7)
}
  0x13   :  { %s620_s27 = smov 128   ;;  %s621_s28 = smov 8  }
  0x14   :  { %36 = dma.hbm_to_vmem [thread:$0]  %s737_s1, 4096, %s31_s16, [#allocation7], %s620_s27, %s620_s27, %s621_s28  }
  0x15   :  { %s522_s7 = scalar_lea.hbm %s736_s0, 256 }
  0x16   :  { %p523_p8 = scmp.ne.s32.totalorder %s736_s0, %s522_s7  ;;  %p526_p9 = scmp.lt.u32.totalorder %s522_s7, %s736_s0 }
  0x18   :  { %p528_p10 = pnand %p526_p9, %p523_p8 }
  0x1a   :  { %531 = shalt.err (!%p528_p10)
}
  0x1b   :  { %s532_s12 = scalar_lea.vmem %s650_s18, 256  ;;  %p537_p12 = scmp.lt.s32.totalorder %s650_s18, %s650_s18 }
  0x1c   :  { %p533_p11 = scmp.ne.s32.totalorder %s650_s18, %s532_s12  ;;  %p538_p13 = scmp.lt.s32.totalorder %s532_s12, %s532_s12 }
  0x1e   :  { %p539_p0 = por %p538_p13, %p537_p12 }
  0x20   :  { %p540_p1 = pnand %p539_p0, %p533_p11 }
  0x22   :  { %543 = shalt.err (!%p540_p1)
}
  0x23   :  { %24 = dma.hbm_to_vmem [thread:$0]  %s736_s0, 256, %s650_s18, [#allocation4], %s620_s27, %s620_s27, %s621_s28  }
  0x24   :  { %s622_s14 = smov [#allocation8]   ;;  %s623_s16 = smov [#allocation9]  }
  0x25   :  { %s43_s15 = sshll.u32 %s622_s14, 4  ;;  %s52_s17 = sshll.u32 %s623_s16, 4  ;;  %s44_s15 = int_to_ptr.vmem [resolvable:$true] %s43_s15  ;;  %s687_s17 = int_to_ptr.vmem [resolvable:$true] %s52_s17 }
  0x26   :  { %s544_s21 = scalar_lea.hbm %s738_s2, 32 }
  0x27   :  { %p545_p2 = scmp.ne.s32.totalorder %s738_s2, %s544_s21  ;;  %p548_p3 = scmp.lt.u32.totalorder %s544_s21, %s738_s2 }
  0x29   :  { %p550_p4 = pnand %p548_p3, %p545_p2 }
  0x2b   :  { %553 = shalt.err (!%p550_p4)
}
  0x2c   :  { %s554_s0 = scalar_lea.vmem %s44_s15, 32  ;;  %p559_p6 = scmp.lt.s32.totalorder %s44_s15, %s44_s15 }
  0x2d   :  { %p555_p5 = scmp.ne.s32.totalorder %s44_s15, %s554_s0  ;;  %p560_p7 = scmp.lt.s32.totalorder %s554_s0, %s554_s0 }
  0x2f   :  { %p561_p8 = por %p560_p7, %p559_p6 }
  0x31   :  { %p562_p9 = pnand %p561_p8, %p555_p5 }
  0x33   :  { %565 = shalt.err (!%p562_p9)
}
  0x34   :  { %46 = dma.hbm_to_vmem [thread:$0]  %s738_s2, 32, %s44_s15, [#allocation7]  }
  0x35   :  { %s566_s5 = scalar_lea.hbm %s739_s3, 256 }
  0x36   :  { %p567_p10 = scmp.ne.s32.totalorder %s739_s3, %s566_s5  ;;  %p570_p11 = scmp.lt.u32.totalorder %s566_s5, %s739_s3 }
  0x38   :  { %p572_p12 = pnand %p570_p11, %p567_p10 }
  0x3a   :  { %575 = shalt.err (!%p572_p12)
}
  0x3b   :  { %s576_s10 = scalar_lea.vmem %s687_s17, 256  ;;  %p581_p0 = scmp.lt.s32.totalorder %s687_s17, %s687_s17 }
  0x3c   :  { %p577_p13 = scmp.ne.s32.totalorder %s687_s17, %s576_s10  ;;  %p582_p1 = scmp.lt.s32.totalorder %s576_s10, %s576_s10 }
  0x3e   :  { %p583_p2 = por %p582_p1, %p581_p0 }
  0x40   :  { %p584_p3 = pnand %p583_p2, %p577_p13 }
  0x42   :  { %587 = shalt.err (!%p584_p3)
}
  0x43   :  { %58 = dma.hbm_to_vmem [thread:$0]  %s739_s3, 256, %s687_s17, [#allocation10], %s620_s27, %s620_s27, %s621_s28  }
  0x44   :  { %610 = dma.done.wait [#allocation4], 256  }
  0x45   :  { %611 = vsyncadd [#allocation4], 4294967040 }
  0x46   :  { %612 = dma.done.wait [#allocation7], 4128  }
  0x47   :  { %613 = vsyncadd [#allocation7], 4294963168 }
  0x48   :  { %614 = dma.done.wait [#allocation10], 256  }
  0x49   :  { %615 = vsyncadd [#allocation10], 4294967040  ;;  %v449_v0 = vld [vmem:[#allocation6 + $0x4] ss:$8 sps:$4 sm:$0xff]   ;;  %v451_v1 = vld [vmem:[#allocation6] ss:$8 sps:$4 sm:$0xff]   ;;  %v347_v34 = vlaneseq }
  0x4a   :  { %287 = vmatprep.subr.bf16.mxu0 %v449_v0  ;;  %v452_v2 = vld [vmem:[#allocation6 + $0x14] ss:$8 sps:$4 sm:$0xff]   ;;  %v454_v3 = vld [vmem:[#allocation6 + $0x10] ss:$8 sps:$4 sm:$0xff]   ;;  %v455_v4 = vld [vmem:[#allocation6 + $0x24] ss:$8 sps:$4 sm:$0xff]  }
  0x4b   :  { %288 = vmatpush1.bf16.msra.mxu0 %v451_v1  ;;  %v457_v5 = vld [vmem:[#allocation6 + $0x20] ss:$8 sps:$4 sm:$0xff]   ;;  %v458_v6 = vld [vmem:[#allocation6 + $0x34] ss:$8 sps:$4 sm:$0xff]   ;;  %v460_v7 = vld [vmem:[#allocation6 + $0x30] ss:$8 sps:$4 sm:$0xff]  }
  0x4c   :  { %289 = vmatprep.subr.bf16.mxu0 %v452_v2  ;;  %v461_v8 = vld [vmem:[#allocation6 + $0x44] ss:$8 sps:$4 sm:$0xff]   ;;  %v463_v9 = vld [vmem:[#allocation6 + $0x40] ss:$8 sps:$4 sm:$0xff]   ;;  %v464_v10 = vld [vmem:[#allocation6 + $0x54] ss:$8 sps:$4 sm:$0xff]  }
  0x4d   :  { %v466_v11 = vld [vmem:[#allocation6 + $0x50] ss:$8 sps:$4 sm:$0xff]   ;;  %v467_v12 = vld [vmem:[#allocation6 + $0x64] ss:$8 sps:$4 sm:$0xff]   ;;  %v499_v13 = vld [vmem:[#allocation3 + $0x4] ss:$8 sps:$4 sm:$0xff]  }
  0x4e   :  { %v469_v14 = vld [vmem:[#allocation6 + $0x60] ss:$8 sps:$4 sm:$0xff]   ;;  %v470_v15 = vld [vmem:[#allocation6 + $0x74] ss:$8 sps:$4 sm:$0xff]   ;;  %319 = vmatprep.mubr.bf16.mxu0 %v499_v13  ;;  %v472_v16 = vld [vmem:[#allocation6 + $0x70] ss:$8 sps:$4 sm:$0xff]  }
  0x4f   :  { %290 = vmatpush1.bf16.msra.mxu0 %v454_v3  ;;  %v473_v17 = vld [vmem:[#allocation6 + $0x84] ss:$8 sps:$4 sm:$0xff]   ;;  %v475_v18 = vld [vmem:[#allocation6 + $0x80] ss:$8 sps:$4 sm:$0xff]   ;;  %v476_v19 = vld [vmem:[#allocation6 + $0x94] ss:$8 sps:$4 sm:$0xff]  }
  0x50   :  { %291 = vmatprep.subr.bf16.mxu0 %v455_v4  ;;  %v478_v20 = vld [vmem:[#allocation6 + $0x90] ss:$8 sps:$4 sm:$0xff]   ;;  %v479_v21 = vld [vmem:[#allocation6 + $0xa4] ss:$8 sps:$4 sm:$0xff]   ;;  %v481_v22 = vld [vmem:[#allocation6 + $0xa0] ss:$8 sps:$4 sm:$0xff]  }
  0x51   :  { %v482_v23 = vld [vmem:[#allocation6 + $0xb4] ss:$8 sps:$4 sm:$0xff]   ;;  %v484_v24 = vld [vmem:[#allocation6 + $0xb0] ss:$8 sps:$4 sm:$0xff]   ;;  %v485_v25 = vld [vmem:[#allocation6 + $0xc4] ss:$8 sps:$4 sm:$0xff]  }
  0x52   :  { %v487_v26 = vld [vmem:[#allocation6 + $0xc0] ss:$8 sps:$4 sm:$0xff]   ;;  %v488_v27 = vld [vmem:[#allocation6 + $0xd4] ss:$8 sps:$4 sm:$0xff]   ;;  %v490_v28 = vld [vmem:[#allocation6 + $0xd0] ss:$8 sps:$4 sm:$0xff]  }
  0x53   :  { %292 = vmatpush1.bf16.msra.mxu0 %v457_v5  ;;  %v491_v29 = vld [vmem:[#allocation6 + $0xe4] ss:$8 sps:$4 sm:$0xff]   ;;  %v493_v30 = vld [vmem:[#allocation6 + $0xe0] ss:$8 sps:$4 sm:$0xff]   ;;  %v494_v31 = vld [vmem:[#allocation6 + $0xf4] ss:$8 sps:$4 sm:$0xff]  }
  0x54   :  { %293 = vmatprep.subr.bf16.mxu0 %v458_v6  ;;  %v496_v32 = vld [vmem:[#allocation6 + $0xf0] ss:$8 sps:$4 sm:$0xff]   ;;  %v348_v35 = vshrl.u32 %v347_v34, 7  ;;  %v345_v37 = vld [vmem:[#allocation8] sm:$0x3]  ;;  %v361_v39 = vld [vmem:[#allocation9] sm:$0xff] }
  0x55   :  { %v497_v33 = vld [vmem:[#allocation3] ss:$8 sps:$4 sm:$0xff]   ;;  %v363_v43 = vunpack.c.l.bf16 %v361_v39  ;;  %v364_v45 = vunpack.c.h.bf16 %v361_v39  ;;  %s624_s3 = smov [#allocation11]  }
  0x56   :  { %v349_v36 = vsub.s32 0, %v348_v35  ;;  %v353_v38 = vsub.s32 1, %v348_v35  ;;  %v362_v42 = vld [vmem:[#allocation9 + $0x8] sm:$0xff]  ;;  %s390_s12 = sshll.u32 %s624_s3, 4  ;;  %s391_s12 = int_to_ptr.vmem [resolvable:$true] %s390_s12 }
  0x57   :  { %294 = vmatpush1.bf16.msra.mxu0 %v460_v7  ;;  %v365_v48 = vunpack.c.l.bf16 %v362_v42  ;;  %v366_v51 = vunpack.c.h.bf16 %v362_v42  ;;  %s588_s1 = scalar_lea.vmem %s391_s12, 256  ;;  %p593_p5 = scmp.lt.s32.totalorder %s391_s12, %s391_s12 }
  0x58   :  { %295 = vmatprep.subr.bf16.mxu0 %v461_v8  ;;  %v350_v40 = vrot.slane %v345_v37, %v349_v36  ;;  %v354_v41 = vrot.slane %v345_v37, %v353_v38  ;;  %p589_p4 = scmp.ne.s32.totalorder %s391_s12, %s588_s1  ;;  %p594_p6 = scmp.lt.s32.totalorder %s588_s1, %s588_s1 }
  0x5a   :  { %p595_p7 = por %p594_p6, %p593_p5 }
  0x5b   :  { %296 = vmatpush1.bf16.msra.mxu0 %v463_v9 }
  0x5c   :  { %297 = vmatprep.subr.bf16.mxu0 %v464_v10  ;;  %p596_p8 = pnand %p595_p7, %p589_p4 }
  0x5f   :  { %298 = vmatpush1.bf16.msra.mxu0 %v466_v11 }
  0x60   :  { %299 = vmatprep.subr.bf16.mxu0 %v467_v12 }
  0x63   :  { %300 = vmatpush1.bf16.msra.mxu0 %v469_v14 }
  0x64   :  { %301 = vmatprep.subr.bf16.mxu0 %v470_v15 }
  0x67   :  { %302 = vmatpush1.bf16.msra.mxu0 %v472_v16 }
  0x68   :  { %303 = vmatprep.subr.bf16.mxu0 %v473_v17 }
  0x6b   :  { %304 = vmatpush1.bf16.msra.mxu0 %v475_v18 }
  0x6c   :  { %305 = vmatprep.subr.bf16.mxu0 %v476_v19 }
  0x6f   :  { %306 = vmatpush1.bf16.msra.mxu0 %v478_v20 }
  0x70   :  { %307 = vmatprep.subr.bf16.mxu0 %v479_v21 }
  0x73   :  { %308 = vmatpush1.bf16.msra.mxu0 %v481_v22 }
  0x74   :  { %309 = vmatprep.subr.bf16.mxu0 %v482_v23 }
  0x77   :  { %310 = vmatpush1.bf16.msra.mxu0 %v484_v24 }
  0x78   :  { %311 = vmatprep.subr.bf16.mxu0 %v485_v25 }
  0x7b   :  { %312 = vmatpush1.bf16.msra.mxu0 %v487_v26 }
  0x7c   :  { %313 = vmatprep.subr.bf16.mxu0 %v488_v27 }
  0x7f   :  { %314 = vmatpush1.bf16.msra.mxu0 %v490_v28 }
  0x80   :  { %315 = vmatprep.subr.bf16.mxu0 %v491_v29 }
  0x83   :  { %316 = vmatpush1.bf16.msra.mxu0 %v493_v30 }
  0x84   :  { %317 = vmatprep.subr.bf16.mxu0 %v494_v31 }
  0x87   :  { %318 = vmatpush1.bf16.msra.mxu0 %v496_v32 }
  0x8a   :  { %320 = vmatmul.mubr.bf16.vlgmr.msra.gmra.mrb[0].mxu0 %v497_v33 }
 0x15d   :  { %v321_v44 = vpop.f32.mrb[0].mxu0 }
 0x15e   :  { %v357_v46 = vadd.f32 %v350_v40, %v321_v44  ;;  %v323_v47 = vpop.f32.mrb[1].mxu0 }
 0x15f   :  { %v358_v49 = vadd.f32 %v354_v41, %v323_v47  ;;  %v325_v50 = vpop.f32.mrb[2].mxu0 }
 0x160   :  { %v367_v52 = vadd.f32 %v363_v43, %v357_v46  ;;  %v359_v53 = vadd.f32 %v350_v40, %v325_v50  ;;  %v327_v54 = vpop.f32.mrb[3].mxu0 }
 0x161   :  { %v368_v55 = vadd.f32 %v364_v45, %v358_v49  ;;  %v360_v56 = vadd.f32 %v354_v41, %v327_v54 }
 0x162   :  { %v369_v57 = vadd.f32 %v365_v48, %v359_v53 }
 0x163   :  { %v440_v58 = vpack.c.bf16 %v368_v55, %v367_v52  ;;  %v370_v59 = vadd.f32 %v366_v51, %v360_v56 }
 0x165   :  { %383 = vst [vmem:[#allocation11] sm:$0xff] %v440_v58  ;;  %v441_v60 = vpack.c.bf16 %v370_v59, %v369_v57 }
 0x167   :  { %384 = vst [vmem:[#allocation11 + $0x8] sm:$0xff] %v441_v60 }
 0x168   :  { %599 = shalt.err (!%p596_p8)
}
 0x169   :  { %s600_s15 = scalar_lea.hbm %s740_s4, 256 }
 0x16a   :  { %p601_p9 = scmp.ne.s32.totalorder %s740_s4, %s600_s15  ;;  %p604_p10 = scmp.lt.u32.totalorder %s600_s15, %s740_s4 }
 0x16c   :  { %p606_p11 = pnand %p604_p10, %p601_p9 }
 0x16e   :  { %609 = shalt.err (!%p606_p11)
}
 0x16f   :  { %396 = dma.vmem_to_hbm [thread:$0]  %s391_s12, 256, %s740_s4, [#allocation5], %s620_s27, %s620_s27, %s621_s28  }
 0x170   :  { %616 = dma.done.wait [#allocation5], 256  }
 0x171   :  { %617 = vsyncadd [#allocation5], 4294967040 }
 0x172   :  { %400 = vsyncpa [#allocation4], 1 }
 0x173   :  { %401 = vsyncpa [#allocation7], 1 }
 0x174   :  { %402 = vsyncpa [#allocation10], 1 }
 0x175   :  { %403 = vsyncpa [#allocation5], 1 }

// kernel: gpt_bigcode_forward.12
= control target key start
LH: loop header
LB: loop body
LE: loop exit
PB: predicated region body
PF: predicated region fallthrough
CT: control target
= control target key end

     0   :  { %8 = vsyncpa [#allocation6], 0  ;;  %s1454_s0 = inlined_call_operand.hbm [shape: bf16[16,512], index: 0, kind: input, shape index: {}, may-alias: {0,1,2}]   ;;  %s1455_s1 = inlined_call_operand.hbm [shape: bf16[16,512], index: 1, kind: input, shape index: {}, may-alias: {0,1,2}]   ;;  %s1456_s2 = inlined_call_operand.hbm [shape: bf16[16,512], index: 2, kind: input, shape index: {}, may-alias: {0,1,2}]   ;;  %s1457_s3 = inlined_call_operand.hbm [shape: bf16[16,256], index: 3, kind: output, shape index: {}]  }
   0x1   :  { %10 = vsyncpa [#allocation6 + $0x1], 0 }
   0x2   :  { %11 = vsyncpa [#allocation9], 0 }
   0x3   :  { %12 = vsyncpa [#allocation7], 0 }
   0x4   :  { %14 = vsyncpa [#allocation7 + $0x1], 0  ;;  %s1165_s12 = smov 0   ;;  %s1167_s13 = smov 0  }
   0x5   :  { %s1169_s14 = smov 0   ;;  %s1171_s15 = smov 0  }
   0x6   :  { %s1173_s16 = smov 0   ;;  %s1175_s17 = smov 0  }
   0x7 LB: > { %s787_s18 = sadd.s32 4294967295, %s1129_s17   ;;  %s788_s19 = sadd.s32 4294967294, %s1129_s17   ;;  %s1129_s17 = sphi %s1175_s17, %s20_s17   ;;  %s1125_s16 = sphi %s1173_s16, %s1480_s16   ;;  %s1121_s15 = sphi %s1171_s15, %s1479_s15   ;;  %s1117_s14 = sphi %s1169_s14, %s1478_s14   ;;  %s1113_s13 = sphi %s1167_s13, %s1477_s13   ;;  %s1109_s12 = sphi %s1165_s12, %s1476_s12  }
   0x8   : > { %p54_p0 = scmp.ne.s32.totalorder %s1113_s13, %s1109_s12  ;;  %p1199_p1 = scmp.eq.s32.totalorder %s787_s18, 0 }
   0x9   : > { %p1203_p2 = scmp.eq.s32.totalorder %s787_s18, 1  ;;  %p128_p3 = scmp.eq.s32.totalorder %s788_s19, 1 }
   0xa   : > { %s1462_s20 = scalar_select %p1199_p1, 1, 0 }
   0xb   : > { %s1463_s21 = scalar_select %p1203_p2, 1, 0 }
   0xc   : > { %p1209_p4 = por %p1199_p1, %p54_p0  ;;  %p789_p5 = scmp.ge.s32.totalorder %s1129_s17, 1 }
   0xd   : > { %p1214_p6 = por %p128_p3, %p54_p0  ;;  %p135_p7 = scmp.lt.s32.totalorder %s1129_s17, 3 }
   0xe   : > { %s1464_s22 = scalar_select %p1209_p4, 1, 0 }
   0xf   : > { %s1465_s23 = scalar_select %p1214_p6, 1, 0 }
  0x10   : > { %s1222_s26 = scalar_lea.hbm %s1455_s1, 128  ;;  %p1224_p8 = pnand %p789_p5, %p135_p7 }
  0x11   : > { %s1131_s28 = smov [#allocation8]   ;;  %s1242_s6 = scalar_lea.hbm %s1456_s2, 192 }
  0x12   : > { %s1466_s27 = scalar_select %p1224_p8, 1, 0 }
  0x13   : > { %s148_s29 = sshll.u32 %s1131_s28, 4  ;;  %p854_p9 = pneg %p1224_p8  ;;  %s1230_s29 = int_to_ptr.vmem [resolvable:$true] %s148_s29 }
  0x14   : > { %s1132_s7 = smov [#allocation10]   ;;  %s981_s11 = scalar_lea.hbm %s1455_s1, 256 }
  0x15   : > { %p1234_p10 = pnand %p854_p9, %p1199_p1  ;;  %s1244_s8 = sshll.u32 %s1132_s7, 4  ;;  %s163_s8 = int_to_ptr.vmem [resolvable:$true] %s1244_s8 }
  0x16   : > { %p952_p12 = scmp.ne.s32.totalorder %s1222_s26, %s981_s11  ;;  %s956_s24 = scalar_lea.hbm %s1455_s1, 512 }
  0x17   : > { %p953_p13 = pneg %p1234_p10  ;;  %p957_p5 = scmp.lt.u32.totalorder %s1222_s26, %s1455_s1 }
  0x18   : > { %p958_p7 = scmp.lt.u32.totalorder %s956_s24, %s981_s11  ;;  %p960_p11 = scmp.lt.u32.totalorder %s981_s11, %s1222_s26 }
  0x19   : > { %p954_p0 = pnand %p953_p13, %p952_p12 }
  0x1a   : > { %p959_p9 = por %p958_p7, %p957_p5 }
  0x1b   : > { %p955_p3 = pneg %p954_p0 }
  0x1c   : > { %p961_p6 = por %p960_p11, %p959_p9 }
  0x1e   : > { %p962_p1 = pnand %p961_p6, %p955_p3 }
  0x20   : > { %965 = shalt.err (!%p962_p1)
}
  0x21   : > { %s966_s4 = scalar_lea.vmem %s1230_s29, 128  ;;  %p974_p8 = scmp.lt.s32.totalorder %s1230_s29, %s1230_s29 }
  0x22   : > { %p967_p12 = scmp.ne.s32.totalorder %s1230_s29, %s966_s4  ;;  %p975_p2 = scmp.lt.s32.totalorder %s966_s4, %s966_s4 }
  0x24   : > { %p969_p0 = pnand %p967_p12, %p953_p13  ;;  %p976_p5 = por %p975_p2, %p974_p8 }
  0x26   : > { %p970_p4 = pneg %p969_p0 }
  0x28   : > { %p977_p7 = pnand %p976_p5, %p970_p4 }
  0x2a   : > { %980 = shalt.err (!%p977_p7)
}
  0x2b   : > { %s1133_s5 = smov 256   ;;  %s1134_s7 = smov 64  }
  0x2c   : > { %s1135_s9 = smov 4   ;;  %s1012_s18 = scalar_lea.hbm %s1456_s2, 320 }
  0x2d   : > { %857 = dma.hbm_to_vmem [thread:$0]  (!%p1234_p10), %s1222_s26, 128, %s1230_s29, [#allocation9], %s1133_s5, %s1134_s7, %s1135_s9  }
  0x2e   : > { %p983_p1 = scmp.ne.s32.totalorder %s1242_s6, %s1012_s18  ;;  %s987_s25 = scalar_lea.hbm %s1456_s2, 512 }
  0x2f   : > { %p988_p6 = scmp.lt.u32.totalorder %s1242_s6, %s1456_s2  ;;  %p989_p8 = scmp.lt.u32.totalorder %s987_s25, %s1012_s18 }
  0x30   : > { %p985_p2 = pnand %p983_p1, %p953_p13  ;;  %p991_p3 = scmp.lt.u32.totalorder %s1012_s18, %s1242_s6 }
  0x31   : > { %p990_p11 = por %p989_p8, %p988_p6 }
  0x32   : > { %p986_p4 = pneg %p985_p2 }
  0x33   : > { %p992_p9 = por %p991_p3, %p990_p11 }
  0x35   : > { %p993_p12 = pnand %p992_p9, %p986_p4 }
  0x37   : > { %996 = shalt.err (!%p993_p12)
}
  0x38   : > { %s997_s26 = scalar_lea.vmem %s163_s8, 128  ;;  %p1005_p1 = scmp.lt.s32.totalorder %s163_s8, %s163_s8 }
  0x39   : > { %p998_p0 = scmp.ne.s32.totalorder %s163_s8, %s997_s26  ;;  %p1006_p2 = scmp.lt.s32.totalorder %s997_s26, %s997_s26 }
  0x3b   : > { %p1000_p5 = pnand %p998_p0, %p953_p13  ;;  %p1007_p6 = por %p1006_p2, %p1005_p1 }
  0x3d   : > { %p1001_p7 = pneg %p1000_p5 }
  0x3f   : > { %p1008_p8 = pnand %p1007_p6, %p1001_p7 }
  0x41   : > { %1011 = shalt.err (!%p1008_p8)
}
  0x42   : > { %860 = dma.hbm_to_vmem [thread:$0]  (!%p1234_p10), %s1242_s6, 128, %s163_s8, [#allocation9], %s1133_s5, %s1134_s7, %s1135_s9  }
  0x43   : > { %s41_s29 = sadd.s32 1, %s1117_s14  ;;  %s32_s10 = sadd.s32 1, %s1125_s16 }
  0x44   : > { %p48_p13 = scmp.ne.s32.totalorder %s1117_s14, %s1113_s13  ;;  %p34_p4 = scmp.ge.s32.totalorder %s32_s10, 2 }
  0x45   : > { %p49_p11 = scmp.eq.s32.totalorder %s1129_s17, 0  ;;  %p1468_p3 = scmp.ne.s32.totalorder %s1463_s21, 0 }
  0x46   : > { %p871_p12 = scmp.lt.s32.totalorder %s1129_s17, 2  ;;  %s1482_s10 = smov (%p34_p4, %s32_s10), 0 }
  0x47   : > { %p1309_p9 = por %p1468_p3, %p48_p13  ;;  %p50_p0 = por %p49_p11, %p48_p13 }
  0x48   : > { %s176_s11 = sand.u32 1, %s1117_s14   ;;  %s37_s18 = ssub.s32 %s1125_s16, %s1482_s10 }
  0x49   : > { %p39_p5 = scmp.eq.s32.totalorder %s37_s18, 0  ;;  %s793_s6 = sshll.u32 %s176_s11, 3 }
  0x4a   : > { %s794_s8 = sshll.u32 %s1125_s16, 6  ;;  %s180_s28 = scalar_lea.vmem [#allocation5], %s793_s6 }
  0x4b   : > { %s1321_s19 = scalar_select %p39_p5, %s1117_s14, %s41_s29  }
  0x4c   : > { %s1326_s21 = scalar_lea.hbm %s1454_s0, %s794_s8  ;;  %s189_s4 = sshll.u32 %s180_s28, 4  ;;  %s1328_s4 = int_to_ptr.vmem [resolvable:$true] %s189_s4 }
  0x4d   : > { %p1332_p10 = pnand %p871_p12, %p50_p0  ;;  %s1336_s29 = scalar_lea.sflag [#allocation6], %s176_s11 }
  0x4e   : > { %s1013_s18 = scalar_lea.hbm %s1326_s21, 128  ;;  %s1018_s24 = scalar_lea.hbm %s1454_s0, 512 }
  0x4f   : > { %p1014_p7 = scmp.ne.s32.totalorder %s1326_s21, %s1013_s18  ;;  %p1015_p1 = pneg %p1332_p10 }
  0x50   : > { %p1019_p8 = scmp.lt.u32.totalorder %s1326_s21, %s1454_s0  ;;  %p1020_p13 = scmp.lt.u32.totalorder %s1018_s24, %s1013_s18 }
  0x51   : > { %p1016_p2 = pnand %p1015_p1, %p1014_p7  ;;  %p1022_p11 = scmp.lt.u32.totalorder %s1013_s18, %s1326_s21 }
  0x52   : > { %p1021_p4 = por %p1020_p13, %p1019_p8 }
  0x53   : > { %p1017_p6 = pneg %p1016_p2 }
  0x54   : > { %p1023_p3 = por %p1022_p11, %p1021_p4 }
  0x56   : > { %p1024_p12 = pnand %p1023_p3, %p1017_p6 }
  0x58   : > { %1027 = shalt.err (!%p1024_p12)
}
  0x59   : > { %s1028_s11 = scalar_lea.vmem %s1328_s4, 128  ;;  %s1136_s6 = smov [#allocation5]  }
  0x5a   : > { %p1029_p0 = scmp.ne.s32.totalorder %s1328_s4, %s1028_s11  ;;  %s1033_s8 = sshll.u32 %s1136_s6, 4  ;;  %s1034_s8 = int_to_ptr.vmem [resolvable:$false] %s1033_s8 }
  0x5b   : > { %s1035_s25 = scalar_lea.vmem %s1034_s8, 256  ;;  %p1036_p2 = scmp.lt.s32.totalorder %s1328_s4, %s1034_s8 }
  0x5c   : > { %p1031_p5 = pnand %p1029_p0, %p1015_p1  ;;  %p1037_p8 = scmp.lt.s32.totalorder %s1035_s25, %s1028_s11 }
  0x5e   : > { %p1032_p7 = pneg %p1031_p5  ;;  %p1038_p13 = por %p1037_p8, %p1036_p2 }
  0x60   : > { %p1039_p4 = pnand %p1038_p13, %p1032_p7 }
  0x62   : > { %1042 = shalt.err (!%p1039_p4)
}
  0x63   : > { %864 = dma.hbm_to_vmem [thread:$0]  (!%p1332_p10), %s1326_s21, 128, %s1328_s4, %s1336_s29, %s1133_s5, %s1134_s7, %s1135_s9  }
  0x64   : > { %p1471_p1 = scmp.ne.s32.totalorder %s1466_s27, 0 }
  0x65   : > { %s1370_s18 = sand.u32 (!%p1471_p1), 1, %s1113_s13   ;;  %p1472_p6 = scmp.ne.s32.totalorder (!%p1471_p1), %s1464_s22, 0 }
  0x66   : > { %201 = sbr.rel (%p1471_p1) target bundleno = 940 (0x3ac), region = 32  ;;  %s796_s24 = sshll.u32 (!%p1471_p1), %s1370_s18, 3 }
  0x67   : > { %s204_s28 = scalar_lea.sflag (!%p1471_p1), [#allocation6], %s1370_s18  ;;  %s207_s26 = scalar_lea.vmem (!%p1471_p1), [#allocation5], %s796_s24 }
  0x6d   : > { %1096 = dma.done.wait (%p1472_p6), %s204_s28, 128  }
  0x6e   : > { %1098 = vsyncadd (%p1472_p6), %s204_s28, 4294967168  ;;  %p1473_p10 = scmp.ne.s32.totalorder %s1462_s20, 0 }
  0x70   : > { %1100 = dma.done.wait (%p1473_p10), [#allocation9], 256  }
  0x71   : > { %1102 = vsyncadd (%p1473_p10), [#allocation9], 4294967040  ;;  %v1137_v0 = vmov 0.0   ;;  %vm1138_vm0 = vmmov 0   ;;  %v937_v1 = vld [vmem:[#allocation8] sm:$0xff]   ;;  %v818_v2 = vld [vmem:[%s207_s26] sm:$0xff]   ;;  %v495_v9 = vlaneseq }
  0x72   : > { %830 = vmatprep.subr.bf16.mxu0 %v1137_v0  ;;  %832 = vmatprep.mubr.msk.bf16.mxu0 %vm1138_vm0, %v1137_v0  ;;  %v819_v3 = vunpack.c.l.bf16 %v818_v2  ;;  %v820_v4 = vunpack.c.h.bf16 %v818_v2  ;;  %vm241_vm1 = vcmask 7168   ;;  %v1139_v8 = vmov -inf   ;;  %v938_v30 = vld [vmem:[#allocation10] sm:$0xff]   ;;  %s237_s20 = scalar_lea.vmem [#allocation11], %s796_s24  ;;  %s812_s27 = sshll.u32 %s1121_s15, 6 }
  0x73   : > { %836 = vmatprep.subr.bf16.mxu1 %v1137_v0  ;;  %838 = vmatprep.mubr.msk.bf16.mxu1 %vm1138_vm0, %v1137_v0  ;;  %242 = vst.msk [vmem:[#allocation2] sm:$0xff] %vm241_vm1, %v1139_v8  ;;  %243 = vst.msk [vmem:[#allocation2 + $0x8] sm:$0xff] %vm241_vm1, %v1139_v8  ;;  %v496_v10 = vshrl.u32 %v495_v9, 7  ;;  %v502_v11 = vand.u32 127, %v495_v9  ;;  %vm510_vm3 = vcmask 130048   ;;  %v1140_v21 = vmov 0   ;;  %s1405_s9 = scalar_lea.hbm %s1457_s3, %s812_s27 }
  0x74   : > { %831 = vmatpush3.bf16.xpose.msra.mxu0 %v937_v1  ;;  %v252_v5 = vmul.f32 0.088388346, %v819_v3  ;;  %v253_v6 = vmul.f32 0.088388346, %v820_v4  ;;  %244 = vst.msk [vmem:[#allocation3] sm:$0xff] %vm241_vm1, %v1137_v0  ;;  %245 = vst.msk [vmem:[#allocation3 + $0x8] sm:$0xff] %vm241_vm1, %v1137_v0  ;;  %935 = vset.pattern.permute.xlu1 %v1140_v21 }
  0x75   : > { %v497_v12 = vadd.s32 8, %v496_v10  ;;  %vm504_vm2 = vcmp.le.s32.totalorder %v502_v11, %v496_v10  ;;  %936 = vset.pattern.permute.xlu0 %v1140_v21  ;;  %837 = vmatpush3.bf16.msra.mxu1 %v938_v30  ;;  %s670_s22 = sshll.u32 %s237_s20, 4  ;;  %s655_s21 = scalar_lea.sflag [#allocation7], %s1370_s18  ;;  %s1400_s22 = int_to_ptr.vmem [resolvable:$true] %s670_s22 }
  0x76   : > { %v254_v7 = vpack.c.bf16 %v253_v6, %v252_v5  ;;  %s1043_s4 = scalar_lea.vmem %s1400_s22, 128  ;;  %s1141_s15 = smov [#allocation11]  }
  0x77   : > { %vm505_vm4 = vcmp.le.s32.totalorder %v502_v11, %v497_v12  ;;  %p1044_p11 = scmp.ne.s32.totalorder %s1400_s22, %s1043_s4  ;;  %s1047_s29 = sshll.u32 %s1141_s15, 4  ;;  %s1048_s29 = int_to_ptr.vmem [resolvable:$false] %s1047_s29 }
  0x78   : > { %s1049_s11 = scalar_lea.vmem %s1048_s29, 256  ;;  %p1050_p0 = scmp.lt.s32.totalorder %s1400_s22, %s1048_s29 }
  0x79   : > { %p1045_p3 = pnand %p1044_p11, %p1309_p9  ;;  %p1051_p5 = scmp.lt.s32.totalorder %s1049_s11, %s1043_s4 }
  0x7a   : > { %v508_v22 = vld [vmem:[#allocation2] sm:$0xff]  ;;  %v509_v25 = vld [vmem:[#allocation2 + $0x8] sm:$0xff] }
  0x7b   : > { %833 = vmatmul.mubr.bf16.vlgmr.msra.gmra.mrb[0].mxu0 %v254_v7  ;;  %v541_v45 = vld [vmem:[#allocation3] sm:$0xff]  ;;  %v542_v49 = vld [vmem:[#allocation3 + $0x8] sm:$0xff]  ;;  %p1046_p12 = pneg %p1045_p3  ;;  %p1052_p7 = por %p1051_p5, %p1050_p0 }
  0x7d   : > { %p1053_p2 = pnand %p1052_p7, %p1046_p12 }
 0x14e   : > { %v488_v13 = vpop.f32.mrb[0].mxu0 }
 0x14f   : > { %v506_v14 = vsel %vm504_vm2, %v488_v13, -inf  ;;  %v834_v15 = vpop.f32.mrb[1].mxu0 }
 0x150   : > { %v491_v16 = vpop.f32.mrb[2].mxu0  ;;  %v511_v17 = vsel %vm510_vm3, %v506_v14, -inf }
 0x151   : > { %v507_v18 = vsel %vm505_vm4, %v491_v16, -inf  ;;  %512 = vmax.xlane.f32.xlu0 %v511_v17  ;;  %v835_v19 = vpop.f32.mrb[3].mxu0 }
 0x152   : > { %v514_v20 = vsel %vm510_vm3, %v507_v18, -inf }
 0x155   : > { %515 = vmax.xlane.f32.xlu0 %v514_v20 }
 0x1de   : > { %v513_v23 = vpop.xlane.xlu0 %512 }
 0x1df   : > { %v517_v24 = vmax.f32 %v508_v22, %v513_v23 }
 0x1e1   : > { %v519_v26 = vsub.f32 %v508_v22, %v517_v24  ;;  %624 = vst.msk [vmem:[#allocation2] sm:$0xff] %vm241_vm1, %v517_v24  ;;  %527 = vperm.xlu1 %935, %v517_v24  }
 0x1e2   : > { %v516_v27 = vpop.xlane.xlu0 %515 }
 0x1e3   : > { %v518_v28 = vmax.f32 %v509_v25, %v516_v27  ;;  %v521_v42 = vmul.f32 1.442695, %v519_v26 }
 0x1e5   : > { %v520_v29 = vsub.f32 %v509_v25, %v518_v28  ;;  %625 = vst.msk [vmem:[#allocation2 + $0x8] sm:$0xff] %vm241_vm1, %v518_v28  ;;  %532 = vperm.xlu1 %935, %v518_v28  }
 0x1e7   : > { %v523_v43 = vmul.f32 1.442695, %v520_v29 }
 0x260   : > { %v528_v31 = vpop.permute.xlu1 %527 }
 0x261   : > { %v535_v32 = vsub.f32 %v506_v14, %v528_v31 }
 0x263   : > { %v537_v33 = vmul.f32 1.442695, %v535_v32 }
 0x264   : > { %v533_v34 = vpop.permute.xlu1 %532 }
 0x265   : > { %939 = vpow2.f32 %v537_v33  ;;  %v536_v35 = vsub.f32 %v507_v18, %v533_v34 }
 0x267   : > { %v539_v36 = vmul.f32 1.442695, %v536_v35 }
 0x269   : > { %941 = vpow2.f32 %v539_v36 }
 0x26a   : > { %943 = vpow2.f32 %v521_v42 }
 0x26b   : > { %945 = vpow2.f32 %v523_v43 }
 0x26f   : > { %v940_v37 = vpop.eup %939 }
 0x270   : > { %v545_v38 = vsel %vm510_vm3, %v940_v37, 0.0 }
 0x271   : > { %546 = vadd.xlane.f32.xlu0 %v545_v38 }
 0x273   : > { %v942_v39 = vpop.eup %941 }
 0x274   : > { %v548_v40 = vsel %vm510_vm3, %v942_v39, 0.0  ;;  %v569_v41 = vpack.c.bf16 %v942_v39, %v940_v37  ;;  %v944_v44 = vpop.eup %943 }
 0x275   : > { %549 = vadd.xlane.f32.xlu1 %v548_v40  ;;  %v543_v46 = vmul.f32 %v944_v44, %v541_v45  ;;  %v946_v47 = vpop.eup %945 }
 0x276   : > { %839 = vmatmul.mubr.msk.bf16.vlgmr.msra.gmra.mrb[0].mxu1 %vm510_vm3, %v569_v41  ;;  %v544_v51 = vmul.f32 %v946_v47, %v542_v49 }
 0x2fe   : > { %v547_v48 = vpop.xlane.xlu0 %546 }
 0x2ff   : > { %v551_v50 = vadd.f32 %v547_v48, %v543_v46 }
 0x301   : > { %553 = vst.msk [vmem:[#allocation3] sm:$0xff] %vm241_vm1, %v551_v50 }
 0x302   : > { %v550_v52 = vpop.xlane.xlu1 %549 }
 0x303   : > { %v552_v53 = vadd.f32 %v550_v52, %v544_v51 }
 0x305   : > { %554 = vst.msk [vmem:[#allocation3 + $0x8] sm:$0xff] %vm241_vm1, %v552_v53 }
 0x308   : > { %v628_v54 = vld [vmem:[#allocation3] sm:$0xff] }
 0x309   : > { %632 = vperm.xlu0 %936, %v628_v54  }
 0x30c   : > { %v629_v55 = vld [vmem:[#allocation3 + $0x8] sm:$0xff] }
 0x30d   : > { %637 = vperm.xlu1 %935, %v629_v55   ;;  %559 = vperm.xlu0 %936, %v944_v44  }
 0x311   : > { %564 = vperm.xlu0 %936, %v946_v47  }
 0x349   : > { %v613_v56 = vpop.f32.mrb[0].mxu1 }
 0x34a   : > { %v840_v57 = vpop.f32.mrb[1].mxu1 }
 0x34b   : > { %v616_v58 = vpop.f32.mrb[2].mxu1 }
 0x34c   : > { %v841_v59 = vpop.f32.mrb[3].mxu1 }
 0x388   : > { %v633_v60 = vpop.permute.xlu0 %632 }
 0x389   : > { %947 = vrcp.f32 %v633_v60 }
 0x38c   : > { %v638_v61 = vpop.permute.xlu1 %637  ;;  %v560_v62 = vpop.permute.xlu0 %559 }
 0x38d   : > { %949 = vrcp.f32 %v638_v61  ;;  %v567_v0 = vmul.f32 0.0, %v560_v62 }
 0x38f   : > { %v620_v3 = vadd.f32 %v613_v56, %v567_v0 }
 0x390   : > { %v565_v63 = vpop.permute.xlu0 %564 }
 0x391   : > { %v568_v1 = vmul.f32 0.0, %v565_v63 }
 0x393   : > { %v948_v2 = vpop.eup %947  ;;  %v621_v4 = vadd.f32 %v616_v58, %v568_v1 }
 0x394   : > { %v641_v6 = vmul.f32 %v948_v2, %v620_v3 }
 0x397   : > { %v950_v5 = vpop.eup %949 }
 0x398   : > { %v643_v7 = vmul.f32 %v950_v5, %v621_v4 }
 0x39a   : > { %v824_v8 = vpack.c.bf16 %v643_v7, %v641_v6 }
 0x39c   : > { %825 = vst [vmem:[%s237_s20] sm:$0xff] %v824_v8  }
 0x39d   : > { %1056 = shalt.err (!%p1053_p2)
}
 0x39e   : > { %s1057_s6 = scalar_lea.hbm %s1405_s9, 128  ;;  %s1061_s24 = scalar_lea.hbm %s1457_s3, 256 }
 0x39f   : > { %p1058_p8 = scmp.ne.s32.totalorder %s1405_s9, %s1057_s6  ;;  %p1062_p1 = scmp.lt.u32.totalorder %s1405_s9, %s1457_s3 }
 0x3a0   : > { %p1063_p6 = scmp.lt.u32.totalorder %s1061_s24, %s1057_s6  ;;  %p1065_p11 = scmp.lt.u32.totalorder %s1057_s6, %s1405_s9 }
 0x3a1   : > { %p1059_p13 = pnand %p1058_p8, %p1309_p9 }
 0x3a2   : > { %p1064_p10 = por %p1063_p6, %p1062_p1 }
 0x3a3   : > { %p1060_p4 = pneg %p1059_p13 }
 0x3a4   : > { %p1066_p3 = por %p1065_p11, %p1064_p10 }
 0x3a6   : > { %p1067_p12 = pnand %p1066_p3, %p1060_p4 }
 0x3a8   : > { %1070 = shalt.err (!%p1067_p12)
}
 0x3a9   : > { %s1142_s20 = smov 64   ;;  %s1143_s27 = smov 128  }
 0x3aa   : > { %s1144_s5 = smov 4  }
 0x3ab   : > { %852 = dma.vmem_to_hbm [thread:$0]  (%p1309_p9), %s1400_s22, 128, %s1405_s9, %s655_s21, %s1142_s20, %s1143_s27, %s1144_s5  }
 0x3ac PF: > { %s685_s7 = sand.u32 1, %s1109_s12   ;;  %p1474_p0 = scmp.ne.s32.totalorder %s1465_s23, 0 }
 0x3ad   : > { %p1475_p5 = scmp.ge.s32.totalorder %s1129_s17, 2  ;;  %s686_s4 = scalar_lea.sflag [#allocation7], %s685_s7 }
 0x3af   : > { %p866_p7 = pnand %p1475_p5, %p1474_p0 }
 0x3b1   : > { %1104 = dma.done.wait (!%p866_p7), %s686_s4, 128  }
 0x3b2   : > { %1106 = vsyncadd (!%p866_p7), %s686_s4, 4294967168  ;;  %s20_s17 = sadd.s32 1, %s1129_s17   ;;  %s1476_s12 = smov %s1113_s13 }
 0x3b3   : > { %p17_p2 = scmp.ge.s32.totalorder %s20_s17, 4   ;;  %s1477_s13 = smov %s1117_s14 }
 0x3b4   : > { %s1478_s14 = smov %s1321_s19  ;;  %s1479_s15 = smov %s1125_s16 }
 0x3b5   : > { %s1480_s16 = smov %s1482_s10  ;;  %19 = sbr.rel (!%p17_p2) target bundleno = 7 (0x7), region = 109 }
 0x3bc   :  { %691 = vsyncpa [#allocation6], 1 }
 0x3bd   :  { %693 = vsyncpa [#allocation6 + $0x1], 1 }
 0x3be   :  { %694 = vsyncpa [#allocation9], 1 }
 0x3bf   :  { %695 = vsyncpa [#allocation7], 1 }
 0x3c0   :  { %697 = vsyncpa [#allocation7 + $0x1], 1 }

// kernel: gpt_bigcode_forward.14
= control target key start
LH: loop header
LB: loop body
LE: loop exit
PB: predicated region body
PF: predicated region fallthrough
CT: control target
= control target key end

     0   :  { %10 = vsyncpa [#allocation4], 0  ;;  %s1338_s0 = inlined_call_operand.hbm [shape: bf16[16,256], index: 0, kind: input, shape index: {}]   ;;  %s1339_s1 = inlined_call_operand.hbm [shape: f32[1,256], index: 1, kind: input, shape index: {}]   ;;  %s1340_s2 = inlined_call_operand.hbm [shape: f32[1,256], index: 2, kind: input, shape index: {}]   ;;  %s1341_s3 = inlined_call_operand.hbm [shape: bf16[256,512], index: 3, kind: input, shape index: {}]   ;;  %s1342_s4 = inlined_call_operand.hbm [shape: f32[1,512], index: 4, kind: input, shape index: {}]   ;;  %s1343_s5 = inlined_call_operand.hbm [shape: bf16[16,512], index: 5, kind: output, shape index: {}]  }
   0x1   :  { %11 = vsyncpa [#allocation7], 0 }
   0x2   :  { %12 = vsyncpa [#allocation10], 0 }
   0x3   :  { %13 = vsyncpa [#allocation5], 0  ;;  %s1113_s18 = smov [#allocation6]   ;;  %s1114_s20 = smov [#allocation9]  }
   0x4   :  { %s32_s19 = sshll.u32 %s1113_s18, 4  ;;  %s51_s21 = sshll.u32 %s1114_s20, 4  ;;  %s33_s19 = int_to_ptr.vmem [resolvable:$true] %s32_s19  ;;  %s1153_s21 = int_to_ptr.vmem [resolvable:$true] %s51_s21 }
   0x5   :  { %s973_s24 = scalar_lea.hbm %s1339_s1, 32 }
   0x6   :  { %p974_p0 = scmp.ne.s32.totalorder %s1339_s1, %s973_s24  ;;  %p977_p1 = scmp.lt.u32.totalorder %s973_s24, %s1339_s1 }
   0x8   :  { %p979_p2 = pnand %p977_p1, %p974_p0 }
   0xa   :  { %982 = shalt.err (!%p979_p2)
}
   0xb   :  { %s983_s29 = scalar_lea.vmem %s33_s19, 32  ;;  %p988_p4 = scmp.lt.s32.totalorder %s33_s19, %s33_s19 }
   0xc   :  { %p984_p3 = scmp.ne.s32.totalorder %s33_s19, %s983_s29  ;;  %p989_p5 = scmp.lt.s32.totalorder %s983_s29, %s983_s29 }
   0xe   :  { %p990_p6 = por %p989_p5, %p988_p4 }
  0x10   :  { %p991_p7 = pnand %p990_p6, %p984_p3 }
  0x12   :  { %994 = shalt.err (!%p991_p7)
}
  0x13   :  { %35 = dma.hbm_to_vmem [thread:$0]  %s1339_s1, 32, %s33_s19, [#allocation7]  }
  0x14   :  { %s995_s9 = scalar_lea.hbm %s1341_s3, 8192 }
  0x15   :  { %p996_p8 = scmp.ne.s32.totalorder %s1341_s3, %s995_s9  ;;  %p999_p9 = scmp.lt.u32.totalorder %s995_s9, %s1341_s3 }
  0x17   :  { %p1001_p10 = pnand %p999_p9, %p996_p8 }
  0x19   :  { %1004 = shalt.err (!%p1001_p10)
}
  0x1a   :  { %s1005_s14 = scalar_lea.vmem %s1153_s21, 8192  ;;  %p1010_p12 = scmp.lt.s32.totalorder %s1153_s21, %s1153_s21 }
  0x1b   :  { %p1006_p11 = scmp.ne.s32.totalorder %s1153_s21, %s1005_s14  ;;  %p1011_p13 = scmp.lt.s32.totalorder %s1005_s14, %s1005_s14 }
  0x1d   :  { %p1012_p0 = por %p1011_p13, %p1010_p12 }
  0x1f   :  { %p1013_p1 = pnand %p1012_p0, %p1006_p11 }
  0x21   :  { %1016 = shalt.err (!%p1013_p1)
}
  0x22   :  { %s1115_s1 = smov 256   ;;  %s1116_s15 = smov 16  }
  0x23   :  { %57 = dma.hbm_to_vmem [thread:$0]  %s1341_s3, 8192, %s1153_s21, [#allocation10], %s1115_s1, %s1115_s1, %s1116_s15  }
  0x24   :  { %s1117_s18 = smov [#allocation3]   ;;  %s1017_s23 = scalar_lea.hbm %s1338_s0, 256 }
  0x25   :  { %s19_s19 = sshll.u32 %s1117_s18, 4  ;;  %p1018_p2 = scmp.ne.s32.totalorder %s1338_s0, %s1017_s23  ;;  %s20_s19 = int_to_ptr.vmem [resolvable:$true] %s19_s19 }
  0x26   :  { %p1021_p3 = scmp.lt.u32.totalorder %s1017_s23, %s1338_s0 }
  0x28   :  { %p1023_p4 = pnand %p1021_p3, %p1018_p2 }
  0x2a   :  { %1026 = shalt.err (!%p1023_p4)
}
  0x2b   :  { %s1027_s28 = scalar_lea.vmem %s20_s19, 256  ;;  %p1032_p6 = scmp.lt.s32.totalorder %s20_s19, %s20_s19 }
  0x2c   :  { %p1028_p5 = scmp.ne.s32.totalorder %s20_s19, %s1027_s28  ;;  %p1033_p7 = scmp.lt.s32.totalorder %s1027_s28, %s1027_s28 }
  0x2e   :  { %p1034_p8 = por %p1033_p7, %p1032_p6 }
  0x30   :  { %p1035_p9 = pnand %p1034_p8, %p1028_p5 }
  0x32   :  { %1038 = shalt.err (!%p1035_p9)
}
  0x33   :  { %s1118_s3 = smov 128   ;;  %s1119_s21 = smov 8  }
  0x34   :  { %25 = dma.hbm_to_vmem [thread:$0]  %s1338_s0, 256, %s20_s19, [#allocation4], %s1118_s3, %s1118_s3, %s1119_s21  }
  0x35   :  { %s1120_s6 = smov [#allocation8]   ;;  %s1121_s8 = smov [#allocation11]  }
  0x36   :  { %s42_s7 = sshll.u32 %s1120_s6, 4  ;;  %s64_s9 = sshll.u32 %s1121_s8, 4  ;;  %s43_s7 = int_to_ptr.vmem [resolvable:$true] %s42_s7  ;;  %s65_s9 = int_to_ptr.vmem [resolvable:$true] %s64_s9 }
  0x37   :  { %s1039_s12 = scalar_lea.hbm %s1340_s2, 32 }
  0x38   :  { %p1040_p10 = scmp.ne.s32.totalorder %s1340_s2, %s1039_s12  ;;  %p1043_p11 = scmp.lt.u32.totalorder %s1039_s12, %s1340_s2 }
  0x3a   :  { %p1045_p12 = pnand %p1043_p11, %p1040_p10 }
  0x3c   :  { %1048 = shalt.err (!%p1045_p12)
}
  0x3d   :  { %s1049_s0 = scalar_lea.vmem %s43_s7, 32  ;;  %p1054_p0 = scmp.lt.s32.totalorder %s43_s7, %s43_s7 }
  0x3e   :  { %p1050_p13 = scmp.ne.s32.totalorder %s43_s7, %s1049_s0  ;;  %p1055_p1 = scmp.lt.s32.totalorder %s1049_s0, %s1049_s0 }
  0x40   :  { %p1056_p2 = por %p1055_p1, %p1054_p0 }
  0x42   :  { %p1057_p3 = pnand %p1056_p2, %p1050_p13 }
  0x44   :  { %1060 = shalt.err (!%p1057_p3)
}
  0x45   :  { %45 = dma.hbm_to_vmem [thread:$0]  %s1340_s2, 32, %s43_s7, [#allocation7]  }
  0x46   :  { %s1061_s23 = scalar_lea.hbm %s1342_s4, 64 }
  0x47   :  { %p1062_p4 = scmp.ne.s32.totalorder %s1342_s4, %s1061_s23  ;;  %p1065_p5 = scmp.lt.u32.totalorder %s1061_s23, %s1342_s4 }
  0x49   :  { %p1067_p6 = pnand %p1065_p5, %p1062_p4 }
  0x4b   :  { %1070 = shalt.err (!%p1067_p6)
}
  0x4c   :  { %s1071_s28 = scalar_lea.vmem %s65_s9, 64  ;;  %p1076_p8 = scmp.lt.s32.totalorder %s65_s9, %s65_s9 }
  0x4d   :  { %p1072_p7 = scmp.ne.s32.totalorder %s65_s9, %s1071_s28  ;;  %p1077_p9 = scmp.lt.s32.totalorder %s1071_s28, %s1071_s28 }
  0x4f   :  { %p1078_p10 = por %p1077_p9, %p1076_p8 }
  0x51   :  { %p1079_p11 = pnand %p1078_p10, %p1072_p7 }
  0x53   :  { %1082 = shalt.err (!%p1079_p11)
}
  0x54   :  { %67 = dma.hbm_to_vmem [thread:$0]  %s1342_s4, 64, %s65_s9, [#allocation10]  }
  0x55   :  { %1105 = dma.done.wait [#allocation4], 256  }
  0x56   :  { %1106 = vsyncadd [#allocation4], 4294967040 }
  0x57   :  { %1107 = dma.done.wait [#allocation7], 64  }
  0x58   :  { %1108 = vsyncadd [#allocation7], 4294967232 }
  0x59   :  { %1109 = dma.done.wait [#allocation10], 8256  }
  0x5a   :  { %1110 = vsyncadd [#allocation10], 4294959040  ;;  %v1223_v0 = vld [vmem:[#allocation3] sm:$0xff]  ;;  %v1225_v1 = vld [vmem:[#allocation3 + $0x8] sm:$0xff]  ;;  %s1122_s4 = smov [#allocation12]  }
  0x5b   :  { %v89_v2 = vunpack.c.l.bf16 %v1223_v0  ;;  %v90_v3 = vunpack.c.h.bf16 %v1223_v0  ;;  %v91_v4 = vunpack.c.l.bf16 %v1225_v1  ;;  %v92_v5 = vunpack.c.h.bf16 %v1225_v1  ;;  %v857_v8 = vld [vmem:[#allocation9 + $0x4] ss:$16 sps:$4 sm:$0xff]   ;;  %v859_v9 = vld [vmem:[#allocation9 + $0xc] ss:$16 sps:$4 sm:$0xff]   ;;  %v861_v10 = vld [vmem:[#allocation9] ss:$16 sps:$4 sm:$0xff]  }
  0x5c   :  { %v862_v11 = vld [vmem:[#allocation9 + $0x8] ss:$16 sps:$4 sm:$0xff]   ;;  %v863_v12 = vld [vmem:[#allocation9 + $0x24] ss:$16 sps:$4 sm:$0xff]   ;;  %v865_v13 = vld [vmem:[#allocation9 + $0x2c] ss:$16 sps:$4 sm:$0xff]   ;;  %570 = vmatprep.subr.bf16.mxu0 %v857_v8  ;;  %613 = vmatprep.subr.bf16.mxu1 %v859_v9 }
  0x5d   :  { %v93_v6 = vadd.f32 %v90_v3, %v89_v2  ;;  %v96_v7 = vadd.f32 %v92_v5, %v91_v4  ;;  %571 = vmatpush1.bf16.msra.mxu0 %v861_v10  ;;  %614 = vmatpush1.bf16.msra.mxu1 %v862_v11  ;;  %v867_v14 = vld [vmem:[#allocation9 + $0x20] ss:$16 sps:$4 sm:$0xff]   ;;  %v868_v15 = vld [vmem:[#allocation9 + $0x28] ss:$16 sps:$4 sm:$0xff]   ;;  %v869_v16 = vld [vmem:[#allocation9 + $0x44] ss:$16 sps:$4 sm:$0xff]  }
  0x5e   :  { %572 = vmatprep.subr.bf16.mxu0 %v863_v12  ;;  %615 = vmatprep.subr.bf16.mxu1 %v865_v13  ;;  %v871_v17 = vld [vmem:[#allocation9 + $0x4c] ss:$16 sps:$4 sm:$0xff]   ;;  %v873_v18 = vld [vmem:[#allocation9 + $0x40] ss:$16 sps:$4 sm:$0xff]   ;;  %v874_v19 = vld [vmem:[#allocation9 + $0x48] ss:$16 sps:$4 sm:$0xff]  }
  0x5f   :  { %94 = vadd.xlane.f32.xlu0 %v93_v6  ;;  %v875_v20 = vld [vmem:[#allocation9 + $0x64] ss:$16 sps:$4 sm:$0xff]   ;;  %v877_v21 = vld [vmem:[#allocation9 + $0x6c] ss:$16 sps:$4 sm:$0xff]   ;;  %v879_v22 = vld [vmem:[#allocation9 + $0x60] ss:$16 sps:$4 sm:$0xff]  }
  0x60   :  { %v880_v23 = vld [vmem:[#allocation9 + $0x68] ss:$16 sps:$4 sm:$0xff]   ;;  %v881_v24 = vld [vmem:[#allocation9 + $0x84] ss:$16 sps:$4 sm:$0xff]   ;;  %v883_v25 = vld [vmem:[#allocation9 + $0x8c] ss:$16 sps:$4 sm:$0xff]  }
  0x61   :  { %573 = vmatpush1.bf16.msra.mxu0 %v867_v14  ;;  %616 = vmatpush1.bf16.msra.mxu1 %v868_v15  ;;  %v885_v26 = vld [vmem:[#allocation9 + $0x80] ss:$16 sps:$4 sm:$0xff]   ;;  %v886_v27 = vld [vmem:[#allocation9 + $0x88] ss:$16 sps:$4 sm:$0xff]   ;;  %v887_v28 = vld [vmem:[#allocation9 + $0xa4] ss:$16 sps:$4 sm:$0xff]  }
  0x62   :  { %574 = vmatprep.subr.bf16.mxu0 %v869_v16  ;;  %617 = vmatprep.subr.bf16.mxu1 %v871_v17  ;;  %v889_v29 = vld [vmem:[#allocation9 + $0xac] ss:$16 sps:$4 sm:$0xff]   ;;  %v891_v30 = vld [vmem:[#allocation9 + $0xa0] ss:$16 sps:$4 sm:$0xff]   ;;  %v892_v31 = vld [vmem:[#allocation9 + $0xa8] ss:$16 sps:$4 sm:$0xff]  }
  0x63   :  { %97 = vadd.xlane.f32.xlu0 %v96_v7  ;;  %v893_v32 = vld [vmem:[#allocation9 + $0xc4] ss:$16 sps:$4 sm:$0xff]   ;;  %v895_v33 = vld [vmem:[#allocation9 + $0xcc] ss:$16 sps:$4 sm:$0xff]   ;;  %v897_v34 = vld [vmem:[#allocation9 + $0xc0] ss:$16 sps:$4 sm:$0xff]  }
  0x64   :  { %v898_v35 = vld [vmem:[#allocation9 + $0xc8] ss:$16 sps:$4 sm:$0xff]   ;;  %v899_v36 = vld [vmem:[#allocation9 + $0xe4] ss:$16 sps:$4 sm:$0xff]   ;;  %v901_v37 = vld [vmem:[#allocation9 + $0xec] ss:$16 sps:$4 sm:$0xff]  }
  0x65   :  { %575 = vmatpush1.bf16.msra.mxu0 %v873_v18  ;;  %618 = vmatpush1.bf16.msra.mxu1 %v874_v19  ;;  %v903_v38 = vld [vmem:[#allocation9 + $0xe0] ss:$16 sps:$4 sm:$0xff]   ;;  %v904_v39 = vld [vmem:[#allocation9 + $0xe8] ss:$16 sps:$4 sm:$0xff]   ;;  %v905_v40 = vld [vmem:[#allocation9 + $0x104] ss:$16 sps:$4 sm:$0xff]  }
  0x66   :  { %576 = vmatprep.subr.bf16.mxu0 %v875_v20  ;;  %619 = vmatprep.subr.bf16.mxu1 %v877_v21  ;;  %v907_v41 = vld [vmem:[#allocation9 + $0x10c] ss:$16 sps:$4 sm:$0xff]   ;;  %v909_v42 = vld [vmem:[#allocation9 + $0x100] ss:$16 sps:$4 sm:$0xff]   ;;  %v910_v43 = vld [vmem:[#allocation9 + $0x108] ss:$16 sps:$4 sm:$0xff]  }
  0x67   :  { %v911_v58 = vld [vmem:[#allocation9 + $0x124] ss:$16 sps:$4 sm:$0xff]   ;;  %v913_v59 = vld [vmem:[#allocation9 + $0x12c] ss:$16 sps:$4 sm:$0xff]   ;;  %v915_v60 = vld [vmem:[#allocation9 + $0x120] ss:$16 sps:$4 sm:$0xff]  }
  0x68   :  { %v916_v61 = vld [vmem:[#allocation9 + $0x128] ss:$16 sps:$4 sm:$0xff]   ;;  %v917_v62 = vld [vmem:[#allocation9 + $0x144] ss:$16 sps:$4 sm:$0xff]   ;;  %v919_v63 = vld [vmem:[#allocation9 + $0x14c] ss:$16 sps:$4 sm:$0xff]  }
  0x69   :  { %577 = vmatpush1.bf16.msra.mxu0 %v879_v22  ;;  %620 = vmatpush1.bf16.msra.mxu1 %v880_v23  ;;  %v921_v0 = vld [vmem:[#allocation9 + $0x140] ss:$16 sps:$4 sm:$0xff]   ;;  %v922_v1 = vld [vmem:[#allocation9 + $0x148] ss:$16 sps:$4 sm:$0xff]   ;;  %v929_v6 = vld [vmem:[#allocation9 + $0x184] ss:$16 sps:$4 sm:$0xff]  }
  0x6a   :  { %578 = vmatprep.subr.bf16.mxu0 %v881_v24  ;;  %621 = vmatprep.subr.bf16.mxu1 %v883_v25  ;;  %v931_v7 = vld [vmem:[#allocation9 + $0x18c] ss:$16 sps:$4 sm:$0xff]   ;;  %v933_v8 = vld [vmem:[#allocation9 + $0x180] ss:$16 sps:$4 sm:$0xff]   ;;  %v934_v9 = vld [vmem:[#allocation9 + $0x188] ss:$16 sps:$4 sm:$0xff]  }
  0x6b   :  { %v935_v10 = vld [vmem:[#allocation9 + $0x1a4] ss:$16 sps:$4 sm:$0xff]   ;;  %v937_v11 = vld [vmem:[#allocation9 + $0x1ac] ss:$16 sps:$4 sm:$0xff]   ;;  %v939_v12 = vld [vmem:[#allocation9 + $0x1a0] ss:$16 sps:$4 sm:$0xff]  }
  0x6c   :  { %v940_v13 = vld [vmem:[#allocation9 + $0x1a8] ss:$16 sps:$4 sm:$0xff]   ;;  %v941_v14 = vld [vmem:[#allocation9 + $0x1c4] ss:$16 sps:$4 sm:$0xff]   ;;  %v943_v15 = vld [vmem:[#allocation9 + $0x1cc] ss:$16 sps:$4 sm:$0xff]  }
  0x6d   :  { %579 = vmatpush1.bf16.msra.mxu0 %v885_v26  ;;  %622 = vmatpush1.bf16.msra.mxu1 %v886_v27  ;;  %v945_v16 = vld [vmem:[#allocation9 + $0x1c0] ss:$16 sps:$4 sm:$0xff]   ;;  %v946_v17 = vld [vmem:[#allocation9 + $0x1c8] ss:$16 sps:$4 sm:$0xff]   ;;  %v947_v18 = vld [vmem:[#allocation9 + $0x1e4] ss:$16 sps:$4 sm:$0xff]   ;;  %v128_v26 = vlaneseq }
  0x6e   :  { %580 = vmatprep.subr.bf16.mxu0 %v887_v28  ;;  %623 = vmatprep.subr.bf16.mxu1 %v889_v29  ;;  %v949_v19 = vld [vmem:[#allocation9 + $0x1ec] ss:$16 sps:$4 sm:$0xff]   ;;  %v951_v20 = vld [vmem:[#allocation9 + $0x1e0] ss:$16 sps:$4 sm:$0xff]   ;;  %v952_v21 = vld [vmem:[#allocation9 + $0x1e8] ss:$16 sps:$4 sm:$0xff]  }
  0x6f   :  { %v129_v29 = vshrl.u32 %v128_v26, 7  ;;  %s761_s21 = sshll.u32 %s1122_s4, 4  ;;  %s762_s21 = int_to_ptr.vmem [resolvable:$true] %s761_s21 }
  0x70   :  { %s1083_s29 = scalar_lea.vmem %s762_s21, 512  ;;  %p1088_p13 = scmp.lt.s32.totalorder %s762_s21, %s762_s21 }
  0x71   :  { %581 = vmatpush1.bf16.msra.mxu0 %v891_v30  ;;  %624 = vmatpush1.bf16.msra.mxu1 %v892_v31  ;;  %v130_v30 = vsub.s32 0, %v129_v29  ;;  %v134_v31 = vsub.s32 1, %v129_v29  ;;  %p1084_p12 = scmp.ne.s32.totalorder %s762_s21, %s1083_s29  ;;  %p1089_p0 = scmp.lt.s32.totalorder %s1083_s29, %s1083_s29 }
  0x72   :  { %582 = vmatprep.subr.bf16.mxu0 %v893_v32  ;;  %625 = vmatprep.subr.bf16.mxu1 %v895_v33  ;;  %v126_v32 = vld [vmem:[#allocation6] sm:$0x3] }
  0x73   :  { %p1090_p1 = por %p1089_p0, %p1088_p13 }
  0x75   :  { %583 = vmatpush1.bf16.msra.mxu0 %v897_v34  ;;  %626 = vmatpush1.bf16.msra.mxu1 %v898_v35  ;;  %v131_v35 = vrot.slane %v126_v32, %v130_v30  ;;  %p1091_p2 = pnand %p1090_p1, %p1084_p12 }
  0x76   :  { %584 = vmatprep.subr.bf16.mxu0 %v899_v36  ;;  %627 = vmatprep.subr.bf16.mxu1 %v901_v37  ;;  %v135_v36 = vrot.slane %v126_v32, %v134_v31  ;;  %v142_v37 = vld [vmem:[#allocation8] sm:$0x3] }
  0x79   :  { %585 = vmatpush1.bf16.msra.mxu0 %v903_v38  ;;  %628 = vmatpush1.bf16.msra.mxu1 %v904_v39 }
  0x7a   :  { %586 = vmatprep.subr.bf16.mxu0 %v905_v40  ;;  %629 = vmatprep.subr.bf16.mxu1 %v907_v41  ;;  %v147_v40 = vrot.slane %v142_v37, %v130_v30  ;;  %v151_v41 = vrot.slane %v142_v37, %v134_v31 }
  0x7d   :  { %587 = vmatpush1.bf16.msra.mxu0 %v909_v42  ;;  %630 = vmatpush1.bf16.msra.mxu1 %v910_v43 }
  0x7e   :  { %588 = vmatprep.subr.bf16.mxu0 %v911_v58  ;;  %631 = vmatprep.subr.bf16.mxu1 %v913_v59  ;;  %v244_v58 = vsub.s32 3, %v129_v29 }
  0x81   :  { %589 = vmatpush1.bf16.msra.mxu0 %v915_v60  ;;  %632 = vmatpush1.bf16.msra.mxu1 %v916_v61 }
  0x82   :  { %590 = vmatprep.subr.bf16.mxu0 %v917_v62  ;;  %633 = vmatprep.subr.bf16.mxu1 %v919_v63 }
  0x85   :  { %591 = vmatpush1.bf16.msra.mxu0 %v921_v0  ;;  %634 = vmatpush1.bf16.msra.mxu1 %v922_v1 }
  0xec   :  { %v95_v44 = vpop.xlane.xlu0 %94 }
  0xed   :  { %v100_v45 = vmul.f32 0.00390625, %v95_v44 }
  0xef   :  { %v1241_v46 = vsub.f32 %v89_v2, %v100_v45  ;;  %v1245_v47 = vsub.f32 %v90_v3, %v100_v45  ;;  %v923_v2 = vld [vmem:[#allocation9 + $0x164] ss:$16 sps:$4 sm:$0xff]   ;;  %v925_v3 = vld [vmem:[#allocation9 + $0x16c] ss:$16 sps:$4 sm:$0xff]  }
  0xf0   :  { %v98_v48 = vpop.xlane.xlu0 %97  ;;  %592 = vmatprep.subr.bf16.mxu0 %v923_v2  ;;  %635 = vmatprep.subr.bf16.mxu1 %v925_v3 }
  0xf1   :  { %v101_v49 = vmul.f32 0.00390625, %v98_v48  ;;  %v106_v50 = vmul.f32 %v1241_v46, %v1241_v46  ;;  %v107_v51 = vmul.f32 %v1245_v47, %v1245_v47 }
  0xf3   :  { %v1253_v52 = vsub.f32 %v91_v4, %v101_v49  ;;  %v1257_v53 = vsub.f32 %v92_v5, %v101_v49  ;;  %v110_v54 = vadd.f32 %v107_v51, %v106_v50  ;;  %v927_v4 = vld [vmem:[#allocation9 + $0x160] ss:$16 sps:$4 sm:$0xff]   ;;  %v928_v5 = vld [vmem:[#allocation9 + $0x168] ss:$16 sps:$4 sm:$0xff]  }
  0xf4   :  { %593 = vmatpush1.bf16.msra.mxu0 %v927_v4  ;;  %636 = vmatpush1.bf16.msra.mxu1 %v928_v5 }
  0xf5   :  { %111 = vadd.xlane.f32.xlu1 %v110_v54  ;;  %v108_v55 = vmul.f32 %v1253_v52, %v1253_v52  ;;  %v109_v56 = vmul.f32 %v1257_v53, %v1257_v53  ;;  %594 = vmatprep.subr.bf16.mxu0 %v929_v6 }
  0xf6   :  { %637 = vmatprep.subr.bf16.mxu1 %v931_v7 }
  0xf7   :  { %v113_v57 = vadd.f32 %v109_v56, %v108_v55 }
  0xf8   :  { %595 = vmatpush1.bf16.msra.mxu0 %v933_v8  ;;  %638 = vmatpush1.bf16.msra.mxu1 %v934_v9 }
  0xf9   :  { %114 = vadd.xlane.f32.xlu1 %v113_v57  ;;  %596 = vmatprep.subr.bf16.mxu0 %v935_v10  ;;  %v228_v57 = vld [vmem:[#allocation11] sm:$0xf] }
  0xfa   :  { %639 = vmatprep.subr.bf16.mxu1 %v937_v11  ;;  %v237_v60 = vrot.slane %v228_v57, %v134_v31 }
  0xfc   :  { %597 = vmatpush1.bf16.msra.mxu0 %v939_v12  ;;  %640 = vmatpush1.bf16.msra.mxu1 %v940_v13 }
  0xfd   :  { %598 = vmatprep.subr.bf16.mxu0 %v941_v14  ;;  %641 = vmatprep.subr.bf16.mxu1 %v943_v15 }
 0x100   :  { %599 = vmatpush1.bf16.msra.mxu0 %v945_v16  ;;  %642 = vmatpush1.bf16.msra.mxu1 %v946_v17 }
 0x101   :  { %600 = vmatprep.subr.bf16.mxu0 %v947_v18  ;;  %643 = vmatprep.subr.bf16.mxu1 %v949_v19 }
 0x104   :  { %601 = vmatpush1.bf16.msra.mxu0 %v951_v20  ;;  %644 = vmatpush1.bf16.msra.mxu1 %v952_v21 }
 0x182   :  { %v112_v22 = vpop.xlane.xlu1 %111 }
 0x183   :  { %v116_v23 = vmul.f32 0.00390625, %v112_v22 }
 0x185   :  { %v118_v24 = vadd.f32 1e-05, %v116_v23 }
 0x186   :  { %v115_v25 = vpop.xlane.xlu1 %114 }
 0x187   :  { %953 = vrsqrt.f32 %v118_v24  ;;  %v117_v27 = vmul.f32 0.00390625, %v115_v25 }
 0x189   :  { %v119_v28 = vadd.f32 1e-05, %v117_v27 }
 0x18b   :  { %955 = vrsqrt.f32 %v119_v28 }
 0x191   :  { %v954_v33 = vpop.eup %953 }
 0x192   :  { %v123_v34 = vmul.f32 %v954_v33, %v1245_v47  ;;  %v122_v38 = vmul.f32 %v954_v33, %v1241_v46  ;;  %v240_v46 = vsub.s32 2, %v129_v29 }
 0x194   :  { %v139_v43 = vmul.f32 %v135_v36, %v123_v34  ;;  %v138_v45 = vmul.f32 %v131_v35, %v122_v38  ;;  %v241_v59 = vrot.slane %v228_v57, %v240_v46 }
 0x195   :  { %v956_v39 = vpop.eup %955 }
 0x196   :  { %v125_v42 = vmul.f32 %v956_v39, %v1257_v53  ;;  %v124_v44 = vmul.f32 %v956_v39, %v1253_v52  ;;  %v155_v50 = vadd.f32 %v151_v41, %v139_v43  ;;  %v154_v54 = vadd.f32 %v147_v40, %v138_v45 }
 0x197   :  { %v233_v53 = vrot.slane %v228_v57, %v130_v30  ;;  %v245_v52 = vrot.slane %v228_v57, %v244_v58 }
 0x198   :  { %v141_v48 = vmul.f32 %v135_v36, %v125_v42  ;;  %v140_v49 = vmul.f32 %v131_v35, %v124_v44 }
 0x19a   :  { %v157_v51 = vadd.f32 %v151_v41, %v141_v48  ;;  %v156_v47 = vadd.f32 %v147_v40, %v140_v49 }
 0x19c   :  { %v159_v55 = vpack.c.bf16 %v157_v51, %v155_v50  ;;  %v158_v56 = vpack.c.bf16 %v156_v47, %v154_v54 }
 0x19e   :  { %602 = vmatprep.mubr.bf16.mxu0 %v159_v55  ;;  %645 = vmatprep.mubr.bf16.mxu1 %v159_v55 }
 0x19f   :  { %603 = vmatmul.mubr.bf16.vlgmr.msra.gmra.mrb[0].mxu0 %v158_v56  ;;  %646 = vmatmul.mubr.bf16.vlgmr.msra.gmra.mrb[0].mxu1 %v158_v56 }
 0x272   :  { %v604_v61 = vpop.f32.mrb[0].mxu0  ;;  %v647_v62 = vpop.f32.mrb[0].mxu1 }
 0x273   :  { %v1267_v63 = vadd.f32 %v604_v61, %v233_v53  ;;  %v1269_v0 = vadd.f32 %v647_v62, %v241_v59  ;;  %v606_v1 = vpop.f32.mrb[1].mxu0  ;;  %v649_v2 = vpop.f32.mrb[1].mxu1 }
 0x274   :  { %v1271_v3 = vadd.f32 %v606_v1, %v237_v60  ;;  %v1273_v4 = vadd.f32 %v649_v2, %v245_v52  ;;  %v608_v5 = vpop.f32.mrb[2].mxu0  ;;  %v651_v6 = vpop.f32.mrb[2].mxu1 }
 0x275   :  { %v664_v7 = vmul.f32 0.044715, %v1267_v63  ;;  %v666_v8 = vmul.f32 0.044715, %v1269_v0  ;;  %v1281_v13 = vadd.f32 %v608_v5, %v233_v53  ;;  %v1283_v14 = vadd.f32 %v651_v6, %v241_v59  ;;  %v610_v15 = vpop.f32.mrb[3].mxu0  ;;  %v653_v16 = vpop.f32.mrb[3].mxu1 }
 0x276   :  { %v665_v9 = vmul.f32 0.044715, %v1271_v3  ;;  %v667_v10 = vmul.f32 0.044715, %v1273_v4  ;;  %v1287_v19 = vadd.f32 %v610_v15, %v237_v60  ;;  %v1298_v29 = vadd.f32 %v653_v16, %v245_v52 }
 0x277   :  { %v672_v11 = vmul.f32 %v664_v7, %v1267_v63  ;;  %v674_v12 = vmul.f32 %v666_v8, %v1269_v0  ;;  %v668_v22 = vmul.f32 0.044715, %v1281_v13  ;;  %v670_v25 = vmul.f32 0.044715, %v1283_v14 }
 0x278   :  { %v673_v17 = vmul.f32 %v665_v9, %v1271_v3  ;;  %v675_v18 = vmul.f32 %v667_v10, %v1273_v4  ;;  %v669_v33 = vmul.f32 0.044715, %v1287_v19  ;;  %v671_v42 = vmul.f32 0.044715, %v1298_v29 }
 0x279   :  { %v680_v20 = vmul.f32 %v672_v11, %v1267_v63  ;;  %v682_v21 = vmul.f32 %v674_v12, %v1269_v0  ;;  %v676_v28 = vmul.f32 %v668_v22, %v1281_v13  ;;  %v678_v32 = vmul.f32 %v670_v25, %v1283_v14 }
 0x27a   :  { %v681_v23 = vmul.f32 %v673_v17, %v1271_v3  ;;  %v683_v24 = vmul.f32 %v675_v18, %v1273_v4  ;;  %v677_v40 = vmul.f32 %v669_v33, %v1287_v19  ;;  %v679_v48 = vmul.f32 %v671_v42, %v1298_v29 }
 0x27b   :  { %v688_v26 = vadd.f32 %v680_v20, %v1267_v63  ;;  %v690_v27 = vadd.f32 %v682_v21, %v1269_v0  ;;  %v684_v36 = vmul.f32 %v676_v28, %v1281_v13  ;;  %v686_v39 = vmul.f32 %v678_v32, %v1283_v14 }
 0x27c   :  { %v689_v30 = vadd.f32 %v681_v23, %v1271_v3  ;;  %v691_v31 = vadd.f32 %v683_v24, %v1273_v4  ;;  %v685_v44 = vmul.f32 %v677_v40, %v1287_v19  ;;  %v687_v51 = vmul.f32 %v679_v48, %v1298_v29 }
 0x27d   :  { %v696_v34 = vmul.f32 0.7978846, %v688_v26  ;;  %v698_v35 = vmul.f32 0.7978846, %v690_v27  ;;  %v692_v41 = vadd.f32 %v684_v36, %v1281_v13  ;;  %v694_v43 = vadd.f32 %v686_v39, %v1283_v14 }
 0x27e   :  { %v697_v37 = vmul.f32 0.7978846, %v689_v30  ;;  %v699_v38 = vmul.f32 0.7978846, %v691_v31  ;;  %v693_v50 = vadd.f32 %v685_v44, %v1287_v19  ;;  %v695_v47 = vadd.f32 %v687_v51, %v1298_v29 }
 0x27f   :  { %957 = vtanh.f32 %v696_v34  ;;  %v700_v45 = vmul.f32 0.7978846, %v692_v41  ;;  %v702_v49 = vmul.f32 0.7978846, %v694_v43  ;;  %v656_v57 = vmul.f32 0.5, %v1267_v63 }
 0x280   :  { %959 = vtanh.f32 %v698_v35  ;;  %v701_v54 = vmul.f32 0.7978846, %v693_v50  ;;  %v703_v55 = vmul.f32 0.7978846, %v695_v47  ;;  %v658_v59 = vmul.f32 0.5, %v1269_v0 }
 0x281   :  { %961 = vtanh.f32 %v697_v37  ;;  %v657_v61 = vmul.f32 0.5, %v1271_v3  ;;  %v659_v5 = vmul.f32 0.5, %v1273_v4  ;;  %v660_v63 = vmul.f32 0.5, %v1281_v13 }
 0x282   :  { %963 = vtanh.f32 %v699_v38  ;;  %v661_v16 = vmul.f32 0.5, %v1287_v19  ;;  %v662_v20 = vmul.f32 0.5, %v1283_v14  ;;  %v663_v22 = vmul.f32 0.5, %v1298_v29 }
 0x283   :  { %965 = vtanh.f32 %v700_v45 }
 0x284   :  { %967 = vtanh.f32 %v702_v49 }
 0x285   :  { %969 = vtanh.f32 %v701_v54 }
 0x286   :  { %971 = vtanh.f32 %v703_v55 }
 0x289   :  { %v958_v56 = vpop.eup %957 }
 0x28a   :  { %v960_v46 = vpop.eup %959  ;;  %v712_v58 = vadd.f32 1.0, %v958_v56 }
 0x28b   :  { %v962_v53 = vpop.eup %961  ;;  %v714_v60 = vadd.f32 1.0, %v960_v46 }
 0x28c   :  { %v964_v52 = vpop.eup %963  ;;  %v713_v62 = vadd.f32 1.0, %v962_v53  ;;  %v720_v1 = vmul.f32 %v712_v58, %v656_v57 }
 0x28d   :  { %v966_v2 = vpop.eup %965  ;;  %v715_v6 = vadd.f32 1.0, %v964_v52  ;;  %v722_v7 = vmul.f32 %v714_v60, %v658_v59 }
 0x28e   :  { %v968_v8 = vpop.eup %967  ;;  %v716_v9 = vadd.f32 1.0, %v966_v2  ;;  %v721_v10 = vmul.f32 %v713_v62, %v657_v61 }
 0x28f   :  { %v723_v11 = vmul.f32 %v715_v6, %v659_v5  ;;  %v970_v12 = vpop.eup %969  ;;  %v718_v15 = vadd.f32 1.0, %v968_v8 }
 0x290   :  { %v843_v0 = vpack.c.bf16 %v721_v10, %v720_v1  ;;  %v717_v17 = vadd.f32 1.0, %v970_v12  ;;  %v724_v3 = vmul.f32 %v716_v9, %v660_v63  ;;  %v972_v4 = vpop.eup %971 }
 0x291   :  { %v844_v18 = vpack.c.bf16 %v723_v11, %v722_v7  ;;  %v719_v23 = vadd.f32 1.0, %v972_v4  ;;  %v726_v24 = vmul.f32 %v718_v15, %v662_v20 }
 0x292   :  { %752 = vst [vmem:[#allocation12] sm:$0xff] %v843_v0  ;;  %v725_v21 = vmul.f32 %v717_v17, %v661_v16 }
 0x293   :  { %753 = vst [vmem:[#allocation12 + $0x8] sm:$0xff] %v844_v18  ;;  %v727_v25 = vmul.f32 %v719_v23, %v663_v22 }
 0x294   :  { %v845_v13 = vpack.c.bf16 %v725_v21, %v724_v3 }
 0x295   :  { %v846_v26 = vpack.c.bf16 %v727_v25, %v726_v24 }
 0x296   :  { %754 = vst [vmem:[#allocation12 + $0x10] sm:$0xff] %v845_v13 }
 0x297   :  { %755 = vst [vmem:[#allocation12 + $0x18] sm:$0xff] %v846_v26 }
 0x298   :  { %1094 = shalt.err (!%p1091_p2)
}
 0x299   :  { %s1095_s7 = scalar_lea.hbm %s1343_s5, 512 }
 0x29a   :  { %p1096_p3 = scmp.ne.s32.totalorder %s1343_s5, %s1095_s7  ;;  %p1099_p4 = scmp.lt.u32.totalorder %s1095_s7, %s1343_s5 }
 0x29c   :  { %p1101_p5 = pnand %p1099_p4, %p1096_p3 }
 0x29e   :  { %1104 = shalt.err (!%p1101_p5)
}
 0x29f   :  { %767 = dma.vmem_to_hbm [thread:$0]  %s762_s21, 512, %s1343_s5, [#allocation5], %s1115_s1, %s1115_s1, %s1116_s15  }
 0x2a0   :  { %1111 = dma.done.wait [#allocation5], 512  }
 0x2a1   :  { %1112 = vsyncadd [#allocation5], 4294966784 }
 0x2a2   :  { %771 = vsyncpa [#allocation4], 1 }
 0x2a3   :  { %772 = vsyncpa [#allocation7], 1 }
 0x2a4   :  { %773 = vsyncpa [#allocation10], 1 }
 0x2a5   :  { %774 = vsyncpa [#allocation5], 1 }

// kernel: gpt_bigcode_forward.21
= control target key start
LH: loop header
LB: loop body
LE: loop exit
PB: predicated region body
PF: predicated region fallthrough
CT: control target
= control target key end

     0   :  { %9 = vsyncpa [#allocation3], 0  ;;  %s608_s0 = inlined_call_operand.hbm [shape: bf16[1,256], index: 0, kind: input, shape index: {}]   ;;  %s609_s1 = inlined_call_operand.hbm [shape: f32[1,256], index: 1, kind: input, shape index: {}]   ;;  %s610_s2 = inlined_call_operand.hbm [shape: f32[1,256], index: 2, kind: input, shape index: {}]   ;;  %s611_s3 = inlined_call_operand.hbm [shape: bf16[128,256], index: 3, kind: input, shape index: {}]   ;;  %s612_s4 = inlined_call_operand.hbm [shape: f32[1,128], index: 4, kind: output, shape index: {}]  }
   0x1   :  { %10 = vsyncpa [#allocation6], 0 }
   0x2   :  { %11 = vsyncpa [#allocation9], 0 }
   0x3   :  { %12 = vsyncpa [#allocation4], 0  ;;  %s487_s15 = smov [#allocation5]   ;;  %s488_s17 = smov [#allocation2]  }
   0x4   :  { %s29_s16 = sshll.u32 %s487_s15, 4  ;;  %s19_s18 = sshll.u32 %s488_s17, 4  ;;  %s30_s16 = int_to_ptr.vmem [resolvable:$true] %s29_s16  ;;  %s20_s18 = int_to_ptr.vmem [resolvable:$true] %s19_s18 }
   0x5   :  { %s369_s21 = scalar_lea.hbm %s609_s1, 32 }
   0x6   :  { %p370_p0 = scmp.ne.s32.totalorder %s609_s1, %s369_s21  ;;  %p373_p1 = scmp.lt.u32.totalorder %s369_s21, %s609_s1 }
   0x8   :  { %p375_p2 = pnand %p373_p1, %p370_p0 }
   0xa   :  { %378 = shalt.err (!%p375_p2)
}
   0xb   :  { %s379_s26 = scalar_lea.vmem %s30_s16, 32  ;;  %p384_p4 = scmp.lt.s32.totalorder %s30_s16, %s30_s16 }
   0xc   :  { %p380_p3 = scmp.ne.s32.totalorder %s30_s16, %s379_s26  ;;  %p385_p5 = scmp.lt.s32.totalorder %s379_s26, %s379_s26 }
   0xe   :  { %p386_p6 = por %p385_p5, %p384_p4 }
  0x10   :  { %p387_p7 = pnand %p386_p6, %p380_p3 }
  0x12   :  { %390 = shalt.err (!%p387_p7)
}
  0x13   :  { %32 = dma.hbm_to_vmem [thread:$0]  %s609_s1, 32, %s30_s16, [#allocation6]  }
  0x14   :  { %s391_s5 = scalar_lea.hbm %s608_s0, 32 }
  0x15   :  { %p392_p8 = scmp.ne.s32.totalorder %s608_s0, %s391_s5  ;;  %p395_p9 = scmp.lt.u32.totalorder %s391_s5, %s608_s0 }
  0x17   :  { %p397_p10 = pnand %p395_p9, %p392_p8 }
  0x19   :  { %400 = shalt.err (!%p397_p10)
}
  0x1a   :  { %s401_s10 = scalar_lea.vmem %s20_s18, 32  ;;  %p406_p12 = scmp.lt.s32.totalorder %s20_s18, %s20_s18 }
  0x1b   :  { %p402_p11 = scmp.ne.s32.totalorder %s20_s18, %s401_s10  ;;  %p407_p13 = scmp.lt.s32.totalorder %s401_s10, %s401_s10 }
  0x1d   :  { %p408_p0 = por %p407_p13, %p406_p12 }
  0x1f   :  { %p409_p1 = pnand %p408_p0, %p402_p11 }
  0x21   :  { %412 = shalt.err (!%p409_p1)
}
  0x22   :  { %22 = dma.hbm_to_vmem [thread:$0]  %s608_s0, 32, %s20_s18, [#allocation3]  }
  0x23   :  { %s489_s12 = smov [#allocation7]   ;;  %s490_s14 = smov [#allocation8]  }
  0x24   :  { %s39_s13 = sshll.u32 %s489_s12, 4  ;;  %s48_s15 = sshll.u32 %s490_s14, 4  ;;  %s40_s13 = int_to_ptr.vmem [resolvable:$true] %s39_s13  ;;  %s545_s15 = int_to_ptr.vmem [resolvable:$true] %s48_s15 }
  0x25   :  { %s413_s19 = scalar_lea.hbm %s610_s2, 32 }
  0x26   :  { %p414_p2 = scmp.ne.s32.totalorder %s610_s2, %s413_s19  ;;  %p417_p3 = scmp.lt.u32.totalorder %s413_s19, %s610_s2 }
  0x28   :  { %p419_p4 = pnand %p417_p3, %p414_p2 }
  0x2a   :  { %422 = shalt.err (!%p419_p4)
}
  0x2b   :  { %s423_s0 = scalar_lea.vmem %s40_s13, 32  ;;  %p428_p6 = scmp.lt.s32.totalorder %s40_s13, %s40_s13 }
  0x2c   :  { %p424_p5 = scmp.ne.s32.totalorder %s40_s13, %s423_s0  ;;  %p429_p7 = scmp.lt.s32.totalorder %s423_s0, %s423_s0 }
  0x2e   :  { %p430_p8 = por %p429_p7, %p428_p6 }
  0x30   :  { %p431_p9 = pnand %p430_p8, %p424_p5 }
  0x32   :  { %434 = shalt.err (!%p431_p9)
}
  0x33   :  { %42 = dma.hbm_to_vmem [thread:$0]  %s610_s2, 32, %s40_s13, [#allocation6]  }
  0x34   :  { %s435_s27 = scalar_lea.hbm %s611_s3, 2048 }
  0x35   :  { %p436_p10 = scmp.ne.s32.totalorder %s611_s3, %s435_s27  ;;  %p439_p11 = scmp.lt.u32.totalorder %s435_s27, %s611_s3 }
  0x37   :  { %p441_p12 = pnand %p439_p11, %p436_p10 }
  0x39   :  { %444 = shalt.err (!%p441_p12)
}
  0x3a   :  { %s445_s6 = scalar_lea.vmem %s545_s15, 2048  ;;  %p450_p0 = scmp.lt.s32.totalorder %s545_s15, %s545_s15 }
  0x3b   :  { %p446_p13 = scmp.ne.s32.totalorder %s545_s15, %s445_s6  ;;  %p451_p1 = scmp.lt.s32.totalorder %s445_s6, %s445_s6 }
  0x3d   :  { %p452_p2 = por %p451_p1, %p450_p0 }
  0x3f   :  { %p453_p3 = pnand %p452_p2, %p446_p13 }
  0x41   :  { %456 = shalt.err (!%p453_p3)
}
  0x42   :  { %s491_s2 = smov 128   ;;  %s492_s7 = smov 8  }
  0x43   :  { %54 = dma.hbm_to_vmem [thread:$0]  %s611_s3, 2048, %s545_s15, [#allocation9], %s491_s2, %s491_s2, %s492_s7  }
  0x44   :  { %479 = dma.done.wait [#allocation3], 32  }
  0x45   :  { %480 = vsyncadd [#allocation3], 4294967264 }
  0x46   :  { %481 = dma.done.wait [#allocation6], 64  }
  0x47   :  { %482 = vsyncadd [#allocation6], 4294967232 }
  0x48   :  { %483 = dma.done.wait [#allocation9], 2048  }
  0x49   :  { %484 = vsyncadd [#allocation9], 4294965248  ;;  %v71_v0 = vlaneseq  ;;  %v68_v4 = vld [vmem:[#allocation2] sm:$0x3]  ;;  %vm81_vm0 = vcmask 1040384   ;;  %s495_s3 = smov [#allocation10]  }
  0x4a   :  { %v69_v5 = vunpack.c.l.bf16 %v68_v4  ;;  %v343_v11 = vld [vmem:[#allocation8 + $0x4] ss:$8 sps:$4 sm:$0xff]   ;;  %v345_v12 = vld [vmem:[#allocation8] ss:$8 sps:$4 sm:$0xff]   ;;  %v346_v13 = vld [vmem:[#allocation8 + $0x14] ss:$8 sps:$4 sm:$0xff]  }
  0x4b   :  { %v576_v1 = vshrl.u32 %v71_v0, 7  ;;  %260 = vmatprep.subr.bf16.mxu0 %v343_v11  ;;  %v348_v14 = vld [vmem:[#allocation8 + $0x10] ss:$8 sps:$4 sm:$0xff]   ;;  %v349_v15 = vld [vmem:[#allocation8 + $0x24] ss:$8 sps:$4 sm:$0xff]   ;;  %s307_s10 = sshll.u32 %s495_s3, 4  ;;  %s308_s10 = int_to_ptr.vmem [resolvable:$true] %s307_s10 }
  0x4c   :  { %261 = vmatpush1.bf16.xpose.msra.mxu0 %v345_v12  ;;  %v351_v16 = vld [vmem:[#allocation8 + $0x20] ss:$8 sps:$4 sm:$0xff]   ;;  %v352_v17 = vld [vmem:[#allocation8 + $0x34] ss:$8 sps:$4 sm:$0xff]   ;;  %v354_v18 = vld [vmem:[#allocation8 + $0x30] ss:$8 sps:$4 sm:$0xff]   ;;  %p462_p5 = scmp.lt.s32.totalorder %s308_s10, %s308_s10 }
  0x4d   :  { %v579_v2 = vsub.s32 0, %v576_v1  ;;  %v582_v3 = vsub.s32 2, %v576_v1  ;;  %262 = vmatprep.subr.bf16.mxu0 %v346_v13  ;;  %v355_v19 = vld [vmem:[#allocation8 + $0x44] ss:$8 sps:$4 sm:$0xff]   ;;  %v357_v20 = vld [vmem:[#allocation8 + $0x40] ss:$8 sps:$4 sm:$0xff]  }
  0x4e   :  { %v493_v21 = vmov 269488144   ;;  %v358_v35 = vld [vmem:[#allocation8 + $0x54] ss:$8 sps:$4 sm:$0xff]   ;;  %v360_v36 = vld [vmem:[#allocation8 + $0x50] ss:$8 sps:$4 sm:$0xff]  }
  0x4f   :  { %v74_v6 = vrot.slane %v69_v5, %v579_v2  ;;  %v78_v7 = vrot.slane %v69_v5, %v582_v3  ;;  %v91_v22 = vunpack.c.l.s4 %v493_v21  ;;  %v361_v37 = vld [vmem:[#allocation8 + $0x64] ss:$8 sps:$4 sm:$0xff]   ;;  %v363_v38 = vld [vmem:[#allocation8 + $0x60] ss:$8 sps:$4 sm:$0xff]   ;;  %v364_v39 = vld [vmem:[#allocation8 + $0x74] ss:$8 sps:$4 sm:$0xff]  }
  0x50   :  { %v366_v40 = vld [vmem:[#allocation8 + $0x70] ss:$8 sps:$4 sm:$0xff]   ;;  %v494_v44 = vmov 857870592   ;;  %v129_v48 = vld [vmem:[#allocation5] sm:$0x3] }
  0x51   :  { %v82_v8 = vsel %vm81_vm0, %v74_v6, 0.0  ;;  %v83_v9 = vsel %vm81_vm0, %v78_v7, 0.0  ;;  %v92_v23 = vunpack.c.0.s8 %v91_v22  ;;  %v132_v45 = vunpack.c.l.s4 %v494_v44  ;;  %v140_v50 = vld [vmem:[#allocation7] sm:$0x3]  ;;  %s457_s1 = scalar_lea.vmem %s308_s10, 16  ;;  %s461_s11 = scalar_lea.vmem %s308_s10, 32 }
  0x52   :  { %v84_v10 = vadd.f32 %v83_v9, %v82_v8  ;;  %p458_p4 = scmp.ne.s32.totalorder %s308_s10, %s457_s1  ;;  %p463_p6 = scmp.lt.s32.totalorder %s461_s11, %s457_s1 }
  0x53   :  { %v95_v24 = vsub.s32 %v92_v23, %v576_v1  ;;  %v133_v46 = vunpack.c.0.s8 %v132_v45 }
  0x54   :  { %85 = vadd.xlane.f32.xlu0 %v84_v10  ;;  %263 = vmatpush1.bf16.xpose.msra.mxu0 %v348_v14  ;;  %p464_p7 = por %p463_p6, %p462_p5 }
  0x55   :  { %264 = vmatprep.subr.bf16.mxu0 %v349_v15  ;;  %v136_v47 = vsub.s32 %v133_v46, %v576_v1 }
  0x56   :  { %p465_p8 = pnand %p464_p7, %p458_p4 }
  0x57   :  { %v137_v52 = vrot.slane %v129_v48, %v136_v47  ;;  %v148_v54 = vrot.slane %v140_v50, %v136_v47 }
  0x5c   :  { %265 = vmatpush1.bf16.xpose.msra.mxu0 %v351_v16 }
  0x5d   :  { %266 = vmatprep.subr.bf16.mxu0 %v352_v17 }
  0x64   :  { %267 = vmatpush1.bf16.xpose.msra.mxu0 %v354_v18 }
  0x65   :  { %268 = vmatprep.subr.bf16.mxu0 %v355_v19 }
  0x6c   :  { %269 = vmatpush1.bf16.xpose.msra.mxu0 %v357_v20 }
  0x6d   :  { %270 = vmatprep.subr.bf16.mxu0 %v358_v35 }
  0x74   :  { %271 = vmatpush1.bf16.xpose.msra.mxu0 %v360_v36 }
  0x75   :  { %272 = vmatprep.subr.bf16.mxu0 %v361_v37 }
  0x7c   :  { %273 = vmatpush1.bf16.xpose.msra.mxu0 %v363_v38 }
  0x7d   :  { %274 = vmatprep.subr.bf16.mxu0 %v364_v39 }
  0x84   :  { %275 = vmatpush1.bf16.xpose.msra.mxu0 %v366_v40 }
  0xe1   :  { %v86_v25 = vpop.xlane.xlu0 %85 }
  0xe2   :  { %v88_v26 = vmul.f32 0.00390625, %v86_v25 }
  0xe4   :  { %v96_v27 = vrot.slane %v88_v26, %v95_v24 }
  0xe6   :  { %v98_v28 = vsub.f32 %v69_v5, %v96_v27 }
  0xe8   :  { %v99_v29 = vmul.f32 %v98_v28, %v98_v28 }
  0xea   :  { %v104_v30 = vrot.slane %v99_v29, %v579_v2  ;;  %v108_v31 = vrot.slane %v99_v29, %v582_v3 }
  0xec   :  { %v111_v32 = vsel %vm81_vm0, %v104_v30, 0.0  ;;  %v112_v33 = vsel %vm81_vm0, %v108_v31, 0.0 }
  0xed   :  { %v113_v34 = vadd.f32 %v112_v33, %v111_v32 }
  0xef   :  { %114 = vadd.xlane.f32.xlu0 %v113_v34 }
 0x17c   :  { %v115_v41 = vpop.xlane.xlu0 %114 }
 0x17d   :  { %v116_v42 = vmul.f32 0.00390625, %v115_v41 }
 0x17f   :  { %v117_v43 = vadd.f32 1e-05, %v116_v42 }
 0x181   :  { %367 = vrsqrt.f32 %v117_v43 }
 0x18b   :  { %v368_v49 = vpop.eup %367 }
 0x18c   :  { %v126_v51 = vrot.slane %v368_v49, %v95_v24 }
 0x18e   :  { %v128_v53 = vmul.f32 %v126_v51, %v98_v28 }
 0x190   :  { %v139_v55 = vmul.f32 %v137_v52, %v128_v53 }
 0x192   :  { %v150_v56 = vadd.f32 %v148_v54, %v139_v55 }
 0x194   :  { %v159_v57 = vrot.slane %v150_v56, %v582_v3  ;;  %v155_v58 = vrot.slane %v150_v56, %v579_v2 }
 0x196   :  { %v163_v59 = vpack.c.bf16 %v159_v57, %v159_v57  ;;  %v162_v60 = vpack.c.bf16 %v155_v58, %v155_v58 }
 0x198   :  { %292 = vmatprep.mubr.bf16.mxu0 %v163_v59 }
 0x199   :  { %293 = vmatmul.mubr.bf16.vlgmr.msra.gmra.mrb[0].mxu0 %v162_v60 }
 0x26c   :  { %v294_v61 = vpop.f32.mrb[0].mxu0 }
 0x26d   :  { %300 = vst [vmem:[#allocation10] sm:$0x1] %v294_v61  ;;  %v296_v62 = vpop.f32.mrb[1].mxu0 }
 0x26e   :  { %v297_v63 = vpop.f32.mrb[2].mxu0 }
 0x26f   :  { %468 = shalt.err (!%p465_p8)
}
 0x270   :  { %s469_s14 = scalar_lea.hbm %s612_s4, 16 }
 0x271   :  { %p470_p9 = scmp.ne.s32.totalorder %s612_s4, %s469_s14  ;;  %p473_p10 = scmp.lt.u32.totalorder %s469_s14, %s612_s4 }
 0x273   :  { %p475_p11 = pnand %p473_p10, %p470_p9 }
 0x275   :  { %478 = shalt.err (!%p475_p11)
}
 0x276   :  { %310 = dma.vmem_to_hbm [thread:$0]  %s308_s10, 16, %s612_s4, [#allocation4]   ;;  %v298_v0 = vpop.f32.mrb[3].mxu0 }
 0x277   :  { %485 = dma.done.wait [#allocation4], 16  }
 0x278   :  { %486 = vsyncadd [#allocation4], 4294967280 }
 0x279   :  { %314 = vsyncpa [#allocation3], 1 }
 0x27a   :  { %315 = vsyncpa [#allocation6], 1 }
 0x27b   :  { %316 = vsyncpa [#allocation9], 1 }
 0x27c   :  { %317 = vsyncpa [#allocation4], 1 }

// kernel: gpt_bigcode_forward.15
= control target key start
LH: loop header
LB: loop body
LE: loop exit
PB: predicated region body
PF: predicated region fallthrough
CT: control target
= control target key end

     0   :  { %9 = vsyncpa [#allocation4], 0  ;;  %s1066_s0 = inlined_call_operand.hbm [shape: bf16[16,512], index: 0, kind: input, shape index: {}]   ;;  %s1067_s1 = inlined_call_operand.hbm [shape: bf16[512,256], index: 1, kind: input, shape index: {}]   ;;  %s1068_s2 = inlined_call_operand.hbm [shape: f32[1,256], index: 2, kind: input, shape index: {}]   ;;  %s1069_s3 = inlined_call_operand.hbm [shape: bf16[16,256], index: 3, kind: input, shape index: {}]   ;;  %s1070_s4 = inlined_call_operand.hbm [shape: bf16[16,256], index: 4, kind: output, shape index: {}]  }
   0x1   :  { %10 = vsyncpa [#allocation7], 0 }
   0x2   :  { %11 = vsyncpa [#allocation10], 0 }
   0x3   :  { %12 = vsyncpa [#allocation5], 0  ;;  %s956_s15 = smov [#allocation6]   ;;  %s838_s19 = scalar_lea.hbm %s1067_s1, 8192 }
   0x4   :  { %s30_s16 = sshll.u32 %s956_s15, 4  ;;  %p839_p0 = scmp.ne.s32.totalorder %s1067_s1, %s838_s19  ;;  %s31_s16 = int_to_ptr.vmem [resolvable:$true] %s30_s16 }
   0x5   :  { %p842_p1 = scmp.lt.u32.totalorder %s838_s19, %s1067_s1 }
   0x7   :  { %p844_p2 = pnand %p842_p1, %p839_p0 }
   0x9   :  { %847 = shalt.err (!%p844_p2)
}
   0xa   :  { %s848_s24 = scalar_lea.vmem %s31_s16, 8192  ;;  %p853_p4 = scmp.lt.s32.totalorder %s31_s16, %s31_s16 }
   0xb   :  { %p849_p3 = scmp.ne.s32.totalorder %s31_s16, %s848_s24  ;;  %p854_p5 = scmp.lt.s32.totalorder %s848_s24, %s848_s24 }
   0xd   :  { %p855_p6 = por %p854_p5, %p853_p4 }
   0xf   :  { %p856_p7 = pnand %p855_p6, %p849_p3 }
  0x11   :  { %859 = shalt.err (!%p856_p7)
}
  0x12   :  { %s957_s25 = smov 128   ;;  %s958_s26 = smov 8  }
  0x13   :  { %36 = dma.hbm_to_vmem [thread:$0]  %s1067_s1, 8192, %s31_s16, [#allocation7], %s957_s25, %s957_s25, %s958_s26  }
  0x14   :  { %s959_s29 = smov [#allocation3]   ;;  %s860_s7 = scalar_lea.hbm %s1066_s0, 512 }
  0x15   :  { %s18_s30 = sshll.u32 %s959_s29, 4  ;;  %p861_p8 = scmp.ne.s32.totalorder %s1066_s0, %s860_s7  ;;  %s19_s30 = int_to_ptr.vmem [resolvable:$true] %s18_s30 }
  0x16   :  { %p864_p9 = scmp.lt.u32.totalorder %s860_s7, %s1066_s0 }
  0x18   :  { %p866_p10 = pnand %p864_p9, %p861_p8 }
  0x1a   :  { %869 = shalt.err (!%p866_p10)
}
  0x1b   :  { %s870_s12 = scalar_lea.vmem %s19_s30, 512  ;;  %p875_p12 = scmp.lt.s32.totalorder %s19_s30, %s19_s30 }
  0x1c   :  { %p871_p11 = scmp.ne.s32.totalorder %s19_s30, %s870_s12  ;;  %p876_p13 = scmp.lt.s32.totalorder %s870_s12, %s870_s12 }
  0x1e   :  { %p877_p0 = por %p876_p13, %p875_p12 }
  0x20   :  { %p878_p1 = pnand %p877_p0, %p871_p11 }
  0x22   :  { %881 = shalt.err (!%p878_p1)
}
  0x23   :  { %s960_s1 = smov 256   ;;  %s961_s13 = smov 16  }
  0x24   :  { %24 = dma.hbm_to_vmem [thread:$0]  %s1066_s0, 512, %s19_s30, [#allocation4], %s960_s1, %s960_s1, %s961_s13  }
  0x25   :  { %s962_s16 = smov [#allocation8]   ;;  %s963_s18 = smov [#allocation9]  }
  0x26   :  { %s43_s17 = sshll.u32 %s962_s16, 4  ;;  %s52_s19 = sshll.u32 %s963_s18, 4  ;;  %s44_s17 = int_to_ptr.vmem [resolvable:$true] %s43_s17  ;;  %s1017_s19 = int_to_ptr.vmem [resolvable:$true] %s52_s19 }
  0x27   :  { %s882_s22 = scalar_lea.hbm %s1068_s2, 32 }
  0x28   :  { %p883_p2 = scmp.ne.s32.totalorder %s1068_s2, %s882_s22  ;;  %p886_p3 = scmp.lt.u32.totalorder %s882_s22, %s1068_s2 }
  0x2a   :  { %p888_p4 = pnand %p886_p3, %p883_p2 }
  0x2c   :  { %891 = shalt.err (!%p888_p4)
}
  0x2d   :  { %s892_s0 = scalar_lea.vmem %s44_s17, 32  ;;  %p897_p6 = scmp.lt.s32.totalorder %s44_s17, %s44_s17 }
  0x2e   :  { %p893_p5 = scmp.ne.s32.totalorder %s44_s17, %s892_s0  ;;  %p898_p7 = scmp.lt.s32.totalorder %s892_s0, %s892_s0 }
  0x30   :  { %p899_p8 = por %p898_p7, %p897_p6 }
  0x32   :  { %p900_p9 = pnand %p899_p8, %p893_p5 }
  0x34   :  { %903 = shalt.err (!%p900_p9)
}
  0x35   :  { %46 = dma.hbm_to_vmem [thread:$0]  %s1068_s2, 32, %s44_s17, [#allocation7]  }
  0x36   :  { %s904_s7 = scalar_lea.hbm %s1069_s3, 256 }
  0x37   :  { %p905_p10 = scmp.ne.s32.totalorder %s1069_s3, %s904_s7  ;;  %p908_p11 = scmp.lt.u32.totalorder %s904_s7, %s1069_s3 }
  0x39   :  { %p910_p12 = pnand %p908_p11, %p905_p10 }
  0x3b   :  { %913 = shalt.err (!%p910_p12)
}
  0x3c   :  { %s914_s12 = scalar_lea.vmem %s1017_s19, 256  ;;  %p919_p0 = scmp.lt.s32.totalorder %s1017_s19, %s1017_s19 }
  0x3d   :  { %p915_p13 = scmp.ne.s32.totalorder %s1017_s19, %s914_s12  ;;  %p920_p1 = scmp.lt.s32.totalorder %s914_s12, %s914_s12 }
  0x3f   :  { %p921_p2 = por %p920_p1, %p919_p0 }
  0x41   :  { %p922_p3 = pnand %p921_p2, %p915_p13 }
  0x43   :  { %925 = shalt.err (!%p922_p3)
}
  0x44   :  { %58 = dma.hbm_to_vmem [thread:$0]  %s1069_s3, 256, %s1017_s19, [#allocation10], %s957_s25, %s957_s25, %s958_s26  }
  0x45   :  { %948 = dma.done.wait [#allocation4], 512  }
  0x46   :  { %949 = vsyncadd [#allocation4], 4294966784 }
  0x47   :  { %950 = dma.done.wait [#allocation7], 8224  }
  0x48   :  { %951 = vsyncadd [#allocation7], 4294959072 }
  0x49   :  { %952 = dma.done.wait [#allocation10], 256  }
  0x4a   :  { %953 = vsyncadd [#allocation10], 4294967040  ;;  %v736_v0 = vld [vmem:[#allocation6 + $0x4] ss:$8 sps:$4 sm:$0xff]   ;;  %v740_v2 = vld [vmem:[#allocation6] ss:$8 sps:$4 sm:$0xff]  }
  0x4b   :  { %v738_v1 = vld [vmem:[#allocation6 + $0x104] ss:$8 sps:$4 sm:$0xff]   ;;  %491 = vmatprep.subr.bf16.mxu1 %v736_v0  ;;  %v741_v3 = vld [vmem:[#allocation6 + $0x100] ss:$8 sps:$4 sm:$0xff]   ;;  %v742_v4 = vld [vmem:[#allocation6 + $0x14] ss:$8 sps:$4 sm:$0xff]  }
  0x4c   :  { %534 = vmatprep.subr.bf16.mxu0 %v738_v1  ;;  %492 = vmatpush1.bf16.msra.mxu1 %v740_v2  ;;  %v744_v5 = vld [vmem:[#allocation6 + $0x114] ss:$8 sps:$4 sm:$0xff]   ;;  %v746_v6 = vld [vmem:[#allocation6 + $0x10] ss:$8 sps:$4 sm:$0xff]   ;;  %v748_v8 = vld [vmem:[#allocation6 + $0x24] ss:$8 sps:$4 sm:$0xff]  }
  0x4d   :  { %535 = vmatpush1.bf16.msra.mxu0 %v741_v3  ;;  %493 = vmatprep.subr.bf16.mxu1 %v742_v4  ;;  %v747_v7 = vld [vmem:[#allocation6 + $0x110] ss:$8 sps:$4 sm:$0xff]   ;;  %v750_v9 = vld [vmem:[#allocation6 + $0x124] ss:$8 sps:$4 sm:$0xff]   ;;  %v752_v10 = vld [vmem:[#allocation6 + $0x20] ss:$8 sps:$4 sm:$0xff]   ;;  %v594_v4 = vlaneseq }
  0x4e   :  { %536 = vmatprep.subr.bf16.mxu0 %v744_v5  ;;  %v753_v11 = vld [vmem:[#allocation6 + $0x120] ss:$8 sps:$4 sm:$0xff]   ;;  %v754_v12 = vld [vmem:[#allocation6 + $0x34] ss:$8 sps:$4 sm:$0xff]   ;;  %v758_v14 = vld [vmem:[#allocation6 + $0x30] ss:$8 sps:$4 sm:$0xff]  }
  0x4f   :  { %v756_v13 = vld [vmem:[#allocation6 + $0x134] ss:$8 sps:$4 sm:$0xff]   ;;  %v759_v15 = vld [vmem:[#allocation6 + $0x130] ss:$8 sps:$4 sm:$0xff]   ;;  %v760_v16 = vld [vmem:[#allocation6 + $0x44] ss:$8 sps:$4 sm:$0xff]  }
  0x50   :  { %494 = vmatpush1.bf16.msra.mxu1 %v746_v6  ;;  %v762_v17 = vld [vmem:[#allocation6 + $0x144] ss:$8 sps:$4 sm:$0xff]   ;;  %v764_v18 = vld [vmem:[#allocation6 + $0x40] ss:$8 sps:$4 sm:$0xff]   ;;  %v766_v20 = vld [vmem:[#allocation6 + $0x54] ss:$8 sps:$4 sm:$0xff]  }
  0x51   :  { %537 = vmatpush1.bf16.msra.mxu0 %v747_v7  ;;  %495 = vmatprep.subr.bf16.mxu1 %v748_v8  ;;  %v765_v19 = vld [vmem:[#allocation6 + $0x140] ss:$8 sps:$4 sm:$0xff]   ;;  %v768_v21 = vld [vmem:[#allocation6 + $0x154] ss:$8 sps:$4 sm:$0xff]   ;;  %v770_v22 = vld [vmem:[#allocation6 + $0x50] ss:$8 sps:$4 sm:$0xff]  }
  0x52   :  { %538 = vmatprep.subr.bf16.mxu0 %v750_v9  ;;  %v771_v23 = vld [vmem:[#allocation6 + $0x150] ss:$8 sps:$4 sm:$0xff]   ;;  %v772_v24 = vld [vmem:[#allocation6 + $0x64] ss:$8 sps:$4 sm:$0xff]   ;;  %v776_v26 = vld [vmem:[#allocation6 + $0x60] ss:$8 sps:$4 sm:$0xff]  }
  0x53   :  { %v774_v25 = vld [vmem:[#allocation6 + $0x164] ss:$8 sps:$4 sm:$0xff]   ;;  %v777_v27 = vld [vmem:[#allocation6 + $0x160] ss:$8 sps:$4 sm:$0xff]   ;;  %v778_v28 = vld [vmem:[#allocation6 + $0x74] ss:$8 sps:$4 sm:$0xff]  }
  0x54   :  { %496 = vmatpush1.bf16.msra.mxu1 %v752_v10  ;;  %v780_v29 = vld [vmem:[#allocation6 + $0x174] ss:$8 sps:$4 sm:$0xff]   ;;  %v782_v30 = vld [vmem:[#allocation6 + $0x70] ss:$8 sps:$4 sm:$0xff]   ;;  %v784_v32 = vld [vmem:[#allocation6 + $0x84] ss:$8 sps:$4 sm:$0xff]  }
  0x55   :  { %539 = vmatpush1.bf16.msra.mxu0 %v753_v11  ;;  %497 = vmatprep.subr.bf16.mxu1 %v754_v12  ;;  %v783_v31 = vld [vmem:[#allocation6 + $0x170] ss:$8 sps:$4 sm:$0xff]   ;;  %v786_v33 = vld [vmem:[#allocation6 + $0x184] ss:$8 sps:$4 sm:$0xff]   ;;  %v788_v34 = vld [vmem:[#allocation6 + $0x80] ss:$8 sps:$4 sm:$0xff]  }
  0x56   :  { %540 = vmatprep.subr.bf16.mxu0 %v756_v13  ;;  %v789_v35 = vld [vmem:[#allocation6 + $0x180] ss:$8 sps:$4 sm:$0xff]   ;;  %v790_v36 = vld [vmem:[#allocation6 + $0x94] ss:$8 sps:$4 sm:$0xff]   ;;  %v794_v38 = vld [vmem:[#allocation6 + $0x90] ss:$8 sps:$4 sm:$0xff]  }
  0x57   :  { %v792_v37 = vld [vmem:[#allocation6 + $0x194] ss:$8 sps:$4 sm:$0xff]   ;;  %v795_v39 = vld [vmem:[#allocation6 + $0x190] ss:$8 sps:$4 sm:$0xff]   ;;  %v796_v40 = vld [vmem:[#allocation6 + $0xa4] ss:$8 sps:$4 sm:$0xff]  }
  0x58   :  { %498 = vmatpush1.bf16.msra.mxu1 %v758_v14  ;;  %v798_v41 = vld [vmem:[#allocation6 + $0x1a4] ss:$8 sps:$4 sm:$0xff]   ;;  %v800_v42 = vld [vmem:[#allocation6 + $0xa0] ss:$8 sps:$4 sm:$0xff]   ;;  %v802_v44 = vld [vmem:[#allocation6 + $0xb4] ss:$8 sps:$4 sm:$0xff]  }
  0x59   :  { %541 = vmatpush1.bf16.msra.mxu0 %v759_v15  ;;  %499 = vmatprep.subr.bf16.mxu1 %v760_v16  ;;  %v801_v43 = vld [vmem:[#allocation6 + $0x1a0] ss:$8 sps:$4 sm:$0xff]   ;;  %v804_v45 = vld [vmem:[#allocation6 + $0x1b4] ss:$8 sps:$4 sm:$0xff]   ;;  %v806_v46 = vld [vmem:[#allocation6 + $0xb0] ss:$8 sps:$4 sm:$0xff]  }
  0x5a   :  { %542 = vmatprep.subr.bf16.mxu0 %v762_v17  ;;  %v834_v47 = vld [vmem:[#allocation3 + $0x4] ss:$16 sps:$4 sm:$0xff]   ;;  %v807_v48 = vld [vmem:[#allocation6 + $0x1b0] ss:$8 sps:$4 sm:$0xff]   ;;  %v837_v51 = vld [vmem:[#allocation3 + $0xc] ss:$16 sps:$4 sm:$0xff]  }
  0x5b   :  { %v808_v49 = vld [vmem:[#allocation6 + $0xc4] ss:$8 sps:$4 sm:$0xff]   ;;  %523 = vmatprep.mubr.bf16.mxu1 %v834_v47  ;;  %566 = vmatprep.mubr.bf16.mxu0 %v837_v51  ;;  %v812_v52 = vld [vmem:[#allocation6 + $0xc0] ss:$8 sps:$4 sm:$0xff]   ;;  %v814_v54 = vld [vmem:[#allocation6 + $0xd4] ss:$8 sps:$4 sm:$0xff]  }
  0x5c   :  { %500 = vmatpush1.bf16.msra.mxu1 %v764_v18  ;;  %v810_v50 = vld [vmem:[#allocation6 + $0x1c4] ss:$8 sps:$4 sm:$0xff]   ;;  %v813_v53 = vld [vmem:[#allocation6 + $0x1c0] ss:$8 sps:$4 sm:$0xff]   ;;  %v816_v55 = vld [vmem:[#allocation6 + $0x1d4] ss:$8 sps:$4 sm:$0xff]  }
  0x5d   :  { %543 = vmatpush1.bf16.msra.mxu0 %v765_v19  ;;  %501 = vmatprep.subr.bf16.mxu1 %v766_v20  ;;  %v818_v56 = vld [vmem:[#allocation6 + $0xd0] ss:$8 sps:$4 sm:$0xff]   ;;  %v820_v58 = vld [vmem:[#allocation6 + $0xe4] ss:$8 sps:$4 sm:$0xff]   ;;  %v824_v60 = vld [vmem:[#allocation6 + $0xe0] ss:$8 sps:$4 sm:$0xff]  }
  0x5e   :  { %544 = vmatprep.subr.bf16.mxu0 %v768_v21  ;;  %v819_v57 = vld [vmem:[#allocation6 + $0x1d0] ss:$8 sps:$4 sm:$0xff]   ;;  %v822_v59 = vld [vmem:[#allocation6 + $0x1e4] ss:$8 sps:$4 sm:$0xff]   ;;  %v825_v61 = vld [vmem:[#allocation6 + $0x1e0] ss:$8 sps:$4 sm:$0xff]  }
  0x5f   :  { %v826_v62 = vld [vmem:[#allocation6 + $0xf4] ss:$8 sps:$4 sm:$0xff]   ;;  %v830_v0 = vld [vmem:[#allocation6 + $0xf0] ss:$8 sps:$4 sm:$0xff]   ;;  %v595_v5 = vshrl.u32 %v594_v4, 7  ;;  %v608_v9 = vld [vmem:[#allocation9] sm:$0xff] }
  0x60   :  { %502 = vmatpush1.bf16.msra.mxu1 %v770_v22  ;;  %v828_v63 = vld [vmem:[#allocation6 + $0x1f4] ss:$8 sps:$4 sm:$0xff]   ;;  %v831_v1 = vld [vmem:[#allocation6 + $0x1f0] ss:$8 sps:$4 sm:$0xff]   ;;  %v592_v7 = vld [vmem:[#allocation8] sm:$0x3]  ;;  %v610_v16 = vunpack.c.l.bf16 %v608_v9  ;;  %v611_v20 = vunpack.c.h.bf16 %v608_v9 }
  0x61   :  { %545 = vmatpush1.bf16.msra.mxu0 %v771_v23  ;;  %503 = vmatprep.subr.bf16.mxu1 %v772_v24  ;;  %v832_v2 = vld [vmem:[#allocation3] ss:$16 sps:$4 sm:$0xff]   ;;  %v835_v3 = vld [vmem:[#allocation3 + $0x8] ss:$16 sps:$4 sm:$0xff]   ;;  %v596_v6 = vsub.s32 0, %v595_v5  ;;  %v600_v8 = vsub.s32 1, %v595_v5 }
  0x62   :  { %546 = vmatprep.subr.bf16.mxu0 %v774_v25  ;;  %v609_v14 = vld [vmem:[#allocation9 + $0x8] sm:$0xff]  ;;  %s964_s3 = smov [#allocation11]  }
  0x63   :  { %v597_v10 = vrot.slane %v592_v7, %v596_v6  ;;  %v601_v13 = vrot.slane %v592_v7, %v600_v8  ;;  %v612_v25 = vunpack.c.l.bf16 %v609_v14  ;;  %s637_s13 = sshll.u32 %s964_s3, 4  ;;  %s638_s13 = int_to_ptr.vmem [resolvable:$true] %s637_s13 }
  0x64   :  { %504 = vmatpush1.bf16.msra.mxu1 %v776_v26  ;;  %s926_s14 = scalar_lea.vmem %s638_s13, 256  ;;  %p931_p5 = scmp.lt.s32.totalorder %s638_s13, %s638_s13 }
  0x65   :  { %547 = vmatpush1.bf16.msra.mxu0 %v777_v27  ;;  %505 = vmatprep.subr.bf16.mxu1 %v778_v28  ;;  %p927_p4 = scmp.ne.s32.totalorder %s638_s13, %s926_s14  ;;  %p932_p6 = scmp.lt.s32.totalorder %s926_s14, %s926_s14 }
  0x66   :  { %548 = vmatprep.subr.bf16.mxu0 %v780_v29 }
  0x67   :  { %p933_p7 = por %p932_p6, %p931_p5 }
  0x68   :  { %506 = vmatpush1.bf16.msra.mxu1 %v782_v30  ;;  %v613_v30 = vunpack.c.h.bf16 %v609_v14 }
  0x69   :  { %549 = vmatpush1.bf16.msra.mxu0 %v783_v31  ;;  %507 = vmatprep.subr.bf16.mxu1 %v784_v32  ;;  %p934_p8 = pnand %p933_p7, %p927_p4 }
  0x6a   :  { %550 = vmatprep.subr.bf16.mxu0 %v786_v33 }
  0x6c   :  { %508 = vmatpush1.bf16.msra.mxu1 %v788_v34 }
  0x6d   :  { %551 = vmatpush1.bf16.msra.mxu0 %v789_v35  ;;  %509 = vmatprep.subr.bf16.mxu1 %v790_v36 }
  0x6e   :  { %552 = vmatprep.subr.bf16.mxu0 %v792_v37 }
  0x70   :  { %510 = vmatpush1.bf16.msra.mxu1 %v794_v38 }
  0x71   :  { %553 = vmatpush1.bf16.msra.mxu0 %v795_v39  ;;  %511 = vmatprep.subr.bf16.mxu1 %v796_v40 }
  0x72   :  { %554 = vmatprep.subr.bf16.mxu0 %v798_v41 }
  0x74   :  { %512 = vmatpush1.bf16.msra.mxu1 %v800_v42 }
  0x75   :  { %555 = vmatpush1.bf16.msra.mxu0 %v801_v43  ;;  %513 = vmatprep.subr.bf16.mxu1 %v802_v44 }
  0x76   :  { %556 = vmatprep.subr.bf16.mxu0 %v804_v45 }
  0x78   :  { %514 = vmatpush1.bf16.msra.mxu1 %v806_v46 }
  0x79   :  { %557 = vmatpush1.bf16.msra.mxu0 %v807_v48  ;;  %515 = vmatprep.subr.bf16.mxu1 %v808_v49 }
  0x7a   :  { %558 = vmatprep.subr.bf16.mxu0 %v810_v50 }
  0x7c   :  { %516 = vmatpush1.bf16.msra.mxu1 %v812_v52 }
  0x7d   :  { %559 = vmatpush1.bf16.msra.mxu0 %v813_v53  ;;  %517 = vmatprep.subr.bf16.mxu1 %v814_v54 }
  0x7e   :  { %560 = vmatprep.subr.bf16.mxu0 %v816_v55 }
  0x80   :  { %518 = vmatpush1.bf16.msra.mxu1 %v818_v56 }
  0x81   :  { %561 = vmatpush1.bf16.msra.mxu0 %v819_v57  ;;  %519 = vmatprep.subr.bf16.mxu1 %v820_v58 }
  0x82   :  { %562 = vmatprep.subr.bf16.mxu0 %v822_v59 }
  0x84   :  { %520 = vmatpush1.bf16.msra.mxu1 %v824_v60 }
  0x85   :  { %563 = vmatpush1.bf16.msra.mxu0 %v825_v61  ;;  %521 = vmatprep.subr.bf16.mxu1 %v826_v62 }
  0x86   :  { %564 = vmatprep.subr.bf16.mxu0 %v828_v63 }
  0x88   :  { %522 = vmatpush1.bf16.msra.mxu1 %v830_v0 }
  0x89   :  { %565 = vmatpush1.bf16.msra.mxu0 %v831_v1 }
  0x8b   :  { %524 = vmatmul.mubr.bf16.vlgmr.msra.gmra.mrb[0].mxu1 %v832_v2 }
  0x8c   :  { %567 = vmatmul.mubr.bf16.vlgmr.msra.gmra.mrb[0].mxu0 %v835_v3 }
 0x15e   :  { %v525_v11 = vpop.f32.mrb[0].mxu1 }
 0x15f   :  { %v568_v12 = vpop.f32.mrb[0].mxu0  ;;  %v527_v17 = vpop.f32.mrb[1].mxu1 }
 0x160   :  { %v569_v15 = vadd.f32 %v568_v12, %v525_v11  ;;  %v570_v18 = vpop.f32.mrb[1].mxu0  ;;  %v529_v21 = vpop.f32.mrb[2].mxu1 }
 0x161   :  { %v571_v19 = vadd.f32 %v570_v18, %v527_v17  ;;  %v572_v22 = vpop.f32.mrb[2].mxu0  ;;  %v531_v26 = vpop.f32.mrb[3].mxu1 }
 0x162   :  { %v604_v23 = vadd.f32 %v597_v10, %v569_v15  ;;  %v573_v24 = vadd.f32 %v572_v22, %v529_v21  ;;  %v574_v27 = vpop.f32.mrb[3].mxu0 }
 0x163   :  { %v605_v28 = vadd.f32 %v601_v13, %v571_v19  ;;  %v575_v29 = vadd.f32 %v574_v27, %v531_v26 }
 0x164   :  { %v614_v31 = vadd.f32 %v610_v16, %v604_v23  ;;  %v606_v32 = vadd.f32 %v597_v10, %v573_v24 }
 0x165   :  { %v615_v33 = vadd.f32 %v611_v20, %v605_v28  ;;  %v607_v34 = vadd.f32 %v601_v13, %v575_v29 }
 0x166   :  { %v616_v35 = vadd.f32 %v612_v25, %v606_v32 }
 0x167   :  { %v617_v36 = vadd.f32 %v613_v30, %v607_v34  ;;  %v721_v37 = vpack.c.bf16 %v615_v33, %v614_v31 }
 0x169   :  { %v722_v38 = vpack.c.bf16 %v617_v36, %v616_v35  ;;  %630 = vst [vmem:[#allocation11] sm:$0xff] %v721_v37 }
 0x16b   :  { %631 = vst [vmem:[#allocation11 + $0x8] sm:$0xff] %v722_v38 }
 0x16c   :  { %937 = shalt.err (!%p934_p8)
}
 0x16d   :  { %s938_s17 = scalar_lea.hbm %s1070_s4, 256 }
 0x16e   :  { %p939_p9 = scmp.ne.s32.totalorder %s1070_s4, %s938_s17  ;;  %p942_p10 = scmp.lt.u32.totalorder %s938_s17, %s1070_s4 }
 0x170   :  { %p944_p11 = pnand %p942_p10, %p939_p9 }
 0x172   :  { %947 = shalt.err (!%p944_p11)
}
 0x173   :  { %643 = dma.vmem_to_hbm [thread:$0]  %s638_s13, 256, %s1070_s4, [#allocation5], %s957_s25, %s957_s25, %s958_s26  }
 0x174   :  { %954 = dma.done.wait [#allocation5], 256  }
 0x175   :  { %955 = vsyncadd [#allocation5], 4294967040 }
 0x176   :  { %647 = vsyncpa [#allocation4], 1 }
 0x177   :  { %648 = vsyncpa [#allocation7], 1 }
 0x178   :  { %649 = vsyncpa [#allocation10], 1 }
 0x179   :  { %650 = vsyncpa [#allocation5], 1 }

</bundles_post_ra>
